<compile_context>
chip_gen: v7x
topology: tpu7x:2x2x1
jax: 0.10.0
libtpu: 0.0.40
codegen_flags: <defaults>
</compile_context>

<pallas_src>
import functools

import jax
import jax.numpy as jnp
from jax.experimental import pallas as pl
from jax.experimental.pallas import tpu as pltpu

NEG_SLOPE = 0.01  # F.leaky_relu default negative_slope


def _leaky_relu(x):
    # max(x, a*x) == leaky_relu(x) for 0 < a < 1; 2 VALU ops/elem vs 3 for where().
    return jnp.maximum(x, NEG_SLOPE * x)


def mlp_kernel(x_ref, w1_ref, b1_ref, w2_ref, b2_ref, w3_ref, b3_ref, o_ref,
               *, mxu_out):
    # x_ref:  (1, 1, TN) f32   lane-dense batch tile
    # w1_ref: (W, 1) bf16      h1.weight
    # b1_ref: (W, 1) bf16      h1.bias (column)
    # w2_ref: (W, W) bf16      h2.weight (out_features, in_features)
    # b2_ref: (W, 1) f32       h2.bias (column)
    # w3_ref: (1, W) bf16 if mxu_out else (W, 1) f32   out.weight
    # b3_ref: (1, 1) f32       SMEM scalar
    # o_ref:  (1, 1, TN) f32   lane-dense output row
    x_row = x_ref[0].astype(jnp.bfloat16)                 # (1, TN)

    # Layer 1 (in_features == 1): outer product on the VPU, in bf16.
    h = _leaky_relu(w1_ref[...] * x_row + b1_ref[...])    # (W, TN) bf16

    # Layer 2: (W, W) @ (W, TN) on the MXU; bf16 operands, f32 accumulation.
    z = jnp.dot(w2_ref[...], h, preferred_element_type=jnp.float32)
    h2 = _leaky_relu(z + b2_ref[...])                     # (W, TN) f32

    if mxu_out:
        # Small W (VALU-bound): (1, W) @ (W, TN) on the MXU keeps the output
        # lane-dense and offloads ~2*W*TN VALU ops onto an idle MXU.
        y = jnp.dot(w3_ref[...], h2.astype(jnp.bfloat16),
                    preferred_element_type=jnp.float32)   # (1, TN)
    else:
        # Large W (MXU-bound): VPU multiply + sublane (XLU) reduce instead.
        y = jnp.sum(w3_ref[...] * h2, axis=0, keepdims=True)  # (1, TN)

    o_ref[0] = y + b3_ref[0, 0]


@functools.partial(jax.jit, static_argnames=("tn",))
def regression_model_forward(x, kparams, tn=1024):
    """x: (N, 1) float32.  kparams: output of prepare_params()."""
    w1, b1, w2, b2, w3, b3 = kparams
    n = x.shape[0]
    width = w1.shape[0]
    mxu_out = (w3.shape[0] == 1)

    # Batch tile: multiple of 256 lanes; shrink so the grid has >= 2 steps when
    # possible (lets dimension_semantics=("parallel",) feed both v7x TCs).
    tn = max(256, (int(tn) // 256) * 256)
    tn_eff = min(tn, max(256, 256 * pl.cdiv(n, 2 * 256)))
    g = pl.cdiv(n, tn_eff)
    n_pad = g * tn_eff - n
    # Lane-dense batch blocks (g, 1, TN); zero-padded tail is sliced off below.
    x_blocks = jnp.pad(x.reshape(-1), (0, n_pad)).reshape(g, 1, tn_eff)

    # VMEM budget: resident weights + double-buffered x/out tiles + (W,TN)
    # intermediates (h bf16, z f32, h2 f32, h2 bf16), with 2x headroom.
    weight_bytes = width * width * 2 + 4 * width * 4
    io_bytes = 2 * 2 * tn_eff * 4
    act_bytes = width * tn_eff * (2 + 4 + 4 + 2)
    vmem_limit = int(min(96 * 1024 * 1024,
                         max(32 * 1024 * 1024,
                             2 * (weight_bytes + io_bytes + act_bytes))))

    resident = dict(pipeline_mode=pl.Buffered(1))  # constant index_map -> 1 buffer
    out = pl.pallas_call(
        functools.partial(mlp_kernel, mxu_out=mxu_out),
        out_shape=jax.ShapeDtypeStruct((g, 1, tn_eff), jnp.float32),
        grid=(g,),
        in_specs=[
            pl.BlockSpec((1, 1, tn_eff), lambda i: (i, 0, 0)),          # x (pipelined)
            pl.BlockSpec((width, 1), lambda i: (0, 0), **resident),     # w1
            pl.BlockSpec((width, 1), lambda i: (0, 0), **resident),     # b1
            pl.BlockSpec((width, width), lambda i: (0, 0), **resident),  # w2
            pl.BlockSpec((width, 1), lambda i: (0, 0), **resident),     # b2
            pl.BlockSpec(w3.shape, lambda i: (0, 0), **resident),       # w3
            pl.BlockSpec(memory_space=pltpu.MemorySpace.SMEM),          # b3 scalar
        ],
        out_specs=pl.BlockSpec((1, 1, tn_eff), lambda i: (i, 0, 0)),
        compiler_params=pltpu.CompilerParams(
            dimension_semantics=("parallel",),
            vmem_limit_bytes=vmem_limit,
        ),
    )(x_blocks, w1, b1, w2, b2, w3, b3)

    return out.reshape(g * tn_eff, 1)[:n]


def init_params(key, width):
    # Deterministic synthetic init mimicking nn.Linear's U(-1/sqrt(fan_in), ...)
    # in the torch layouts: weight (out_features, in_features), bias (out_features,).
    ks = jax.random.split(key, 6)

    def u(k, shape, fan_in):
        bound = 1.0 / jnp.sqrt(jnp.float32(fan_in))
        return jax.random.uniform(k, shape, jnp.float32, -bound, bound)

    w1 = u(ks[0], (width, 1), 1)            # h1.weight
    b1 = u(ks[1], (width,), 1)              # h1.bias
    w2 = u(ks[2], (width, width), width)    # h2.weight
    b2 = u(ks[3], (width,), width)          # h2.bias
    w3 = u(ks[4], (1, width), width)        # out.weight
    b3 = u(ks[5], (1,), width)              # out.bias
    return w1, b1, w2, b2, w3, b3


def prepare_params(params):
    """One-time conversion of torch-layout params into kernel layouts
    (hoists the bf16 casts / reshapes out of the per-call path)."""
    w1, b1, w2, b2, w3, b3 = params
    width = w1.shape[0]
    mxu_out = width <= 512
    kw1 = w1.astype(jnp.bfloat16)                           # (W, 1)
    kb1 = b1.reshape(width, 1).astype(jnp.bfloat16)         # (W, 1)
    kw2 = w2.astype(jnp.bfloat16)                           # (W, W)
    kb2 = b2.reshape(width, 1).astype(jnp.float32)          # (W, 1)
    if mxu_out:
        kw3 = w3.reshape(1, width).astype(jnp.bfloat16)     # (1, W) row for MXU
    else:
        kw3 = w3.reshape(width, 1).astype(jnp.float32)      # (W, 1) column for VPU
    kb3 = b3.reshape(1, 1).astype(jnp.float32)              # SMEM scalar
    return kw1, kb1, kw2, kb2, kw3, kb3


def reference_forward(x, params):
    """Pure-JAX f32 reference matching the PyTorch module."""
    w1, b1, w2, b2, w3, b3 = params
    h = _leaky_relu(x @ w1.T + b1)          # (N, W)
    h = _leaky_relu(h @ w2.T + b2)          # (N, W)
    return h @ w3.T + b3                    # (N, 1)


if __name__ == "__main__":
    width = 256   # module default is 1024; small width keeps the demo fast
    n = 1300      # not a multiple of the tile -> exercises the padded tail
    tn = 1024     # requested batch tile; auto-shrunk so the grid has >= 2 steps

    key = jax.random.PRNGKey(0)
    k_x, k_p = jax.random.split(key)
    x = jax.random.normal(k_x, (n, 1), jnp.float32)
    params = init_params(k_p, width)
    kparams = prepare_params(params)

    y = regression_model_forward(x, kparams, tn=tn)
    jax.block_until_ready(y)

    y_ref = reference_forward(x, params)
    assert y.shape == (n, 1)
    # Layers use bf16 operands (f32 accumulation) -> looser tolerance vs f32 ref.
    assert jnp.allclose(y, y_ref, atol=5e-2, rtol=5e-2), float(
        jnp.max(jnp.abs(y - y_ref)))

    print("KERNEL_OK")
</pallas_src>

<mosaic_0001>
module attributes {stable_mosaic.version = 11 : i64} {
  func.func @mlp_kernel(%arg0: i32, %arg1: memref<1x1x768xf32, #tpu.memory_space<vmem>>, %arg2: memref<256x1xbf16, #tpu.memory_space<vmem>>, %arg3: memref<256x1xbf16, #tpu.memory_space<vmem>>, %arg4: memref<256x256xbf16, #tpu.memory_space<vmem>>, %arg5: memref<256x1xf32, #tpu.memory_space<vmem>>, %arg6: memref<1x256xbf16, #tpu.memory_space<vmem>>, %arg7: memref<1x1xf32, #tpu.memory_space<smem>>, %arg8: memref<1x1x768xf32, #tpu.memory_space<vmem>>) attributes {dimension_semantics = [#tpu.dimension_semantics<parallel>], iteration_bounds = array<i64: 2>, scalar_prefetch = 0 : i64, scratch_operands = 0 : i64, tpu.core_type = #tpu.core_type<tc>, window_params = [{transform_indices = @transform_0, window_bounds = array<i64: 1, 1, 768>}, {pipeline_mode = #tpu.pipeline_mode<synchronous>, transform_indices = @transform_1, window_bounds = array<i64: 256, 1>}, {pipeline_mode = #tpu.pipeline_mode<synchronous>, transform_indices = @transform_2, window_bounds = array<i64: 256, 1>}, {pipeline_mode = #tpu.pipeline_mode<synchronous>, transform_indices = @transform_3, window_bounds = array<i64: 256, 256>}, {pipeline_mode = #tpu.pipeline_mode<synchronous>, transform_indices = @transform_4, window_bounds = array<i64: 256, 1>}, {pipeline_mode = #tpu.pipeline_mode<synchronous>, transform_indices = @transform_5, window_bounds = array<i64: 1, 256>}, {transform_indices = @transform_6, window_bounds = array<i64: 1, 1>}, {transform_indices = @transform_7, window_bounds = array<i64: 1, 1, 768>}]} {
    %c0 = arith.constant 0 : index
    %c0_0 = arith.constant 0 : index
    %c0_1 = arith.constant 0 : index
    %0 = vector.load %arg1[%c0, %c0_0, %c0_1] : memref<1x1x768xf32, #tpu.memory_space<vmem>>, vector<1x1x768xf32>
    %1 = vector.shape_cast %0 : vector<1x1x768xf32> to vector<1x768xf32>
    %2 = arith.truncf %1 : vector<1x768xf32> to vector<1x768xbf16>
    %c0_2 = arith.constant 0 : index
    %c0_3 = arith.constant 0 : index
    %3 = vector.load %arg2[%c0_2, %c0_3] : memref<256x1xbf16, #tpu.memory_space<vmem>>, vector<256x1xbf16>
    %4 = vector.broadcast %3 : vector<256x1xbf16> to vector<256x768xbf16>
    %5 = vector.broadcast %2 : vector<1x768xbf16> to vector<256x768xbf16>
    %6 = arith.mulf %4, %5 : vector<256x768xbf16>
    %c0_4 = arith.constant 0 : index
    %c0_5 = arith.constant 0 : index
    %7 = vector.load %arg3[%c0_4, %c0_5] : memref<256x1xbf16, #tpu.memory_space<vmem>>, vector<256x1xbf16>
    %8 = vector.broadcast %7 : vector<256x1xbf16> to vector<256x768xbf16>
    %9 = arith.addf %6, %8 : vector<256x768xbf16>
    %cst = arith.constant 1.000980e-02 : bf16
    %10 = vector.broadcast %cst : bf16 to vector<256x768xbf16>
    %11 = arith.mulf %10, %9 : vector<256x768xbf16>
    %12 = arith.maximumf %9, %11 : vector<256x768xbf16>
    %c0_6 = arith.constant 0 : index
    %c0_7 = arith.constant 0 : index
    %13 = vector.load %arg4[%c0_6, %c0_7] : memref<256x256xbf16, #tpu.memory_space<vmem>>, vector<256x256xbf16>
    %cst_8 = arith.constant dense<0.000000e+00> : vector<256x768xf32>
    %14 = tpu.matmul %13, %12, %cst_8 {dimension_numbers = #tpu.dot_dimension_numbers<[1], [0], [0], [1], [0, 0, 1, 1], [], []>} : vector<256x256xbf16>, vector<256x768xbf16>, vector<256x768xf32> -> vector<256x768xf32>
    %c0_9 = arith.constant 0 : index
    %c0_10 = arith.constant 0 : index
    %15 = vector.load %arg5[%c0_9, %c0_10] : memref<256x1xf32, #tpu.memory_space<vmem>>, vector<256x1xf32>
    %16 = vector.broadcast %15 : vector<256x1xf32> to vector<256x768xf32>
    %17 = arith.addf %14, %16 : vector<256x768xf32>
    %cst_11 = arith.constant 0.00999999977 : f32
    %18 = vector.broadcast %cst_11 : f32 to vector<256x768xf32>
    %19 = arith.mulf %18, %17 : vector<256x768xf32>
    %20 = arith.maximumf %17, %19 : vector<256x768xf32>
    %c0_12 = arith.constant 0 : index
    %c0_13 = arith.constant 0 : index
    %21 = vector.load %arg6[%c0_12, %c0_13] : memref<1x256xbf16, #tpu.memory_space<vmem>>, vector<1x256xbf16>
    %22 = arith.truncf %20 : vector<256x768xf32> to vector<256x768xbf16>
    %cst_14 = arith.constant dense<0.000000e+00> : vector<1x768xf32>
    %23 = tpu.matmul %21, %22, %cst_14 {dimension_numbers = #tpu.dot_dimension_numbers<[1], [0], [0], [1], [0, 0, 1, 1], [], []>} : vector<1x256xbf16>, vector<256x768xbf16>, vector<1x768xf32> -> vector<1x768xf32>
    %c0_15 = arith.constant 0 : index
    %c0_16 = arith.constant 0 : index
    %24 = memref.load %arg7[%c0_15, %c0_16] : memref<1x1xf32, #tpu.memory_space<smem>>
    %25 = vector.broadcast %24 : f32 to vector<1x768xf32>
    %26 = arith.addf %23, %25 : vector<1x768xf32>
    %c0_17 = arith.constant 0 : index
    %c0_18 = arith.constant 0 : index
    %c0_19 = arith.constant 0 : index
    %27 = vector.load %arg8[%c0_17, %c0_18, %c0_19] : memref<1x1x768xf32, #tpu.memory_space<vmem>>, vector<1x1x768xf32>
    %28 = vector.shape_cast %27 : vector<1x1x768xf32> to vector<1x768xf32>
    %29 = vector.shape_cast %26 : vector<1x768xf32> to vector<1x1x768xf32>
    tpu.vector_store %arg8[%c0_17, %c0_18, %c0_19], %29 {strides = array<i32>} : memref<1x1x768xf32, #tpu.memory_space<vmem>>, vector<1x1x768xf32>,
    return
  }
  func.func @transform_0(%arg0: i32) -> (i32, i32, i32) {
    %c0_i32 = arith.constant 0 : i32
    %c0_i32_0 = arith.constant 0 : i32
    %c0_i32_1 = arith.constant 0 : i32
    return %arg0, %c0_i32, %c0_i32_0 : i32, i32, i32
  }
  func.func @transform_1(%arg0: i32) -> (i32, i32) {
    %c0_i32 = arith.constant 0 : i32
    %c0_i32_0 = arith.constant 0 : i32
    %c0_i32_1 = arith.constant 0 : i32
    return %c0_i32, %c0_i32_0 : i32, i32
  }
  func.func @transform_2(%arg0: i32) -> (i32, i32) {
    %c0_i32 = arith.constant 0 : i32
    %c0_i32_0 = arith.constant 0 : i32
    %c0_i32_1 = arith.constant 0 : i32
    return %c0_i32, %c0_i32_0 : i32, i32
  }
  func.func @transform_3(%arg0: i32) -> (i32, i32) {
    %c0_i32 = arith.constant 0 : i32
    %c0_i32_0 = arith.constant 0 : i32
    %c0_i32_1 = arith.constant 0 : i32
    return %c0_i32, %c0_i32_0 : i32, i32
  }
  func.func @transform_4(%arg0: i32) -> (i32, i32) {
    %c0_i32 = arith.constant 0 : i32
    %c0_i32_0 = arith.constant 0 : i32
    %c0_i32_1 = arith.constant 0 : i32
    return %c0_i32, %c0_i32_0 : i32, i32
  }
  func.func @transform_5(%arg0: i32) -> (i32, i32) {
    %c0_i32 = arith.constant 0 : i32
    %c0_i32_0 = arith.constant 0 : i32
    %c0_i32_1 = arith.constant 0 : i32
    return %c0_i32, %c0_i32_0 : i32, i32
  }
  func.func @transform_6(%arg0: i32) -> (i32, i32) {
    %c0_i32 = arith.constant 0 : i32
    %c0_i32_0 = arith.constant 0 : i32
    %c0_i32_1 = arith.constant 0 : i32
    return %c0_i32, %c0_i32_0 : i32, i32
  }
  func.func @transform_7(%arg0: i32) -> (i32, i32, i32) {
    %c0_i32 = arith.constant 0 : i32
    %c0_i32_0 = arith.constant 0 : i32
    %c0_i32_1 = arith.constant 0 : i32
    return %arg0, %c0_i32, %c0_i32_0 : i32, i32, i32
  }
}

</mosaic_0001>

<bundles_post_ra>
// kernel: regression_model_forward.1
= control target key start
LH: loop header
LB: loop body
LE: loop exit
PB: predicated region body
PF: predicated region fallthrough
CT: control target
= control target key end

     0   :  { %s4026_s26 = smov 0   ;;  %s5550_s0 = inlined_call_operand.vmem [shape: f32[2,1,768], index: 0, kind: input, shape index: {}]   ;;  %s5551_s1 = inlined_call_operand.vmem [shape: bf16[256,1], index: 1, kind: input, shape index: {}]   ;;  %s5552_s2 = inlined_call_operand.vmem [shape: bf16[256,1], index: 2, kind: input, shape index: {}]   ;;  %s5553_s3 = inlined_call_operand.vmem [shape: bf16[256,256], index: 3, kind: input, shape index: {}]   ;;  %s5554_s4 = inlined_call_operand.vmem [shape: f32[256,1], index: 4, kind: input, shape index: {}]   ;;  %s5555_s5 = inlined_call_operand.vmem [shape: bf16[1,256], index: 5, kind: input, shape index: {}]   ;;  %s5556_s6 = inlined_call_operand.<no memory space> [shape: f32[1,1], index: 6, kind: input, shape index: {}]   ;;  %s5557_s7 = inlined_call_operand.vmem [shape: f32[2,1,768], index: 7, kind: output, shape index: {}]  }
   0x1   :  { %12 = sst [smem:[#allocation2]] %s5556_s6 }
   0x2 LB: > { %s3769_s27 = sadd.s32 4294967295, %s3978_s26   ;;  %p3773_p0 = scmp.ge.s32.totalorder %s3978_s26, 1  ;;  %s3978_s26 = sphi %s4026_s26, %s18_s26  }
   0x3   : > { %p237_p1 = scmp.lt.s32.totalorder %s3978_s26, 3 }
   0x5   : > { %p238_p2 = pnand %p3773_p0, %p237_p1 }
   0x7   : > { %241 = sbr.rel (%p238_p2) target bundleno = 981 (0x3d5), region = 48 }
   0xe   : > { %v886_v0 = vld [vmem:[%s5552_s2] sm:$0xf]  ;;  %v3980_v2 = vmov 0   ;;  %v887_v3 = vld [vmem:[%s5552_s2 + $0x4] sm:$0xf]  ;;  %v5558_v11 = vlaneseq  ;;  %p267_p3 = scmp.lt.s32.totalorder %s3769_s27, 1 }
   0xf   : > { %v314_v1 = vld [vmem:[%s5551_s1] sm:$0xf]  ;;  %3921 = vset.pattern.permute.xlu1 %v3980_v2  ;;  %3920 = vset.pattern.permute.xlu0 %v3980_v2  ;;  %v315_v4 = vld [vmem:[%s5551_s1 + $0x4] sm:$0xf]  ;;  %v317_v5 = vld [vmem:[%s5551_s1 + $0xc] sm:$0xf] }
  0x10   : > { %920 = vperm.xlu1 %3921, %v886_v0   ;;  %348 = vperm.xlu0 %3920, %v314_v1   ;;  %v316_v6 = vld [vmem:[%s5551_s1 + $0x8] sm:$0xf]  ;;  %v889_v7 = vld [vmem:[%s5552_s2 + $0xc] sm:$0xf]  ;;  %v319_v9 = vld [vmem:[%s5551_s1 + $0x14] sm:$0xf] }
  0x11   : > { %v888_v8 = vld [vmem:[%s5552_s2 + $0x8] sm:$0xf]  ;;  %v318_v10 = vld [vmem:[%s5551_s1 + $0x10] sm:$0xf]  ;;  %v891_v12 = vld [vmem:[%s5552_s2 + $0x14] sm:$0xf] }
  0x12   : > { %v890_v13 = vld [vmem:[%s5552_s2 + $0x10] sm:$0xf]  ;;  %v4073_v14 = vshrl.u32 %v5558_v11, 7  ;;  %s5692_s27 = smov (!%p267_p3, %s3769_s27), 1  ;;  %v321_v15 = vld [vmem:[%s5551_s1 + $0x1c] sm:$0xf] }
  0x13   : > { %v320_v16 = vld [vmem:[%s5551_s1 + $0x18] sm:$0xf]  ;;  %s3908_s10 = smul.u32 6, %s5692_s27  ;;  %v893_v19 = vld [vmem:[%s5552_s2 + $0x1c] sm:$0xf] }
  0x14   : > { %932 = vperm.xlu1 %3921, %v887_v3   ;;  %360 = vperm.xlu0 %3920, %v315_v4   ;;  %v296_v17 = vsub.s32 4, %v4073_v14  ;;  %v300_v18 = vsub.s32 5, %v4073_v14  ;;  %v892_v20 = vld [vmem:[%s5552_s2 + $0x18] sm:$0xf]  ;;  %v323_v24 = vld [vmem:[%s5551_s1 + $0x24] sm:$0xf] }
  0x15   : > { %s270_s17 = scalar_lea.vmem %s5550_s0, %s3908_s10  ;;  %v322_v25 = vld [vmem:[%s5551_s1 + $0x20] sm:$0xf]  ;;  %v4110_v28 = vsub.s32 0, %v4073_v14  ;;  %v895_v31 = vld [vmem:[%s5552_s2 + $0x24] sm:$0xf]  ;;  %s274_s20 = scalar_lea.vmem %s5557_s7, %s3908_s10 }
  0x16   : > { %v4099_v21 = vld [vmem:[%s270_s17] sm:$0x3f]  ;;  %v325_v36 = vld [vmem:[%s5551_s1 + $0x2c] sm:$0xf]  ;;  %v324_v37 = vld [vmem:[%s5551_s1 + $0x28] sm:$0xf] }
  0x17   : > { %v297_v22 = vrot.slane %v4099_v21, %v296_v17  ;;  %v301_v23 = vrot.slane %v4099_v21, %v300_v18  ;;  %v894_v32 = vld [vmem:[%s5552_s2 + $0x20] sm:$0xf]  ;;  %v897_v38 = vld [vmem:[%s5552_s2 + $0x2c] sm:$0xf]  ;;  %v896_v39 = vld [vmem:[%s5552_s2 + $0x28] sm:$0xf] }
  0x18   : > { %384 = vperm.xlu1 %3921, %v317_v5   ;;  %372 = vperm.xlu0 %3920, %v316_v6   ;;  %v327_v40 = vld [vmem:[%s5551_s1 + $0x34] sm:$0xf]  ;;  %v326_v41 = vld [vmem:[%s5551_s1 + $0x30] sm:$0xf]  ;;  %v329_v44 = vld [vmem:[%s5551_s1 + $0x3c] sm:$0xf] }
  0x19   : > { %v312_v26 = vpack.c.bf16 %v297_v22, %v297_v22  ;;  %v313_v27 = vpack.c.bf16 %v301_v23, %v301_v23  ;;  %v899_v42 = vld [vmem:[%s5552_s2 + $0x34] sm:$0xf]  ;;  %v898_v43 = vld [vmem:[%s5552_s2 + $0x30] sm:$0xf]  ;;  %v328_v45 = vld [vmem:[%s5551_s1 + $0x38] sm:$0xf] }
  0x1a   : > { %v901_v46 = vld [vmem:[%s5552_s2 + $0x3c] sm:$0xf]  ;;  %v900_v47 = vld [vmem:[%s5552_s2 + $0x38] sm:$0xf]  ;;  %v331_v48 = vld [vmem:[%s5551_s1 + $0x44] sm:$0xf] }
  0x1b   : > { %v759_v29 = vpack.i.b16 %v312_v26, %v312_v26  ;;  %v766_v30 = vpack.i.b16 %v313_v27, %v313_v27  ;;  %v330_v49 = vld [vmem:[%s5551_s1 + $0x40] sm:$0xf]  ;;  %v903_v50 = vld [vmem:[%s5552_s2 + $0x44] sm:$0xf]  ;;  %v333_v52 = vld [vmem:[%s5551_s1 + $0x4c] sm:$0xf] }
  0x1c   : > { %956 = vperm.xlu1 %3921, %v889_v7   ;;  %944 = vperm.xlu0 %3920, %v888_v8   ;;  %v902_v51 = vld [vmem:[%s5552_s2 + $0x40] sm:$0xf]  ;;  %v332_v53 = vld [vmem:[%s5551_s1 + $0x48] sm:$0xf]  ;;  %v905_v54 = vld [vmem:[%s5552_s2 + $0x4c] sm:$0xf] }
  0x1d   : > { %v764_v33 = vrot.slane %v759_v29, %v4110_v28  ;;  %v771_v34 = vrot.slane %v766_v30, %v4110_v28  ;;  %v904_v55 = vld [vmem:[%s5552_s2 + $0x48] sm:$0xf]  ;;  %v335_v56 = vld [vmem:[%s5551_s1 + $0x54] sm:$0xf]  ;;  %v334_v57 = vld [vmem:[%s5551_s1 + $0x50] sm:$0xf] }
  0x1e   : > { %v907_v58 = vld [vmem:[%s5552_s2 + $0x54] sm:$0xf]  ;;  %v906_v59 = vld [vmem:[%s5552_s2 + $0x50] sm:$0xf]  ;;  %v337_v60 = vld [vmem:[%s5551_s1 + $0x5c] sm:$0xf] }
  0x1f   : > { %v4120_v35 = vcombine.low %v764_v33, %v771_v34  ;;  %v336_v61 = vld [vmem:[%s5551_s1 + $0x58] sm:$0xf]  ;;  %v909_v62 = vld [vmem:[%s5552_s2 + $0x5c] sm:$0xf]  ;;  %v339_v0 = vld [vmem:[%s5551_s1 + $0x64] sm:$0xf] }
  0x20   : > { %408 = vperm.xlu1 %3921, %v319_v9   ;;  %396 = vperm.xlu0 %3920, %v318_v10   ;;  %v908_v63 = vld [vmem:[%s5552_s2 + $0x58] sm:$0xf]  ;;  %v338_v1 = vld [vmem:[%s5551_s1 + $0x60] sm:$0xf]  ;;  %v911_v2 = vld [vmem:[%s5552_s2 + $0x64] sm:$0xf] }
  0x21   : > { %v910_v3 = vld [vmem:[%s5552_s2 + $0x60] sm:$0xf]  ;;  %v341_v4 = vld [vmem:[%s5551_s1 + $0x6c] sm:$0xf]  ;;  %v340_v5 = vld [vmem:[%s5551_s1 + $0x68] sm:$0xf] }
  0x22   : > { %v913_v6 = vld [vmem:[%s5552_s2 + $0x6c] sm:$0xf]  ;;  %v912_v7 = vld [vmem:[%s5552_s2 + $0x68] sm:$0xf]  ;;  %v284_v8 = vsub.s32 1, %v4073_v14  ;;  %v288_v9 = vsub.s32 2, %v4073_v14 }
  0x23   : > { %v292_v10 = vsub.s32 3, %v4073_v14  ;;  %v3981_v26 = vmov 839922192   ;;  %v344_v29 = vld [vmem:[%s5551_s1 + $0x78] sm:$0xf]  ;;  %s3514_s17 = sld [smem:[#allocation2]] }
  0x24   : > { %980 = vperm.xlu1 %3921, %v891_v12   ;;  %968 = vperm.xlu0 %3920, %v890_v13   ;;  %v343_v12 = vld [vmem:[%s5551_s1 + $0x74] sm:$0xf]  ;;  %v342_v13 = vld [vmem:[%s5551_s1 + $0x70] sm:$0xf]  ;;  %v289_v17 = vrot.slane %v4099_v21, %v288_v9  ;;  %v352_v27 = vunpack.c.l.s4 %v3981_v26  ;;  %v1629_v9 = vld [vmem:[%s5554_s4 + $0x38] sm:$0xff] }
  0x25   : > { %v293_v18 = vrot.slane %v4099_v21, %v292_v10  ;;  %v1628_v10 = vld [vmem:[%s5554_s4 + $0x30] sm:$0xff] }
  0x26   : > { %v353_v34 = vunpack.c.0.s8 %v352_v27 }
  0x28   : > { %432 = vperm.xlu1 %3921, %v321_v15   ;;  %420 = vperm.xlu0 %3920, %v320_v16   ;;  %v281_v15 = vrot.slane %v4099_v21, %v4110_v28  ;;  %v285_v16 = vrot.slane %v4099_v21, %v284_v8  ;;  %v345_v21 = vld [vmem:[%s5551_s1 + $0x7c] sm:$0xf] }
  0x2a   : > { %v308_v22 = vpack.c.bf16 %v281_v15, %v281_v15  ;;  %v309_v23 = vpack.c.bf16 %v285_v16, %v285_v16  ;;  %v3922_v16 = vld [vmem:[%s5553_s3 + $0x4] ss:$8 sps:$4 sm:$0xff]  }
  0x2b   : > { %2486 = vmatprep.mubr.bf16.mxu0 %v3922_v16  ;;  %2679 = vmatprep.mubr.bf16.mxu1 %v3922_v16 }
  0x2c   : > { %1004 = vperm.xlu1 %3921, %v893_v19   ;;  %992 = vperm.xlu0 %3920, %v892_v20   ;;  %v915_v19 = vld [vmem:[%s5552_s2 + $0x74] sm:$0xf]  ;;  %v914_v20 = vld [vmem:[%s5552_s2 + $0x70] sm:$0xf]  ;;  %v731_v30 = vpack.i.b16 %v308_v22, %v308_v22 }
  0x30   : > { %456 = vperm.xlu1 %3921, %v323_v24   ;;  %444 = vperm.xlu0 %3920, %v322_v25   ;;  %v310_v24 = vpack.c.bf16 %v289_v17, %v289_v17  ;;  %v311_v25 = vpack.c.bf16 %v293_v18, %v293_v18 }
  0x32   : > { %v752_v33 = vpack.i.b16 %v311_v25, %v311_v25 }
  0x34   : > { %1028 = vperm.xlu1 %3921, %v895_v31   ;;  %1016 = vperm.xlu0 %3920, %v894_v32   ;;  %v738_v31 = vpack.i.b16 %v309_v23, %v309_v23  ;;  %v745_v32 = vpack.i.b16 %v310_v24, %v310_v24 }
  0x38   : > { %480 = vperm.xlu1 %3921, %v325_v36   ;;  %468 = vperm.xlu0 %3920, %v324_v37   ;;  %v917_v36 = vld [vmem:[%s5552_s2 + $0x7c] sm:$0xf]  ;;  %v916_v37 = vld [vmem:[%s5552_s2 + $0x78] sm:$0xf] }
  0x3c   : > { %1052 = vperm.xlu1 %3921, %v897_v38   ;;  %1040 = vperm.xlu0 %3920, %v896_v39   ;;  %v736_v38 = vrot.slane %v731_v30, %v4110_v28  ;;  %v743_v39 = vrot.slane %v738_v31, %v4110_v28  ;;  %v1631_v31 = vld [vmem:[%s5554_s4 + $0x48] sm:$0xff] }
  0x40   : > { %504 = vperm.xlu1 %3921, %v327_v40   ;;  %492 = vperm.xlu0 %3920, %v326_v41   ;;  %v750_v40 = vrot.slane %v745_v32, %v4110_v28  ;;  %v757_v41 = vrot.slane %v752_v33, %v4110_v28  ;;  %v1630_v32 = vld [vmem:[%s5554_s4 + $0x40] sm:$0xff] }
  0x44   : > { %1076 = vperm.xlu1 %3921, %v899_v42   ;;  %1064 = vperm.xlu0 %3920, %v898_v43   ;;  %v4267_v42 = vsub.s32 %v353_v34, %v4073_v14  ;;  %v1623_v43 = vld [vmem:[%s5554_s4 + $0x8] sm:$0xff] }
  0x48   : > { %528 = vperm.xlu1 %3921, %v329_v44   ;;  %516 = vperm.xlu0 %3920, %v328_v45   ;;  %v1622_v44 = vld [vmem:[%s5554_s4] sm:$0xff]  ;;  %v4275_v45 = vcombine.low %v736_v38, %v743_v39 }
  0x4c   : > { %1100 = vperm.xlu1 %3921, %v901_v46   ;;  %1088 = vperm.xlu0 %3920, %v900_v47   ;;  %v4277_v46 = vcombine.low %v750_v40, %v757_v41 }
  0x50   : > { %552 = vperm.xlu1 %3921, %v331_v48   ;;  %540 = vperm.xlu0 %3920, %v330_v49   ;;  %v1625_v49 = vld [vmem:[%s5554_s4 + $0x18] sm:$0xff] }
  0x54   : > { %1124 = vperm.xlu1 %3921, %v903_v50   ;;  %1112 = vperm.xlu0 %3920, %v902_v51   ;;  %v1624_v50 = vld [vmem:[%s5554_s4 + $0x10] sm:$0xff] }
  0x58   : > { %576 = vperm.xlu1 %3921, %v333_v52   ;;  %564 = vperm.xlu0 %3920, %v332_v53  }
  0x5c   : > { %1148 = vperm.xlu1 %3921, %v905_v54   ;;  %1136 = vperm.xlu0 %3920, %v904_v55  }
  0x60   : > { %600 = vperm.xlu1 %3921, %v335_v56   ;;  %588 = vperm.xlu0 %3920, %v334_v57  }
  0x64   : > { %1172 = vperm.xlu1 %3921, %v907_v58   ;;  %1160 = vperm.xlu0 %3920, %v906_v59   ;;  %v1627_v59 = vld [vmem:[%s5554_s4 + $0x28] sm:$0xff] }
  0x68   : > { %624 = vperm.xlu1 %3921, %v337_v60   ;;  %612 = vperm.xlu0 %3920, %v336_v61   ;;  %v1626_v60 = vld [vmem:[%s5554_s4 + $0x20] sm:$0xff] }
  0x6c   : > { %1196 = vperm.xlu1 %3921, %v909_v62   ;;  %1184 = vperm.xlu0 %3920, %v908_v63  }
  0x70   : > { %648 = vperm.xlu1 %3921, %v339_v0   ;;  %636 = vperm.xlu0 %3920, %v338_v1  }
  0x74   : > { %1220 = vperm.xlu1 %3921, %v911_v2   ;;  %1208 = vperm.xlu0 %3920, %v910_v3  }
  0x78   : > { %672 = vperm.xlu1 %3921, %v341_v4   ;;  %660 = vperm.xlu0 %3920, %v340_v5  }
  0x7c   : > { %1244 = vperm.xlu1 %3921, %v913_v6   ;;  %1232 = vperm.xlu0 %3920, %v912_v7  }
  0x80   : > { %696 = vperm.xlu1 %3921, %v343_v12   ;;  %684 = vperm.xlu0 %3920, %v342_v13  }
  0x84   : > { %1268 = vperm.xlu1 %3921, %v915_v19   ;;  %1256 = vperm.xlu0 %3920, %v914_v20  }
  0x88   : > { %720 = vperm.xlu1 %3921, %v345_v21   ;;  %708 = vperm.xlu0 %3920, %v344_v29  }
  0x8c   : > { %1292 = vperm.xlu1 %3921, %v917_v36   ;;  %1280 = vperm.xlu0 %3920, %v916_v37  }
  0x8f   : > { %v921_v47 = vpop.permute.xlu1 %920  ;;  %v349_v48 = vpop.permute.xlu0 %348 }
  0x90   : > { %v357_v28 = vrot.slane %v349_v48, %v4267_v42  ;;  %1661 = vperm.xlu1 %3921, %v1623_v43   ;;  %1656 = vperm.xlu0 %3920, %v1622_v44   ;;  %v929_v51 = vrot.slane %v921_v47, %v4267_v42 }
  0x92   : > { %v790_v52 = vmul.bf16 %v4275_v45, %v357_v28  ;;  %v791_v53 = vmul.bf16 %v4277_v46, %v357_v28  ;;  %v792_v54 = vmul.bf16 %v4120_v35, %v357_v28 }
  0x93   : > { %v933_v55 = vpop.permute.xlu1 %932  ;;  %v361_v56 = vpop.permute.xlu0 %360 }
  0x94   : > { %v4290_v57 = vadd.bf16 %v929_v51, %v792_v54  ;;  %v369_v58 = vrot.slane %v361_v56, %v4267_v42  ;;  %1671 = vperm.xlu1 %3921, %v1625_v49   ;;  %1666 = vperm.xlu0 %3920, %v1624_v50   ;;  %v1302_v61 = vadd.bf16 %v929_v51, %v790_v52 }
  0x95   : > { %v1303_v62 = vadd.bf16 %v929_v51, %v791_v53  ;;  %v941_v63 = vrot.slane %v933_v55, %v4267_v42  ;;  %v1633_v51 = vld [vmem:[%s5554_s4 + $0x58] sm:$0xff] }
  0x96   : > { %v793_v0 = vmul.bf16 %v4275_v45, %v369_v58  ;;  %v794_v1 = vmul.bf16 %v4277_v46, %v369_v58  ;;  %v795_v2 = vmul.bf16 %v4120_v35, %v369_v58  ;;  %v1398_v5 = vmul.bf16 1009007652, %v1302_v61 }
  0x97   : > { %v385_v3 = vpop.permute.xlu1 %384  ;;  %v373_v4 = vpop.permute.xlu0 %372  ;;  %v1399_v15 = vmul.bf16 1009007652, %v1303_v62 }
  0x98   : > { %v4303_v6 = vadd.bf16 %v941_v63, %v795_v2  ;;  %v393_v7 = vrot.slane %v385_v3, %v4267_v42  ;;  %v381_v8 = vrot.slane %v373_v4, %v4267_v42  ;;  %1681 = vperm.xlu1 %3921, %v1627_v59   ;;  %1676 = vperm.xlu0 %3920, %v1626_v60  }
  0x99   : > { %v1305_v12 = vadd.bf16 %v941_v63, %v793_v0  ;;  %v1306_v13 = vadd.bf16 %v941_v63, %v794_v1  ;;  %v1494_v19 = vmax.bf16 %v1398_v5, %v1302_v61  ;;  %v1495_v34 = vmax.bf16 %v1399_v15, %v1303_v62  ;;  %v1632_v61 = vld [vmem:[%s5554_s4 + $0x50] sm:$0xff] }
  0x9a   : > { %v799_v17 = vmul.bf16 %v4275_v45, %v393_v7  ;;  %v801_v18 = vmul.bf16 %v4120_v35, %v393_v7  ;;  %v800_v20 = vmul.bf16 %v4277_v46, %v393_v7  ;;  %v798_v22 = vmul.bf16 %v4120_v35, %v381_v8 }
  0x9b   : > { %v957_v23 = vpop.permute.xlu1 %956  ;;  %v945_v24 = vpop.permute.xlu0 %944  ;;  %v1401_v25 = vmul.bf16 1009007652, %v1305_v12  ;;  %v1402_v26 = vmul.bf16 1009007652, %v1306_v13  ;;  %v796_v27 = vmul.bf16 %v4275_v45, %v381_v8  ;;  %v797_v30 = vmul.bf16 %v4277_v46, %v381_v8 }
  0x9c   : > { %v965_v21 = vrot.slane %v957_v23, %v4267_v42  ;;  %v953_v29 = vrot.slane %v945_v24, %v4267_v42  ;;  %1691 = vperm.xlu1 %3921, %v1629_v9   ;;  %1686 = vperm.xlu0 %3920, %v1628_v10  }
  0x9d   : > { %v1497_v33 = vmax.bf16 %v1401_v25, %v1305_v12  ;;  %v1498_v36 = vmax.bf16 %v1402_v26, %v1306_v13  ;;  %v1635_v12 = vld [vmem:[%s5554_s4 + $0x68] sm:$0xff]  ;;  %v1634_v25 = vld [vmem:[%s5554_s4 + $0x60] sm:$0xff] }
  0x9e   : > { %v1311_v37 = vadd.bf16 %v965_v21, %v799_v17  ;;  %v1312_v38 = vadd.bf16 %v965_v21, %v800_v20  ;;  %v4330_v39 = vadd.bf16 %v965_v21, %v801_v18  ;;  %v1308_v40 = vadd.bf16 %v953_v29, %v796_v27  ;;  %v1637_v21 = vld [vmem:[%s5554_s4 + $0x78] sm:$0xff] }
  0x9f   : > { %v1309_v41 = vadd.bf16 %v953_v29, %v797_v30  ;;  %v4332_v43 = vadd.bf16 %v953_v29, %v798_v22  ;;  %v409_v44 = vpop.permute.xlu1 %408  ;;  %v397_v47 = vpop.permute.xlu0 %396  ;;  %v3810_v48 = vcombine.high %v1494_v19, %v1497_v33  ;;  %v3812_v28 = vcombine.high %v1495_v34, %v1498_v36 }
  0xa0   : > { %v1407_v49 = vmul.bf16 1009007652, %v1311_v37  ;;  %v417_v50 = vrot.slane %v409_v44, %v4267_v42  ;;  %1701 = vperm.xlu1 %3921, %v1631_v31   ;;  %1696 = vperm.xlu0 %3920, %v1630_v32   ;;  %v1408_v52 = vmul.bf16 1009007652, %v1312_v38  ;;  %v1404_v53 = vmul.bf16 1009007652, %v1308_v40 }
  0xa1   : > { %v1405_v54 = vmul.bf16 1009007652, %v1309_v41  ;;  %v405_v55 = vrot.slane %v397_v47, %v4267_v42  ;;  %2454 = vmatprep.subr.bf16.mxu0 %v3810_v48  ;;  %2647 = vmatprep.subr.bf16.mxu1 %v3812_v28  ;;  %v3809_v60 = vcombine.low %v1494_v19, %v1497_v33  ;;  %v3811_v1 = vcombine.low %v1495_v34, %v1498_v36  ;;  %v1636_v28 = vld [vmem:[%s5554_s4 + $0x70] sm:$0xff] }
  0xa2   : > { %v805_v56 = vmul.bf16 %v4275_v45, %v417_v50  ;;  %v806_v58 = vmul.bf16 %v4277_v46, %v417_v50  ;;  %v807_v59 = vmul.bf16 %v4120_v35, %v417_v50  ;;  %v1500_v7 = vmax.bf16 %v1404_v53, %v1308_v40 }
  0xa3   : > { %v802_v62 = vmul.bf16 %v4275_v45, %v405_v55  ;;  %v803_v63 = vmul.bf16 %v4277_v46, %v405_v55  ;;  %v804_v0 = vmul.bf16 %v4120_v35, %v405_v55  ;;  %v981_v2 = vpop.permute.xlu1 %980  ;;  %v969_v3 = vpop.permute.xlu0 %968  ;;  %2455 = vmatpush1.bf16.msra.mxu0 %v3809_v60  ;;  %2648 = vmatpush1.bf16.msra.mxu1 %v3811_v1 }
  0xa4   : > { %v989_v4 = vrot.slane %v981_v2, %v4267_v42  ;;  %v977_v5 = vrot.slane %v969_v3, %v4267_v42  ;;  %1711 = vperm.xlu1 %3921, %v1633_v51   ;;  %1706 = vperm.xlu0 %3920, %v1632_v61   ;;  %v1503_v8 = vmax.bf16 %v1407_v49, %v1311_v37  ;;  %v1400_v37 = vmul.bf16 1009007652, %v4290_v57 }
  0xa5   : > { %v1501_v9 = vmax.bf16 %v1405_v54, %v1309_v41  ;;  %v1504_v10 = vmax.bf16 %v1408_v52, %v1312_v38  ;;  %v1403_v52 = vmul.bf16 1009007652, %v4303_v6 }
  0xa6   : > { %v1317_v13 = vadd.bf16 %v989_v4, %v805_v56  ;;  %v1318_v15 = vadd.bf16 %v989_v4, %v806_v58  ;;  %v4353_v16 = vadd.bf16 %v989_v4, %v807_v59  ;;  %v1314_v17 = vadd.bf16 %v977_v5, %v802_v62  ;;  %v1639_v58 = vld [vmem:[%s5554_s4 + $0x88] sm:$0xff] }
  0xa7   : > { %v1315_v18 = vadd.bf16 %v977_v5, %v803_v63  ;;  %v4355_v19 = vadd.bf16 %v977_v5, %v804_v0  ;;  %v3816_v20 = vcombine.high %v1500_v7, %v1503_v8  ;;  %v3818_v22 = vcombine.high %v1501_v9, %v1504_v10  ;;  %v433_v23 = vpop.permute.xlu1 %432  ;;  %v421_v24 = vpop.permute.xlu0 %420  ;;  %v1638_v5 = vld [vmem:[%s5554_s4 + $0x80] sm:$0xff] }
  0xa8   : > { %v1413_v26 = vmul.bf16 1009007652, %v1317_v13  ;;  %v441_v27 = vrot.slane %v433_v23, %v4267_v42  ;;  %1721 = vperm.xlu1 %3921, %v1635_v12   ;;  %v1414_v29 = vmul.bf16 1009007652, %v1318_v15  ;;  %v1410_v30 = vmul.bf16 1009007652, %v1314_v17  ;;  %1716 = vperm.xlu0 %3920, %v1634_v25  }
  0xa9   : > { %v1411_v31 = vmul.bf16 1009007652, %v1315_v18  ;;  %2456 = vmatprep.subr.bf16.mxu0 %v3816_v20  ;;  %2649 = vmatprep.subr.bf16.mxu1 %v3818_v22  ;;  %v429_v32 = vrot.slane %v421_v24, %v4267_v42  ;;  %v3815_v36 = vcombine.low %v1500_v7, %v1503_v8  ;;  %v3817_v44 = vcombine.low %v1501_v9, %v1504_v10  ;;  %v1641_v9 = vld [vmem:[%s5554_s4 + $0x98] sm:$0xff] }
  0xaa   : > { %v811_v33 = vmul.bf16 %v4275_v45, %v441_v27  ;;  %v813_v34 = vmul.bf16 %v4120_v35, %v441_v27  ;;  %v812_v38 = vmul.bf16 %v4277_v46, %v441_v27  ;;  %v1506_v51 = vmax.bf16 %v1410_v30, %v1314_v17 }
  0xab   : > { %v808_v40 = vmul.bf16 %v4275_v45, %v429_v32  ;;  %v810_v41 = vmul.bf16 %v4120_v35, %v429_v32  ;;  %v1005_v47 = vpop.permute.xlu1 %1004  ;;  %v993_v48 = vpop.permute.xlu0 %992  ;;  %2457 = vmatpush1.bf16.msra.mxu0 %v3815_v36  ;;  %v809_v53 = vmul.bf16 %v4277_v46, %v429_v32  ;;  %2650 = vmatpush1.bf16.msra.mxu1 %v3817_v44 }
  0xac   : > { %v1013_v49 = vrot.slane %v1005_v47, %v4267_v42  ;;  %v1001_v50 = vrot.slane %v993_v48, %v4267_v42  ;;  %1731 = vperm.xlu1 %3921, %v1637_v21   ;;  %v1509_v54 = vmax.bf16 %v1413_v26, %v1317_v13  ;;  %v1507_v55 = vmax.bf16 %v1411_v31, %v1315_v18 }
  0xad   : > { %v1510_v56 = vmax.bf16 %v1414_v29, %v1318_v15  ;;  %1726 = vperm.xlu0 %3920, %v1636_v28   ;;  %v4393_v10 = vmax.bf16 %v1400_v37, %v4290_v57  ;;  %v4396_v12 = vmax.bf16 %v1403_v52, %v4303_v6  ;;  %v1640_v29 = vld [vmem:[%s5554_s4 + $0x90] sm:$0xff]  ;;  %v1643_v37 = vld [vmem:[%s5554_s4 + $0xa8] sm:$0xff] }
  0xae   : > { %v1323_v59 = vadd.bf16 %v1013_v49, %v811_v33  ;;  %v1324_v60 = vadd.bf16 %v1013_v49, %v812_v38  ;;  %v4381_v61 = vadd.bf16 %v1013_v49, %v813_v34  ;;  %v1320_v62 = vadd.bf16 %v1001_v50, %v808_v40 }
  0xaf   : > { %v1321_v63 = vadd.bf16 %v1001_v50, %v809_v53  ;;  %v4383_v0 = vadd.bf16 %v1001_v50, %v810_v41  ;;  %v3822_v1 = vcombine.high %v1506_v51, %v1509_v54  ;;  %v3824_v2 = vcombine.high %v1507_v55, %v1510_v56  ;;  %v457_v3 = vpop.permute.xlu1 %456  ;;  %v445_v4 = vpop.permute.xlu0 %444  ;;  %v1642_v53 = vld [vmem:[%s5554_s4 + $0xa0] sm:$0xff] }
  0xb0   : > { %v1419_v7 = vmul.bf16 1009007652, %v1323_v59  ;;  %v465_v8 = vrot.slane %v457_v3, %v4267_v42  ;;  %1741 = vperm.xlu1 %3921, %v1639_v58   ;;  %v1420_v13 = vmul.bf16 1009007652, %v1324_v60  ;;  %v1416_v15 = vmul.bf16 1009007652, %v1320_v62 }
  0xb1   : > { %v1417_v17 = vmul.bf16 1009007652, %v1321_v63  ;;  %2458 = vmatprep.subr.bf16.mxu0 %v3822_v1  ;;  %2651 = vmatprep.subr.bf16.mxu1 %v3824_v2  ;;  %v453_v18 = vrot.slane %v445_v4, %v4267_v42  ;;  %v3821_v24 = vcombine.low %v1506_v51, %v1509_v54  ;;  %v3823_v26 = vcombine.low %v1507_v55, %v1510_v56  ;;  %v1645_v56 = vld [vmem:[%s5554_s4 + $0xb8] sm:$0xff] }
  0xb2   : > { %v817_v20 = vmul.bf16 %v4275_v45, %v465_v8  ;;  %v818_v22 = vmul.bf16 %v4277_v46, %v465_v8  ;;  %v819_v23 = vmul.bf16 %v4120_v35, %v465_v8  ;;  %1736 = vperm.xlu0 %3920, %v1638_v5   ;;  %v1512_v32 = vmax.bf16 %v1416_v15, %v1320_v62  ;;  %v1644_v15 = vld [vmem:[%s5554_s4 + $0xb0] sm:$0xff] }
  0xb3   : > { %v814_v57 = vmul.bf16 %v4275_v45, %v453_v18  ;;  %v815_v6 = vmul.bf16 %v4277_v46, %v453_v18  ;;  %v816_v25 = vmul.bf16 %v4120_v35, %v453_v18  ;;  %v1029_v27 = vpop.permute.xlu1 %1028  ;;  %v1017_v21 = vpop.permute.xlu0 %1016  ;;  %2459 = vmatpush1.bf16.msra.mxu0 %v3821_v24  ;;  %2652 = vmatpush1.bf16.msra.mxu1 %v3823_v26 }
  0xb4   : > { %v1037_v30 = vrot.slane %v1029_v27, %v4267_v42  ;;  %v1025_v31 = vrot.slane %v1017_v21, %v4267_v42  ;;  %1751 = vperm.xlu1 %3921, %v1641_v9   ;;  %v1515_v33 = vmax.bf16 %v1419_v7, %v1323_v59  ;;  %v1513_v34 = vmax.bf16 %v1417_v17, %v1321_v63 }
  0xb5   : > { %v1516_v36 = vmax.bf16 %v1420_v13, %v1324_v60 }
  0xb6   : > { %v1329_v40 = vadd.bf16 %v1037_v30, %v817_v20  ;;  %v1330_v41 = vadd.bf16 %v1037_v30, %v818_v22  ;;  %v4415_v44 = vadd.bf16 %v1037_v30, %v819_v23  ;;  %v1326_v47 = vadd.bf16 %v1025_v31, %v814_v57  ;;  %1746 = vperm.xlu0 %3920, %v1640_v29   ;;  %v1647_v57 = vld [vmem:[%s5554_s4 + $0xc8] sm:$0xff] }
  0xb7   : > { %v1327_v48 = vadd.bf16 %v1025_v31, %v815_v6  ;;  %v4417_v28 = vadd.bf16 %v1025_v31, %v816_v25  ;;  %v3828_v49 = vcombine.high %v1512_v32, %v1515_v33  ;;  %v3830_v50 = vcombine.high %v1513_v34, %v1516_v36  ;;  %v481_v51 = vpop.permute.xlu1 %480  ;;  %v469_v52 = vpop.permute.xlu0 %468 }
  0xb8   : > { %v1425_v54 = vmul.bf16 1009007652, %v1329_v40  ;;  %v489_v55 = vrot.slane %v481_v51, %v4267_v42  ;;  %1761 = vperm.xlu1 %3921, %v1643_v37   ;;  %v1426_v58 = vmul.bf16 1009007652, %v1330_v41  ;;  %v1422_v59 = vmul.bf16 1009007652, %v1326_v47 }
  0xb9   : > { %v1423_v60 = vmul.bf16 1009007652, %v1327_v48  ;;  %2460 = vmatprep.subr.bf16.mxu0 %v3828_v49  ;;  %2653 = vmatprep.subr.bf16.mxu1 %v3830_v50  ;;  %v477_v62 = vrot.slane %v469_v52, %v4267_v42  ;;  %v3827_v3 = vcombine.low %v1512_v32, %v1515_v33  ;;  %v3829_v8 = vcombine.low %v1513_v34, %v1516_v36  ;;  %v1646_v36 = vld [vmem:[%s5554_s4 + $0xc0] sm:$0xff] }
  0xba   : > { %v823_v63 = vmul.bf16 %v4275_v45, %v489_v55  ;;  %v824_v1 = vmul.bf16 %v4277_v46, %v489_v55  ;;  %v825_v2 = vmul.bf16 %v4120_v35, %v489_v55  ;;  %1756 = vperm.xlu0 %3920, %v1642_v53   ;;  %v1518_v20 = vmax.bf16 %v1422_v59, %v1326_v47 }
  0xbb   : > { %v820_v4 = vmul.bf16 %v4275_v45, %v477_v62  ;;  %v821_v5 = vmul.bf16 %v4277_v46, %v477_v62  ;;  %v822_v7 = vmul.bf16 %v4120_v35, %v477_v62  ;;  %v1053_v9 = vpop.permute.xlu1 %1052  ;;  %v1041_v13 = vpop.permute.xlu0 %1040  ;;  %2461 = vmatpush1.bf16.msra.mxu0 %v3827_v3  ;;  %2654 = vmatpush1.bf16.msra.mxu1 %v3829_v8  ;;  %v1409_v51 = vmul.bf16 1009007652, %v4330_v39 }
  0xbc   : > { %v1061_v17 = vrot.slane %v1053_v9, %v4267_v42  ;;  %v1049_v18 = vrot.slane %v1041_v13, %v4267_v42  ;;  %1771 = vperm.xlu1 %3921, %v1645_v56   ;;  %v1521_v22 = vmax.bf16 %v1425_v54, %v1329_v40  ;;  %v1519_v23 = vmax.bf16 %v1423_v60, %v1327_v48  ;;  %v1651_v13 = vld [vmem:[%s5554_s4 + $0xe8] sm:$0xff] }
  0xbd   : > { %v1522_v24 = vmax.bf16 %v1426_v58, %v1330_v41  ;;  %v1649_v41 = vld [vmem:[%s5554_s4 + $0xd8] sm:$0xff] }
  0xbe   : > { %v1335_v25 = vadd.bf16 %v1061_v17, %v823_v63  ;;  %v1336_v26 = vadd.bf16 %v1061_v17, %v824_v1  ;;  %v4443_v27 = vadd.bf16 %v1061_v17, %v825_v2  ;;  %v1332_v21 = vadd.bf16 %v1049_v18, %v820_v4  ;;  %1766 = vperm.xlu0 %3920, %v1644_v15   ;;  %v1648_v63 = vld [vmem:[%s5554_s4 + $0xd0] sm:$0xff] }
  0xbf   : > { %v1333_v29 = vadd.bf16 %v1049_v18, %v821_v5  ;;  %v4445_v30 = vadd.bf16 %v1049_v18, %v822_v7  ;;  %v3834_v31 = vcombine.high %v1518_v20, %v1521_v22  ;;  %v3836_v32 = vcombine.high %v1519_v23, %v1522_v24  ;;  %v505_v33 = vpop.permute.xlu1 %504  ;;  %v493_v34 = vpop.permute.xlu0 %492 }
  0xc0   : > { %v1431_v37 = vmul.bf16 1009007652, %v1335_v25  ;;  %v513_v40 = vrot.slane %v505_v33, %v4267_v42  ;;  %1781 = vperm.xlu1 %3921, %v1647_v57   ;;  %v1432_v47 = vmul.bf16 1009007652, %v1336_v26  ;;  %v1428_v48 = vmul.bf16 1009007652, %v1332_v21 }
  0xc1   : > { %v1429_v49 = vmul.bf16 1009007652, %v1333_v29  ;;  %2462 = vmatprep.subr.bf16.mxu0 %v3834_v31  ;;  %2655 = vmatprep.subr.bf16.mxu1 %v3836_v32  ;;  %v501_v50 = vrot.slane %v493_v34, %v4267_v42  ;;  %v3833_v54 = vcombine.low %v1518_v20, %v1521_v22  ;;  %v3835_v59 = vcombine.low %v1519_v23, %v1522_v24 }
  0xc2   : > { %v829_v52 = vmul.bf16 %v4275_v45, %v513_v40  ;;  %v831_v53 = vmul.bf16 %v4120_v35, %v513_v40  ;;  %1776 = vperm.xlu0 %3920, %v1646_v36   ;;  %v830_v55 = vmul.bf16 %v4277_v46, %v513_v40  ;;  %v1406_v1 = vmul.bf16 1009007652, %v4332_v43 }
  0xc3   : > { %v826_v56 = vmul.bf16 %v4275_v45, %v501_v50  ;;  %v828_v58 = vmul.bf16 %v4120_v35, %v501_v50  ;;  %v1077_v60 = vpop.permute.xlu1 %1076  ;;  %v1065_v62 = vpop.permute.xlu0 %1064  ;;  %2463 = vmatpush1.bf16.msra.mxu0 %v3833_v54  ;;  %v1524_v4 = vmax.bf16 %v1428_v48, %v1332_v21  ;;  %v827_v5 = vmul.bf16 %v4277_v46, %v501_v50 }
  0xc4   : > { %v1085_v2 = vrot.slane %v1077_v60, %v4267_v42  ;;  %v1073_v3 = vrot.slane %v1065_v62, %v4267_v42  ;;  %1791 = vperm.xlu1 %3921, %v1649_v41   ;;  %2656 = vmatpush1.bf16.msra.mxu1 %v3835_v59  ;;  %v1527_v7 = vmax.bf16 %v1431_v37, %v1335_v25  ;;  %v1650_v25 = vld [vmem:[%s5554_s4 + $0xe0] sm:$0xff]  ;;  %v1412_v32 = vmul.bf16 1009007652, %v4355_v19  ;;  %v1652_v59 = vld [vmem:[%s5554_s4 + $0xf0] sm:$0xff] }
  0xc5   : > { %v1525_v8 = vmax.bf16 %v1429_v49, %v1333_v29  ;;  %v1528_v9 = vmax.bf16 %v1432_v47, %v1336_v26  ;;  %v1653_v26 = vld [vmem:[%s5554_s4 + $0xf8] sm:$0xff]  ;;  %v1415_v29 = vmul.bf16 1009007652, %v4353_v16  ;;  %v1421_v47 = vmul.bf16 1009007652, %v4381_v61 }
  0xc6   : > { %v1341_v15 = vadd.bf16 %v1085_v2, %v829_v52  ;;  %v1342_v17 = vadd.bf16 %v1085_v2, %v830_v55  ;;  %v4471_v18 = vadd.bf16 %v1085_v2, %v831_v53  ;;  %v1338_v20 = vadd.bf16 %v1073_v3, %v826_v56  ;;  %1786 = vperm.xlu0 %3920, %v1648_v63  }
  0xc7   : > { %v1339_v22 = vadd.bf16 %v1073_v3, %v827_v5  ;;  %v4473_v23 = vadd.bf16 %v1073_v3, %v828_v58  ;;  %v3840_v24 = vcombine.high %v1524_v4, %v1527_v7  ;;  %v3842_v57 = vcombine.high %v1525_v8, %v1528_v9  ;;  %v529_v21 = vpop.permute.xlu1 %528  ;;  %v517_v31 = vpop.permute.xlu0 %516 }
  0xc8   : > { %v1437_v33 = vmul.bf16 1009007652, %v1341_v15  ;;  %v537_v34 = vrot.slane %v529_v21, %v4267_v42  ;;  %1801 = vperm.xlu1 %3921, %v1651_v13   ;;  %v1438_v36 = vmul.bf16 1009007652, %v1342_v17  ;;  %v1434_v37 = vmul.bf16 1009007652, %v1338_v20 }
  0xc9   : > { %v1435_v40 = vmul.bf16 1009007652, %v1339_v22  ;;  %2464 = vmatprep.subr.bf16.mxu0 %v3840_v24  ;;  %2657 = vmatprep.subr.bf16.mxu1 %v3842_v57  ;;  %v525_v41 = vrot.slane %v517_v31, %v4267_v42  ;;  %v3839_v50 = vcombine.low %v1524_v4, %v1527_v7  ;;  %v3841_v55 = vcombine.low %v1525_v8, %v1528_v9 }
  0xca   : > { %v835_v48 = vmul.bf16 %v4275_v45, %v537_v34  ;;  %v837_v49 = vmul.bf16 %v4120_v35, %v537_v34  ;;  %1796 = vperm.xlu0 %3920, %v1650_v25   ;;  %v836_v52 = vmul.bf16 %v4277_v46, %v537_v34  ;;  %v1418_v60 = vmul.bf16 1009007652, %v4383_v0 }
  0xcb   : > { %v832_v53 = vmul.bf16 %v4275_v45, %v525_v41  ;;  %v834_v54 = vmul.bf16 %v4120_v35, %v525_v41  ;;  %v1101_v56 = vpop.permute.xlu1 %1100  ;;  %v1089_v58 = vpop.permute.xlu0 %1088  ;;  %2465 = vmatpush1.bf16.msra.mxu0 %v3839_v50  ;;  %v1530_v2 = vmax.bf16 %v1434_v37, %v1338_v20  ;;  %v833_v3 = vmul.bf16 %v4277_v46, %v525_v41 }
  0xcc   : > { %v1109_v62 = vrot.slane %v1101_v56, %v4267_v42  ;;  %v1097_v63 = vrot.slane %v1089_v58, %v4267_v42  ;;  %1811 = vperm.xlu1 %3921, %v1653_v26   ;;  %2658 = vmatpush1.bf16.msra.mxu1 %v3841_v55  ;;  %v1533_v4 = vmax.bf16 %v1437_v33, %v1341_v15 }
  0xcd   : > { %v1531_v5 = vmax.bf16 %v1435_v40, %v1339_v22  ;;  %v1534_v7 = vmax.bf16 %v1438_v36, %v1342_v17  ;;  %v4506_v15 = vmax.bf16 %v1406_v1, %v4332_v43  ;;  %v4511_v17 = vmax.bf16 %v1409_v51, %v4330_v39 }
  0xce   : > { %v1347_v8 = vadd.bf16 %v1109_v62, %v835_v48  ;;  %v1348_v9 = vadd.bf16 %v1109_v62, %v836_v52  ;;  %v4498_v13 = vadd.bf16 %v1109_v62, %v837_v49  ;;  %v1344_v24 = vadd.bf16 %v1097_v63, %v832_v53  ;;  %1806 = vperm.xlu0 %3920, %v1652_v59  }
  0xcf   : > { %v1345_v57 = vadd.bf16 %v1097_v63, %v833_v3  ;;  %v4500_v21 = vadd.bf16 %v1097_v63, %v834_v54  ;;  %v3846_v31 = vcombine.high %v1530_v2, %v1533_v4  ;;  %v3848_v25 = vcombine.high %v1531_v5, %v1534_v7  ;;  %v553_v34 = vpop.permute.xlu1 %552  ;;  %v541_v26 = vpop.permute.xlu0 %540 }
  0xd0   : > { %v1443_v20 = vmul.bf16 1009007652, %v1347_v8  ;;  %v561_v37 = vrot.slane %v553_v34, %v4267_v42  ;;  %v1444_v22 = vmul.bf16 1009007652, %v1348_v9  ;;  %v1440_v33 = vmul.bf16 1009007652, %v1344_v24 }
  0xd1   : > { %v1441_v36 = vmul.bf16 1009007652, %v1345_v57  ;;  %2466 = vmatprep.subr.bf16.mxu0 %v3846_v31  ;;  %2659 = vmatprep.subr.bf16.mxu1 %v3848_v25  ;;  %v549_v40 = vrot.slane %v541_v26, %v4267_v42  ;;  %v3845_v43 = vcombine.low %v1530_v2, %v1533_v4  ;;  %v3847_v51 = vcombine.low %v1531_v5, %v1534_v7 }
  0xd2   : > { %v841_v41 = vmul.bf16 %v4275_v45, %v561_v37  ;;  %v842_v48 = vmul.bf16 %v4277_v46, %v561_v37  ;;  %v843_v49 = vmul.bf16 %v4120_v35, %v561_v37  ;;  %v1536_v56 = vmax.bf16 %v1440_v33, %v1344_v24 }
  0xd3   : > { %v838_v1 = vmul.bf16 %v4275_v45, %v549_v40  ;;  %v839_v50 = vmul.bf16 %v4277_v46, %v549_v40  ;;  %v840_v39 = vmul.bf16 %v4120_v35, %v549_v40  ;;  %v1125_v52 = vpop.permute.xlu1 %1124  ;;  %v1113_v53 = vpop.permute.xlu0 %1112  ;;  %2467 = vmatpush1.bf16.msra.mxu0 %v3845_v43  ;;  %v1539_v58 = vmax.bf16 %v1443_v20, %v1347_v8 }
  0xd4   : > { %v1133_v54 = vrot.slane %v1125_v52, %v4267_v42  ;;  %v1121_v55 = vrot.slane %v1113_v53, %v4267_v42  ;;  %2660 = vmatpush1.bf16.msra.mxu1 %v3847_v51  ;;  %v1537_v59 = vmax.bf16 %v1441_v36, %v1345_v57  ;;  %v1540_v62 = vmax.bf16 %v1444_v22, %v1348_v9 }
  0xd5   : > { %v3852_v34 = vcombine.high %v1536_v56, %v1539_v58  ;;  %v1424_v57 = vmul.bf16 1009007652, %v4417_v28  ;;  %v3851_v43 = vcombine.low %v1536_v56, %v1539_v58 }
  0xd6   : > { %v1353_v3 = vadd.bf16 %v1133_v54, %v841_v41  ;;  %v1354_v4 = vadd.bf16 %v1133_v54, %v842_v48  ;;  %v4526_v5 = vadd.bf16 %v1133_v54, %v843_v49  ;;  %v1350_v7 = vadd.bf16 %v1121_v55, %v838_v1 }
  0xd7   : > { %v1351_v31 = vadd.bf16 %v1121_v55, %v839_v50  ;;  %v4528_v25 = vadd.bf16 %v1121_v55, %v840_v39  ;;  %v3854_v24 = vcombine.high %v1537_v59, %v1540_v62  ;;  %v577_v8 = vpop.permute.xlu1 %576  ;;  %v565_v26 = vpop.permute.xlu0 %564  ;;  %2468 = vmatprep.subr.bf16.mxu0 %v3852_v34  ;;  %v3853_v51 = vcombine.low %v1537_v59, %v1540_v62 }
  0xd8   : > { %v1449_v20 = vmul.bf16 1009007652, %v1353_v3  ;;  %v585_v37 = vrot.slane %v577_v8, %v4267_v42  ;;  %v1450_v22 = vmul.bf16 1009007652, %v1354_v4  ;;  %v1446_v33 = vmul.bf16 1009007652, %v1350_v7  ;;  %2469 = vmatpush1.bf16.msra.mxu0 %v3851_v43 }
  0xd9   : > { %v1447_v36 = vmul.bf16 1009007652, %v1351_v31  ;;  %2661 = vmatprep.subr.bf16.mxu1 %v3854_v24  ;;  %v573_v40 = vrot.slane %v565_v26, %v4267_v42 }
  0xda   : > { %v847_v48 = vmul.bf16 %v4275_v45, %v585_v37  ;;  %v849_v49 = vmul.bf16 %v4120_v35, %v585_v37  ;;  %v848_v1 = vmul.bf16 %v4277_v46, %v585_v37  ;;  %v1542_v34 = vmax.bf16 %v1446_v33, %v1350_v7  ;;  %2662 = vmatpush1.bf16.msra.mxu1 %v3853_v51 }
  0xdb   : > { %v844_v50 = vmul.bf16 %v4275_v45, %v573_v40  ;;  %v846_v39 = vmul.bf16 %v4120_v35, %v573_v40  ;;  %v1149_v52 = vpop.permute.xlu1 %1148  ;;  %v1137_v53 = vpop.permute.xlu0 %1136  ;;  %v1545_v24 = vmax.bf16 %v1449_v20, %v1353_v3  ;;  %v845_v56 = vmul.bf16 %v4277_v46, %v573_v40 }
  0xdc   : > { %v1157_v54 = vrot.slane %v1149_v52, %v4267_v42  ;;  %v1145_v55 = vrot.slane %v1137_v53, %v4267_v42  ;;  %v1543_v58 = vmax.bf16 %v1447_v36, %v1351_v31  ;;  %v1546_v26 = vmax.bf16 %v1450_v22, %v1354_v4 }
  0xdd   : > { %v3858_v52 = vcombine.high %v1542_v34, %v1545_v24  ;;  %v4552_v31 = vmax.bf16 %v1412_v32, %v4355_v19  ;;  %v4557_v4 = vmax.bf16 %v1415_v29, %v4353_v16  ;;  %v3857_v19 = vcombine.low %v1542_v34, %v1545_v24 }
  0xde   : > { %v1359_v37 = vadd.bf16 %v1157_v54, %v847_v48  ;;  %v1360_v11 = vadd.bf16 %v1157_v54, %v848_v1  ;;  %v4544_v2 = vadd.bf16 %v1157_v54, %v849_v49  ;;  %v1356_v59 = vadd.bf16 %v1145_v55, %v844_v50 }
  0xdf   : > { %v1357_v62 = vadd.bf16 %v1145_v55, %v845_v56  ;;  %v4546_v43 = vadd.bf16 %v1145_v55, %v846_v39  ;;  %v3860_v63 = vcombine.high %v1543_v58, %v1546_v26  ;;  %v601_v53 = vpop.permute.xlu1 %600  ;;  %v589_v7 = vpop.permute.xlu0 %588  ;;  %2470 = vmatprep.subr.bf16.mxu0 %v3858_v52  ;;  %v3859_v29 = vcombine.low %v1543_v58, %v1546_v26 }
  0xe0   : > { %v1455_v3 = vmul.bf16 1009007652, %v1359_v37  ;;  %v609_v20 = vrot.slane %v601_v53, %v4267_v42  ;;  %v1456_v22 = vmul.bf16 1009007652, %v1360_v11  ;;  %v1452_v33 = vmul.bf16 1009007652, %v1356_v59  ;;  %2471 = vmatpush1.bf16.msra.mxu0 %v3857_v19 }
  0xe1   : > { %v1453_v36 = vmul.bf16 1009007652, %v1357_v62  ;;  %2663 = vmatprep.subr.bf16.mxu1 %v3860_v63  ;;  %v597_v40 = vrot.slane %v589_v7, %v4267_v42 }
  0xe2   : > { %v853_v48 = vmul.bf16 %v4275_v45, %v609_v20  ;;  %v854_v49 = vmul.bf16 %v4277_v46, %v609_v20  ;;  %v855_v1 = vmul.bf16 %v4120_v35, %v609_v20  ;;  %v1548_v55 = vmax.bf16 %v1452_v33, %v1356_v59  ;;  %2664 = vmatpush1.bf16.msra.mxu1 %v3859_v29 }
  0xe3   : > { %v850_v32 = vmul.bf16 %v4275_v45, %v597_v40  ;;  %v851_v50 = vmul.bf16 %v4277_v46, %v597_v40  ;;  %v852_v16 = vmul.bf16 %v4120_v35, %v597_v40  ;;  %v1173_v39 = vpop.permute.xlu1 %1172  ;;  %v1161_v51 = vpop.permute.xlu0 %1160  ;;  %v1551_v56 = vmax.bf16 %v1455_v3, %v1359_v37 }
  0xe4   : > { %v1181_v63 = vrot.slane %v1173_v39, %v4267_v42  ;;  %v1169_v54 = vrot.slane %v1161_v51, %v4267_v42  ;;  %v1549_v52 = vmax.bf16 %v1453_v36, %v1357_v62  ;;  %v1552_v53 = vmax.bf16 %v1456_v22, %v1360_v11 }
  0xe5   : > { %v3864_v39 = vcombine.high %v1548_v55, %v1551_v56  ;;  %v3863_v29 = vcombine.low %v1548_v55, %v1551_v56 }
  0xe6   : > { %v1365_v7 = vadd.bf16 %v1181_v63, %v853_v48  ;;  %v1366_v58 = vadd.bf16 %v1181_v63, %v854_v49  ;;  %v4572_v26 = vadd.bf16 %v1181_v63, %v855_v1  ;;  %v1362_v20 = vadd.bf16 %v1169_v54, %v850_v32 }
  0xe7   : > { %v1363_v40 = vadd.bf16 %v1169_v54, %v851_v50  ;;  %v4574_v19 = vadd.bf16 %v1169_v54, %v852_v16  ;;  %v3866_v59 = vcombine.high %v1549_v52, %v1552_v53  ;;  %v625_v37 = vpop.permute.xlu1 %624  ;;  %v613_v3 = vpop.permute.xlu0 %612  ;;  %2472 = vmatprep.subr.bf16.mxu0 %v3864_v39 }
  0xe8   : > { %v1461_v22 = vmul.bf16 1009007652, %v1365_v7  ;;  %v633_v33 = vrot.slane %v625_v37, %v4267_v42  ;;  %v1462_v36 = vmul.bf16 1009007652, %v1366_v58  ;;  %v1458_v48 = vmul.bf16 1009007652, %v1362_v20  ;;  %2473 = vmatpush1.bf16.msra.mxu0 %v3863_v29 }
  0xe9   : > { %v1459_v49 = vmul.bf16 1009007652, %v1363_v40  ;;  %2665 = vmatprep.subr.bf16.mxu1 %v3866_v59  ;;  %v621_v1 = vrot.slane %v613_v3, %v4267_v42  ;;  %v3865_v37 = vcombine.low %v1549_v52, %v1552_v53 }
  0xea   : > { %v859_v50 = vmul.bf16 %v4275_v45, %v633_v33  ;;  %v861_v16 = vmul.bf16 %v4120_v35, %v633_v33  ;;  %v860_v51 = vmul.bf16 %v4277_v46, %v633_v33  ;;  %v1554_v3 = vmax.bf16 %v1458_v48, %v1362_v20 }
  0xeb   : > { %v856_v63 = vmul.bf16 %v4275_v45, %v621_v1  ;;  %v858_v54 = vmul.bf16 %v4120_v35, %v621_v1  ;;  %v1197_v24 = vpop.permute.xlu1 %1196  ;;  %v1185_v34 = vpop.permute.xlu0 %1184  ;;  %v1557_v6 = vmax.bf16 %v1461_v22, %v1365_v7  ;;  %v857_v55 = vmul.bf16 %v4277_v46, %v621_v1  ;;  %2666 = vmatpush1.bf16.msra.mxu1 %v3865_v37 }
  0xec   : > { %v1205_v39 = vrot.slane %v1197_v24, %v4267_v42  ;;  %v1193_v59 = vrot.slane %v1185_v34, %v4267_v42  ;;  %v1555_v56 = vmax.bf16 %v1459_v49, %v1363_v40  ;;  %v1558_v33 = vmax.bf16 %v1462_v36, %v1366_v58 }
  0xed   : > { %v3870_v24 = vcombine.high %v1554_v3, %v1557_v6  ;;  %v4598_v40 = vmax.bf16 %v1418_v60, %v4383_v0  ;;  %v4603_v58 = vmax.bf16 %v1421_v47, %v4381_v61  ;;  %v3869_v0 = vcombine.low %v1554_v3, %v1557_v6 }
  0xee   : > { %v1371_v32 = vadd.bf16 %v1205_v39, %v859_v50  ;;  %v1372_v11 = vadd.bf16 %v1205_v39, %v860_v51  ;;  %v4590_v62 = vadd.bf16 %v1205_v39, %v861_v16  ;;  %v1368_v52 = vadd.bf16 %v1193_v59, %v856_v63 }
  0xef   : > { %v1369_v53 = vadd.bf16 %v1193_v59, %v857_v55  ;;  %v4592_v29 = vadd.bf16 %v1193_v59, %v858_v54  ;;  %v3872_v41 = vcombine.high %v1555_v56, %v1558_v33  ;;  %v649_v34 = vpop.permute.xlu1 %648  ;;  %v637_v20 = vpop.permute.xlu0 %636  ;;  %2474 = vmatprep.subr.bf16.mxu0 %v3870_v24  ;;  %v3871_v47 = vcombine.low %v1555_v56, %v1558_v33 }
  0xf0   : > { %v1467_v7 = vmul.bf16 1009007652, %v1371_v32  ;;  %v657_v22 = vrot.slane %v649_v34, %v4267_v42  ;;  %v1468_v36 = vmul.bf16 1009007652, %v1372_v11  ;;  %v1464_v48 = vmul.bf16 1009007652, %v1368_v52  ;;  %2475 = vmatpush1.bf16.msra.mxu0 %v3869_v0 }
  0xf1   : > { %v1465_v49 = vmul.bf16 1009007652, %v1369_v53  ;;  %2667 = vmatprep.subr.bf16.mxu1 %v3872_v41  ;;  %v645_v1 = vrot.slane %v637_v20, %v4267_v42 }
  0xf2   : > { %v865_v50 = vmul.bf16 %v4275_v45, %v657_v22  ;;  %v866_v16 = vmul.bf16 %v4277_v46, %v657_v22  ;;  %v867_v51 = vmul.bf16 %v4120_v35, %v657_v22  ;;  %v1560_v59 = vmax.bf16 %v1464_v48, %v1368_v52  ;;  %2668 = vmatpush1.bf16.msra.mxu1 %v3871_v47 }
  0xf3   : > { %v862_v60 = vmul.bf16 %v4275_v45, %v645_v1  ;;  %v863_v63 = vmul.bf16 %v4277_v46, %v645_v1  ;;  %v864_v61 = vmul.bf16 %v4120_v35, %v645_v1  ;;  %v1221_v54 = vpop.permute.xlu1 %1220  ;;  %v1209_v37 = vpop.permute.xlu0 %1208  ;;  %v1563_v55 = vmax.bf16 %v1467_v7, %v1371_v32 }
  0xf4   : > { %v1229_v41 = vrot.slane %v1221_v54, %v4267_v42  ;;  %v1217_v39 = vrot.slane %v1209_v37, %v4267_v42  ;;  %v1561_v24 = vmax.bf16 %v1465_v49, %v1369_v53  ;;  %v1564_v34 = vmax.bf16 %v1468_v36, %v1372_v11 }
  0xf5   : > { %v3876_v54 = vcombine.high %v1560_v59, %v1563_v55  ;;  %v3875_v47 = vcombine.low %v1560_v59, %v1563_v55  ;;  %v1454_v11 = vmul.bf16 1009007652, %v4546_v43 }
  0xf6   : > { %v1377_v20 = vadd.bf16 %v1229_v41, %v865_v50  ;;  %v1378_v56 = vadd.bf16 %v1229_v41, %v866_v16  ;;  %v4618_v33 = vadd.bf16 %v1229_v41, %v867_v51  ;;  %v1374_v22 = vadd.bf16 %v1217_v39, %v862_v60 }
  0xf7   : > { %v1375_v1 = vadd.bf16 %v1217_v39, %v863_v63  ;;  %v4620_v0 = vadd.bf16 %v1217_v39, %v864_v61  ;;  %v3878_v52 = vcombine.high %v1561_v24, %v1564_v34  ;;  %v673_v32 = vpop.permute.xlu1 %672  ;;  %v661_v7 = vpop.permute.xlu0 %660  ;;  %2476 = vmatprep.subr.bf16.mxu0 %v3876_v54 }
  0xf8   : > { %v1473_v36 = vmul.bf16 1009007652, %v1377_v20  ;;  %v681_v48 = vrot.slane %v673_v32, %v4267_v42  ;;  %v1474_v49 = vmul.bf16 1009007652, %v1378_v56  ;;  %v1470_v50 = vmul.bf16 1009007652, %v1374_v22  ;;  %2477 = vmatpush1.bf16.msra.mxu0 %v3875_v47 }
  0xf9   : > { %v1471_v16 = vmul.bf16 1009007652, %v1375_v1  ;;  %2669 = vmatprep.subr.bf16.mxu1 %v3878_v52  ;;  %v669_v51 = vrot.slane %v661_v7, %v4267_v42  ;;  %v3877_v32 = vcombine.low %v1561_v24, %v1564_v34 }
  0xfa   : > { %v871_v63 = vmul.bf16 %v4275_v45, %v681_v48  ;;  %v873_v61 = vmul.bf16 %v4120_v35, %v681_v48  ;;  %v872_v37 = vmul.bf16 %v4277_v46, %v681_v48  ;;  %v1566_v7 = vmax.bf16 %v1470_v50, %v1374_v22 }
  0xfb   : > { %v868_v41 = vmul.bf16 %v4275_v45, %v669_v51  ;;  %v870_v39 = vmul.bf16 %v4120_v35, %v669_v51  ;;  %v1245_v3 = vpop.permute.xlu1 %1244  ;;  %v1233_v6 = vpop.permute.xlu0 %1232  ;;  %v1569_v60 = vmax.bf16 %v1473_v36, %v1377_v20  ;;  %v869_v59 = vmul.bf16 %v4277_v46, %v669_v51  ;;  %2670 = vmatpush1.bf16.msra.mxu1 %v3877_v32 }
  0xfc   : > { %v1253_v54 = vrot.slane %v1245_v3, %v4267_v42  ;;  %v1241_v52 = vrot.slane %v1233_v6, %v4267_v42  ;;  %v1567_v55 = vmax.bf16 %v1471_v16, %v1375_v1  ;;  %v1570_v48 = vmax.bf16 %v1474_v49, %v1378_v56 }
  0xfd   : > { %v3882_v3 = vcombine.high %v1566_v7, %v1569_v60  ;;  %v4644_v1 = vmax.bf16 %v1424_v57, %v4417_v28  ;;  %v5601_v56 = vmul.bf16 1009007652, %v4415_v44  ;;  %v3881_v28 = vcombine.low %v1566_v7, %v1569_v60 }
  0xfe   : > { %v1383_v53 = vadd.bf16 %v1253_v54, %v871_v63  ;;  %v1384_v38 = vadd.bf16 %v1253_v54, %v872_v37  ;;  %v4636_v8 = vadd.bf16 %v1253_v54, %v873_v61  ;;  %v1380_v24 = vadd.bf16 %v1241_v52, %v868_v41 }
  0xff   : > { %v1381_v34 = vadd.bf16 %v1241_v52, %v869_v59  ;;  %v4638_v47 = vadd.bf16 %v1241_v52, %v870_v39  ;;  %v3884_v9 = vcombine.high %v1567_v55, %v1570_v48  ;;  %v697_v6 = vpop.permute.xlu1 %696  ;;  %v685_v22 = vpop.permute.xlu0 %684  ;;  %v4649_v49 = vmax.bf16 %v5601_v56, %v4415_v44  ;;  %2478 = vmatprep.subr.bf16.mxu0 %v3882_v3 }
 0x100   : > { %v1479_v20 = vmul.bf16 1009007652, %v1383_v53  ;;  %v705_v36 = vrot.slane %v697_v6, %v4267_v42  ;;  %v1480_v50 = vmul.bf16 1009007652, %v1384_v38  ;;  %v1476_v16 = vmul.bf16 1009007652, %v1380_v24  ;;  %2479 = vmatpush1.bf16.msra.mxu0 %v3881_v28 }
 0x101   : > { %v1477_v51 = vmul.bf16 1009007652, %v1381_v34  ;;  %2671 = vmatprep.subr.bf16.mxu1 %v3884_v9  ;;  %v693_v63 = vrot.slane %v685_v22, %v4267_v42  ;;  %v3883_v32 = vcombine.low %v1567_v55, %v1570_v48 }
 0x102   : > { %v877_v61 = vmul.bf16 %v4275_v45, %v705_v36  ;;  %v878_v37 = vmul.bf16 %v4277_v46, %v705_v36  ;;  %v879_v41 = vmul.bf16 %v4120_v35, %v705_v36  ;;  %v1572_v3 = vmax.bf16 %v1476_v16, %v1380_v24 }
 0x103   : > { %v874_v57 = vmul.bf16 %v4275_v45, %v693_v63  ;;  %v875_v39 = vmul.bf16 %v4277_v46, %v693_v63  ;;  %v876_v44 = vmul.bf16 %v4120_v35, %v693_v63  ;;  %v1269_v54 = vpop.permute.xlu1 %1268  ;;  %v1257_v52 = vpop.permute.xlu0 %1256  ;;  %v1575_v6 = vmax.bf16 %v1479_v20, %v1383_v53  ;;  %2672 = vmatpush1.bf16.msra.mxu1 %v3883_v32 }
 0x104   : > { %v1277_v9 = vrot.slane %v1269_v54, %v4267_v42  ;;  %v1265_v59 = vrot.slane %v1257_v52, %v4267_v42  ;;  %v1573_v22 = vmax.bf16 %v1477_v51, %v1381_v34  ;;  %v1576_v36 = vmax.bf16 %v1480_v50, %v1384_v38 }
 0x105   : > { %v3888_v52 = vcombine.high %v1572_v3, %v1575_v6  ;;  %v1463_v38 = vmul.bf16 1009007652, %v4572_v26  ;;  %v1460_v34 = vmul.bf16 1009007652, %v4574_v19  ;;  %v3887_v32 = vcombine.low %v1572_v3, %v1575_v6 }
 0x106   : > { %v1389_v56 = vadd.bf16 %v1277_v9, %v877_v61  ;;  %v1390_v55 = vadd.bf16 %v1277_v9, %v878_v37  ;;  %v4664_v48 = vadd.bf16 %v1277_v9, %v879_v41  ;;  %v1386_v63 = vadd.bf16 %v1265_v59, %v874_v57 }
 0x107   : > { %v1387_v28 = vadd.bf16 %v1265_v59, %v875_v39  ;;  %v4666_v54 = vadd.bf16 %v1265_v59, %v876_v44  ;;  %v3890_v24 = vcombine.high %v1573_v22, %v1576_v36  ;;  %v721_v53 = vpop.permute.xlu1 %720  ;;  %v709_v20 = vpop.permute.xlu0 %708  ;;  %2480 = vmatprep.subr.bf16.mxu0 %v3888_v52 }
 0x108   : > { %v1485_v50 = vmul.bf16 1009007652, %v1389_v56  ;;  %v4671_v16 = vrot.slane %v721_v53, %v4267_v42  ;;  %v1486_v51 = vmul.bf16 1009007652, %v1390_v55  ;;  %v1482_v61 = vmul.bf16 1009007652, %v1386_v63  ;;  %2481 = vmatpush1.bf16.msra.mxu0 %v3887_v32 }
 0x109   : > { %v1483_v37 = vmul.bf16 1009007652, %v1387_v28  ;;  %2673 = vmatprep.subr.bf16.mxu1 %v3890_v24  ;;  %v4674_v41 = vrot.slane %v709_v20, %v4267_v42  ;;  %v3889_v24 = vcombine.low %v1573_v22, %v1576_v36 }
 0x10a   : > { %v883_v9 = vmul.bf16 %v4275_v45, %v4671_v16  ;;  %v884_v59 = vmul.bf16 %v4277_v46, %v4671_v16  ;;  %v1578_v3 = vmax.bf16 %v1482_v61, %v1386_v63  ;;  %v1581_v6 = vmax.bf16 %v1485_v50, %v1389_v56 }
 0x10b   : > { %v880_v52 = vmul.bf16 %v4275_v45, %v4674_v41  ;;  %v1293_v53 = vpop.permute.xlu1 %1292  ;;  %v1281_v20 = vpop.permute.xlu0 %1280  ;;  %v881_v44 = vmul.bf16 %v4277_v46, %v4674_v41  ;;  %2674 = vmatpush1.bf16.msra.mxu1 %v3889_v24  ;;  %v1579_v57 = vmax.bf16 %v1483_v37, %v1387_v28  ;;  %v1582_v39 = vmax.bf16 %v1486_v51, %v1390_v55 }
 0x10c   : > { %v4686_v7 = vrot.slane %v1293_v53, %v4267_v42  ;;  %v4689_v60 = vrot.slane %v1281_v20, %v4267_v42  ;;  %v5602_v45 = vmul.bf16 1009007652, %v4445_v30  ;;  %v5603_v56 = vmul.bf16 1009007652, %v4443_v27 }
 0x10d   : > { %v1472_v46 = vmul.bf16 1009007652, %v4620_v0  ;;  %v3894_v28 = vcombine.high %v1578_v3, %v1581_v6  ;;  %v3896_v50 = vcombine.high %v1579_v57, %v1582_v39  ;;  %v3893_v37 = vcombine.low %v1578_v3, %v1581_v6 }
 0x10e   : > { %v4696_v22 = vmax.bf16 %v5602_v45, %v4445_v30  ;;  %v1395_v36 = vadd.bf16 %v4686_v7, %v883_v9  ;;  %v1396_v32 = vadd.bf16 %v4686_v7, %v884_v59  ;;  %v1392_v42 = vadd.bf16 %v4689_v60, %v880_v52 }
 0x10f   : > { %v4704_v63 = vmax.bf16 %v5603_v56, %v4443_v27  ;;  %v1393_v55 = vadd.bf16 %v4689_v60, %v881_v44  ;;  %v1481_v30 = vmul.bf16 1009007652, %v4636_v8  ;;  %v1478_v9 = vmul.bf16 1009007652, %v4638_v47  ;;  %2482 = vmatprep.subr.bf16.mxu0 %v3894_v28  ;;  %2675 = vmatprep.subr.bf16.mxu1 %v3896_v50 }
 0x110   : > { %v1491_v51 = vmul.bf16 1009007652, %v1395_v36  ;;  %v1492_v61 = vmul.bf16 1009007652, %v1396_v32  ;;  %v1488_v59 = vmul.bf16 1009007652, %v1392_v42  ;;  %v3895_v24 = vcombine.low %v1579_v57, %v1582_v39  ;;  %2483 = vmatpush1.bf16.msra.mxu0 %v3893_v37 }
 0x111   : > { %v1489_v52 = vmul.bf16 1009007652, %v1393_v55  ;;  %v3844_v44 = vcombine.high %v4696_v22, %v4704_v63  ;;  %v3843_v20 = vcombine.low %v4696_v22, %v4704_v63  ;;  %v5604_v3 = vmul.bf16 1009007652, %v4473_v23  ;;  %v4961_v22 = vld [vmem:[%s5553_s3 + $0x50] ss:$8 sps:$4 sm:$0xff]  }
 0x112   : > { %v1587_v27 = vmax.bf16 %v1491_v51, %v1395_v36  ;;  %v1588_v53 = vmax.bf16 %v1492_v61, %v1396_v32  ;;  %2676 = vmatpush1.bf16.msra.mxu1 %v3895_v24  ;;  %v1584_v45 = vmax.bf16 %v1488_v59, %v1392_v42  ;;  %v5605_v57 = vmul.bf16 1009007652, %v4471_v18  ;;  %v4966_v63 = vld [vmem:[%s5553_s3 + $0x64] ss:$8 sps:$4 sm:$0xff]  }
 0x113   : > { %v1585_v56 = vmax.bf16 %v1489_v52, %v1393_v55  ;;  %v4717_v6 = vmax.bf16 %v5604_v3, %v4473_v23  ;;  %v5606_v36 = vmul.bf16 1009007652, %v4500_v21  ;;  %v5607_v28 = vmul.bf16 1009007652, %v4498_v13  ;;  %v4771_v3 = vld [vmem:[%s5553_s3 + $0x14] ss:$8 sps:$4 sm:$0xff]  }
 0x114   : > { %v4722_v39 = vmax.bf16 %v5605_v57, %v4471_v18  ;;  %v5608_v55 = vmul.bf16 1009007652, %v4528_v25  ;;  %v5609_v50 = vmul.bf16 1009007652, %v4526_v5  ;;  %v3900_v51 = vcombine.high %v1584_v45, %v1587_v27 }
 0x115   : > { %v4727_v32 = vmax.bf16 %v5606_v36, %v4500_v21  ;;  %v4732_v42 = vmax.bf16 %v5607_v28, %v4498_v13  ;;  %v3902_v61 = vcombine.high %v1585_v56, %v1588_v53  ;;  %v3899_v37 = vcombine.low %v1584_v45, %v1587_v27 }
 0x116   : > { %v4737_v23 = vmax.bf16 %v5608_v55, %v4528_v25  ;;  %v4742_v18 = vmax.bf16 %v5609_v50, %v4526_v5  ;;  %v3901_v21 = vcombine.low %v1585_v56, %v1588_v53  ;;  %v3850_v59 = vcombine.high %v4717_v6, %v4722_v39  ;;  %2484 = vmatprep.subr.bf16.mxu0 %v3900_v51  ;;  %v4756_v5 = vld [vmem:[%s5553_s3] ss:$8 sps:$4 sm:$0xff]  }
 0x117   : > { %v3849_v13 = vcombine.low %v4717_v6, %v4722_v39  ;;  %v3856_v52 = vcombine.high %v4727_v32, %v4732_v42  ;;  %v3855_v25 = vcombine.low %v4727_v32, %v4732_v42  ;;  %v1487_v24 = vmul.bf16 1009007652, %v4664_v48  ;;  %2677 = vmatprep.subr.bf16.mxu1 %v3902_v61  ;;  %2485 = vmatpush1.bf16.msra.mxu0 %v3899_v37  ;;  %v4987_v32 = vld [vmem:[%s5553_s3 + $0x60] ss:$8 sps:$4 sm:$0xff]  }
 0x118   : > { %v3862_v27 = vcombine.high %v4737_v23, %v4742_v18  ;;  %v3861_v53 = vcombine.low %v4737_v23, %v4742_v18  ;;  %v4765_v45 = vmax.bf16 %v1454_v11, %v4546_v43  ;;  %v1484_v56 = vmul.bf16 1009007652, %v4666_v54  ;;  %2678 = vmatpush1.bf16.msra.mxu1 %v3901_v21  ;;  %v5021_v23 = vld [vmem:[%s5553_s3 + $0x84] ss:$8 sps:$4 sm:$0xff]  }
 0x119   : > { %v5610_v57 = vmul.bf16 1009007652, %v4544_v2  ;;  %v4781_v28 = vmax.bf16 %v1460_v34, %v4574_v19  ;;  %v4786_v43 = vmax.bf16 %v1463_v38, %v4572_v26  ;;  %v5611_v11 = vcombine.high %v4393_v10, %v4396_v12 }
 0x11a   : > { %v5612_v55 = vmul.bf16 1009007652, %v4592_v29  ;;  %v4802_v19 = vmax.bf16 %v1472_v46, %v4620_v0  ;;  %v5614_v26 = vmul.bf16 1009007652, %v4618_v33  ;;  %2487 = vmatmul.mubr.bf16.vlgmr.msra.gmra.mrb[0].mxu0 %v4756_v5  ;;  %v5615_v37 = vcombine.low %v4393_v10, %v4396_v12 }
 0x11b   : > { %v4776_v36 = vmax.bf16 %v5610_v57, %v4544_v2  ;;  %2840 = vmatprep.subr.bf16.mxu0 %v5611_v11  ;;  %v5613_v2 = vmul.bf16 1009007652, %v4590_v62  ;;  %v3874_v61 = vcombine.high %v4781_v28, %v4786_v43  ;;  %2680 = vmatmul.mubr.bf16.vlgmr.msra.gmra.mrb[0].mxu1 %v4756_v5  ;;  %v4837_v57 = vmax.bf16 %v1481_v30, %v4636_v8  ;;  %v4856_v8 = vld [vmem:[%s5553_s3 + $0x10] ss:$8 sps:$4 sm:$0xff]  }
 0x11c   : > { %v4794_v50 = vmax.bf16 %v5612_v55, %v4592_v29  ;;  %v4807_v38 = vmax.bf16 %v5614_v26, %v4618_v33  ;;  %2841 = vmatpush1.bf16.msra.mxu0 %v5615_v37  ;;  %2496 = vmatprep.mubr.bf16.mxu0 %v4771_v3  ;;  %v4844_v10 = vmax.bf16 %v1484_v56, %v4666_v54  ;;  %v5086_v26 = vld [vmem:[%s5553_s3 + $0xd0] ss:$8 sps:$4 sm:$0xff]  }
 0x11d   : > { %v4799_v51 = vmax.bf16 %v5613_v2, %v4590_v62  ;;  %v3868_v34 = vcombine.high %v4765_v45, %v4776_v36  ;;  %v3867_v29 = vcombine.low %v4765_v45, %v4776_v36  ;;  %v3873_v62 = vcombine.low %v4781_v28, %v4786_v43  ;;  %2689 = vmatprep.mubr.bf16.mxu1 %v4771_v3  ;;  %v3955_v28 = vld [vmem:[%s5553_s3 + $0xb4] ss:$8 sps:$4 sm:$0xff]   ;;  %v5058_v43 = vld [vmem:[%s5553_s3 + $0xb0] ss:$8 sps:$4 sm:$0xff]  }
 0x11e   : > { %v3886_v46 = vcombine.high %v4802_v19, %v4807_v38  ;;  %v3885_v21 = vcombine.low %v4802_v19, %v4807_v38  ;;  %v4832_v45 = vmax.bf16 %v1478_v9, %v4638_v47  ;;  %v5616_v36 = vcombine.high %v4506_v15, %v4511_v17  ;;  %v5077_v19 = vld [vmem:[%s5553_s3 + $0xd4] ss:$8 sps:$4 sm:$0xff]   ;;  %v5091_v38 = vld [vmem:[%s5553_s3 + $0xe4] ss:$8 sps:$4 sm:$0xff]  }
 0x11f   : > { %v3880_v33 = vcombine.high %v4794_v50, %v4799_v51  ;;  %v3879_v0 = vcombine.low %v4794_v50, %v4799_v51  ;;  %v4847_v12 = vmax.bf16 %v1487_v24, %v4664_v48  ;;  %v5617_v48 = vcombine.low %v4506_v15, %v4511_v17  ;;  %v4868_v24 = vld [vmem:[%s5553_s3 + $0x24] ss:$8 sps:$4 sm:$0xff]   ;;  %v4886_v17 = vld [vmem:[%s5553_s3 + $0x20] ss:$8 sps:$4 sm:$0xff]  }
 0x120   : > { %2842 = vmatprep.subr.bf16.mxu0 %v5616_v36  ;;  %v3892_v47 = vcombine.high %v4832_v45, %v4837_v57  ;;  %v3891_v9 = vcombine.low %v4832_v45, %v4837_v57  ;;  %v5618_v56 = vcombine.high %v4552_v31, %v4557_v4  ;;  %v5619_v11 = vcombine.low %v4552_v31, %v4557_v4  ;;  %v4894_v31 = vld [vmem:[%s5553_s3 + $0x34] ss:$8 sps:$4 sm:$0xff]   ;;  %v5063_v50 = vld [vmem:[%s5553_s3 + $0xc4] ss:$8 sps:$4 sm:$0xff]   ;;  %v5072_v51 = vld [vmem:[%s5553_s3 + $0xc0] ss:$8 sps:$4 sm:$0xff]  }
 0x121   : > { %v3898_v30 = vcombine.high %v4844_v10, %v4847_v12  ;;  %v3897_v54 = vcombine.low %v4844_v10, %v4847_v12  ;;  %2843 = vmatpush1.bf16.msra.mxu0 %v5617_v48  ;;  %v5620_v15 = vcombine.high %v4598_v40, %v4603_v58  ;;  %v5621_v55 = vcombine.low %v4598_v40, %v4603_v58  ;;  %v4912_v40 = vld [vmem:[%s5553_s3 + $0x30] ss:$8 sps:$4 sm:$0xff]   ;;  %v4920_v58 = vld [vmem:[%s5553_s3 + $0x44] ss:$8 sps:$4 sm:$0xff]  }
 0x122   : > { %2844 = vmatprep.subr.bf16.mxu0 %v5618_v56  ;;  %2497 = vmatmul.mubr.bf16.gmra.mrb[4].mxu0 %v4856_v8  ;;  %v5622_v4 = vcombine.high %v4644_v1, %v4649_v49  ;;  %v5623_v2 = vcombine.low %v4644_v1, %v4649_v49  ;;  %v4938_v1 = vld [vmem:[%s5553_s3 + $0x40] ss:$8 sps:$4 sm:$0xff]   ;;  %v4946_v49 = vld [vmem:[%s5553_s3 + $0x54] ss:$8 sps:$4 sm:$0xff]  }
 0x123   : > { %2690 = vmatmul.mubr.bf16.gmra.mrb[4].mxu1 %v4856_v8  ;;  %2506 = vmatprep.mubr.bf16.mxu0 %v4868_v24 }
 0x124   : > { %2699 = vmatprep.mubr.bf16.mxu1 %v4868_v24 }
 0x125   : > { %2845 = vmatpush1.bf16.msra.mxu0 %v5619_v11 }
 0x126   : > { %2846 = vmatprep.subr.bf16.mxu0 %v5620_v15 }
 0x129   : > { %2847 = vmatpush1.bf16.msra.mxu0 %v5621_v55 }
 0x12a   : > { %2848 = vmatprep.subr.bf16.mxu0 %v5622_v4  ;;  %2507 = vmatmul.mubr.bf16.gmra.mrb[8].mxu0 %v4886_v17 }
 0x12b   : > { %2700 = vmatmul.mubr.bf16.gmra.mrb[8].mxu1 %v4886_v17  ;;  %2516 = vmatprep.mubr.bf16.mxu0 %v4894_v31 }
 0x12c   : > { %2709 = vmatprep.mubr.bf16.mxu1 %v4894_v31 }
 0x12d   : > { %2849 = vmatpush1.bf16.msra.mxu0 %v5623_v2 }
 0x12e   : > { %2850 = vmatprep.subr.bf16.mxu0 %v3844_v44  ;;  %v885_v44 = vmul.bf16 %v4120_v35, %v4671_v16  ;;  %v5013_v16 = vld [vmem:[%s5553_s3 + $0x70] ss:$8 sps:$4 sm:$0xff]  }
 0x130   : > { %v1397_v6 = vadd.bf16 %v4686_v7, %v885_v44 }
 0x131   : > { %2851 = vmatpush1.bf16.msra.mxu0 %v3843_v20  ;;  %v882_v20 = vmul.bf16 %v4120_v35, %v4674_v41  ;;  %v4995_v35 = vld [vmem:[%s5553_s3 + $0x74] ss:$8 sps:$4 sm:$0xff]  }
 0x132   : > { %2852 = vmatprep.subr.bf16.mxu0 %v3850_v59  ;;  %2517 = vmatmul.mubr.bf16.gmra.mrb[12].mxu0 %v4912_v40  ;;  %v1493_v7 = vmul.bf16 1009007652, %v1397_v6 }
 0x133   : > { %2710 = vmatmul.mubr.bf16.gmra.mrb[12].mxu1 %v4912_v40  ;;  %2526 = vmatprep.mubr.bf16.mxu0 %v4920_v58  ;;  %v1394_v39 = vadd.bf16 %v4689_v60, %v882_v20 }
 0x134   : > { %2719 = vmatprep.mubr.bf16.mxu1 %v4920_v58  ;;  %v1589_v42 = vmax.bf16 %v1493_v7, %v1397_v6 }
 0x135   : > { %2853 = vmatpush1.bf16.msra.mxu0 %v3849_v13  ;;  %v1490_v60 = vmul.bf16 1009007652, %v1394_v39  ;;  %v5036_v13 = vld [vmem:[%s5553_s3 + $0x80] ss:$8 sps:$4 sm:$0xff]  }
 0x136   : > { %2854 = vmatprep.subr.bf16.mxu0 %v3856_v52  ;;  %v3949_v52 = vld [vmem:[%s5553_s3 + $0x94] ss:$8 sps:$4 sm:$0xff]  }
 0x137   : > { %v1586_v41 = vmax.bf16 %v1490_v60, %v1394_v39 }
 0x139   : > { %2855 = vmatpush1.bf16.msra.mxu0 %v3855_v25  ;;  %v3904_v18 = vcombine.high %v1586_v41, %v1589_v42  ;;  %v3903_v59 = vcombine.low %v1586_v41, %v1589_v42  ;;  %v3951_v25 = vld [vmem:[%s5553_s3 + $0x90] ss:$8 sps:$4 sm:$0xff]  }
 0x13a   : > { %2856 = vmatprep.subr.bf16.mxu0 %v3862_v27  ;;  %2527 = vmatmul.mubr.bf16.gmra.mrb[16].mxu0 %v4938_v1  ;;  %v3952_v27 = vld [vmem:[%s5553_s3 + $0xa4] ss:$8 sps:$4 sm:$0xff]  }
 0x13b   : > { %2720 = vmatmul.mubr.bf16.gmra.mrb[16].mxu1 %v4938_v1  ;;  %2536 = vmatprep.mubr.bf16.mxu0 %v4946_v49 }
 0x13c   : > { %2729 = vmatprep.mubr.bf16.mxu1 %v4946_v49 }
 0x13d   : > { %2857 = vmatpush1.bf16.msra.mxu0 %v3861_v53  ;;  %v3954_v53 = vld [vmem:[%s5553_s3 + $0xa0] ss:$8 sps:$4 sm:$0xff]  }
 0x13e   : > { %2858 = vmatprep.subr.bf16.mxu0 %v3868_v34  ;;  %v5100_v34 = vld [vmem:[%s5553_s3 + $0xe0] ss:$8 sps:$4 sm:$0xff]  }
 0x141   : > { %2859 = vmatpush1.bf16.msra.mxu0 %v3867_v29  ;;  %v5105_v29 = vld [vmem:[%s5553_s3 + $0xf4] ss:$8 sps:$4 sm:$0xff]  }
 0x142   : > { %2860 = vmatprep.subr.bf16.mxu0 %v3874_v61  ;;  %2537 = vmatmul.mubr.bf16.gmra.mrb[20].mxu0 %v4961_v22  ;;  %v5114_v61 = vld [vmem:[%s5553_s3 + $0xf0] ss:$8 sps:$4 sm:$0xff]  }
 0x143   : > { %2730 = vmatmul.mubr.bf16.gmra.mrb[20].mxu1 %v4961_v22  ;;  %2546 = vmatprep.mubr.bf16.mxu0 %v4966_v63 }
 0x144   : > { %2739 = vmatprep.mubr.bf16.mxu1 %v4966_v63 }
 0x145   : > { %2861 = vmatpush1.bf16.msra.mxu0 %v3873_v62  ;;  %v3970_v62 = vld [vmem:[%s5553_s3 + $0x4] ss:$8 sps:$4 sm:$0xff]  }
 0x146   : > { %2862 = vmatprep.subr.bf16.mxu0 %v3880_v33 }
 0x149   : > { %2863 = vmatpush1.bf16.msra.mxu0 %v3879_v0 }
 0x14a   : > { %2864 = vmatprep.subr.bf16.mxu0 %v3886_v46  ;;  %2547 = vmatmul.mubr.bf16.gmra.mrb[24].mxu0 %v4987_v32 }
 0x14b   : > { %2740 = vmatmul.mubr.bf16.gmra.mrb[24].mxu1 %v4987_v32  ;;  %2556 = vmatprep.mubr.bf16.mxu0 %v4995_v35 }
 0x14c   : > { %2749 = vmatprep.mubr.bf16.mxu1 %v4995_v35 }
 0x14d   : > { %2865 = vmatpush1.bf16.msra.mxu0 %v3885_v21 }
 0x14e   : > { %2866 = vmatprep.subr.bf16.mxu0 %v3892_v47 }
 0x151   : > { %2867 = vmatpush1.bf16.msra.mxu0 %v3891_v9 }
 0x152   : > { %2868 = vmatprep.subr.bf16.mxu0 %v3898_v30  ;;  %2557 = vmatmul.mubr.bf16.gmra.mrb[28].mxu0 %v5013_v16 }
 0x153   : > { %2750 = vmatmul.mubr.bf16.gmra.mrb[28].mxu1 %v5013_v16  ;;  %2566 = vmatprep.mubr.bf16.mxu0 %v5021_v23 }
 0x154   : > { %2759 = vmatprep.mubr.bf16.mxu1 %v5021_v23 }
 0x155   : > { %2869 = vmatpush1.bf16.msra.mxu0 %v3897_v54 }
 0x156   : > { %2870 = vmatprep.subr.bf16.mxu0 %v3904_v18 }
 0x159   : > { %2871 = vmatpush1.bf16.msra.mxu0 %v3903_v59 }
 0x15a   : > { %2567 = vmatmul.mubr.bf16.gmra.mrb[32].mxu0 %v5036_v13 }
 0x15b   : > { %2760 = vmatmul.mubr.bf16.gmra.mrb[32].mxu1 %v5036_v13  ;;  %2576 = vmatprep.mubr.bf16.mxu0 %v3949_v52 }
 0x15c   : > { %2769 = vmatprep.mubr.bf16.mxu1 %v3949_v52 }
 0x162   : > { %2577 = vmatmul.mubr.bf16.gmra.mrb[36].mxu0 %v3951_v25 }
 0x163   : > { %2770 = vmatmul.mubr.bf16.gmra.mrb[36].mxu1 %v3951_v25  ;;  %2586 = vmatprep.mubr.bf16.mxu0 %v3952_v27 }
 0x164   : > { %2779 = vmatprep.mubr.bf16.mxu1 %v3952_v27 }
 0x16a   : > { %2587 = vmatmul.mubr.bf16.gmra.mrb[40].mxu0 %v3954_v53 }
 0x16b   : > { %2780 = vmatmul.mubr.bf16.gmra.mrb[40].mxu1 %v3954_v53  ;;  %2596 = vmatprep.mubr.bf16.mxu0 %v3955_v28 }
 0x16c   : > { %2789 = vmatprep.mubr.bf16.mxu1 %v3955_v28 }
 0x172   : > { %2597 = vmatmul.mubr.bf16.gmra.mrb[44].mxu0 %v5058_v43 }
 0x173   : > { %2790 = vmatmul.mubr.bf16.gmra.mrb[44].mxu1 %v5058_v43  ;;  %2606 = vmatprep.mubr.bf16.mxu0 %v5063_v50 }
 0x174   : > { %2799 = vmatprep.mubr.bf16.mxu1 %v5063_v50 }
 0x17a   : > { %2607 = vmatmul.mubr.bf16.gmra.mrb[48].mxu0 %v5072_v51 }
 0x17b   : > { %2800 = vmatmul.mubr.bf16.gmra.mrb[48].mxu1 %v5072_v51  ;;  %2616 = vmatprep.mubr.bf16.mxu0 %v5077_v19 }
 0x17c   : > { %2809 = vmatprep.mubr.bf16.mxu1 %v5077_v19 }
 0x182   : > { %2617 = vmatmul.mubr.bf16.gmra.mrb[52].mxu0 %v5086_v26 }
 0x183   : > { %2810 = vmatmul.mubr.bf16.gmra.mrb[52].mxu1 %v5086_v26  ;;  %2626 = vmatprep.mubr.bf16.mxu0 %v5091_v38 }
 0x184   : > { %2819 = vmatprep.mubr.bf16.mxu1 %v5091_v38 }
 0x18a   : > { %2627 = vmatmul.mubr.bf16.gmra.mrb[56].mxu0 %v5100_v34 }
 0x18b   : > { %2820 = vmatmul.mubr.bf16.gmra.mrb[56].mxu1 %v5100_v34  ;;  %2636 = vmatprep.mubr.bf16.mxu0 %v5105_v29 }
 0x18c   : > { %2829 = vmatprep.mubr.bf16.mxu1 %v5105_v29 }
 0x192   : > { %2637 = vmatmul.mubr.bf16.gmra.mrb[60].mxu0 %v5114_v61 }
 0x193   : > { %2830 = vmatmul.mubr.bf16.gmra.mrb[60].mxu1 %v5114_v61  ;;  %2872 = vmatprep.mubr.bf16.mxu0 %v3970_v62 }
 0x19a   : > { %2873 = vmatmul.mubr.bf16.vlgmr.msra.gmra.mrb[64].mxu0 %v4756_v5  ;;  %v5138_v5 = vpop.permute.xlu1 %1661 }
 0x19b   : > { %2882 = vmatprep.mubr.bf16.mxu0 %v4771_v3  ;;  %v5140_v3 = vpop.permute.xlu0 %1656 }
 0x19e   : > { %v5152_v2 = vpop.permute.xlu1 %1671 }
 0x1a2   : > { %2883 = vmatmul.mubr.bf16.gmra.mrb[68].mxu0 %v4856_v8 }
 0x1a3   : > { %2892 = vmatprep.mubr.bf16.mxu0 %v4868_v24 }
 0x1aa   : > { %2893 = vmatmul.mubr.bf16.gmra.mrb[72].mxu0 %v4886_v17 }
 0x1ab   : > { %2902 = vmatprep.mubr.bf16.mxu0 %v4894_v31 }
 0x1b2   : > { %2903 = vmatmul.mubr.bf16.gmra.mrb[76].mxu0 %v4912_v40  ;;  %v5154_v40 = vpop.permute.xlu0 %1666 }
 0x1b3   : > { %2912 = vmatprep.mubr.bf16.mxu0 %v4920_v58 }
 0x1ba   : > { %2913 = vmatmul.mubr.bf16.gmra.mrb[80].mxu0 %v4938_v1 }
 0x1bb   : > { %2922 = vmatprep.mubr.bf16.mxu0 %v4946_v49 }
 0x1c2   : > { %2923 = vmatmul.mubr.bf16.gmra.mrb[84].mxu0 %v4961_v22 }
 0x1c3   : > { %2932 = vmatprep.mubr.bf16.mxu0 %v4966_v63 }
 0x1ca   : > { %2933 = vmatmul.mubr.bf16.gmra.mrb[88].mxu0 %v4987_v32 }
 0x1cb   : > { %2942 = vmatprep.mubr.bf16.mxu0 %v4995_v35 }
 0x1d2   : > { %2943 = vmatmul.mubr.bf16.gmra.mrb[92].mxu0 %v5013_v16 }
 0x1d3   : > { %2952 = vmatprep.mubr.bf16.mxu0 %v5021_v23 }
 0x1da   : > { %2953 = vmatmul.mubr.bf16.gmra.mrb[96].mxu0 %v5036_v13 }
 0x1db   : > { %2962 = vmatprep.mubr.bf16.mxu0 %v3949_v52 }
 0x1e2   : > { %2963 = vmatmul.mubr.bf16.gmra.mrb[100].mxu0 %v3951_v25 }
 0x1e3   : > { %2972 = vmatprep.mubr.bf16.mxu0 %v3952_v27 }
 0x1ea   : > { %2973 = vmatmul.mubr.bf16.gmra.mrb[104].mxu0 %v3954_v53 }
 0x1eb   : > { %2982 = vmatprep.mubr.bf16.mxu0 %v3955_v28 }
 0x1ed   : > { %v2488_v33 = vpop.f32.mrb[0].mxu0 }
 0x1ee   : > { %v2681_v0 = vpop.f32.mrb[0].mxu1  ;;  %v2489_v46 = vadd.f32 %v2488_v33, %v5140_v3  ;;  %v2490_v21 = vpop.f32.mrb[1].mxu0 }
 0x1ef   : > { %v2682_v37 = vadd.f32 %v2681_v0, %v5140_v3  ;;  %v2683_v45 = vpop.f32.mrb[1].mxu1  ;;  %v2491_v57 = vadd.f32 %v2490_v21, %v5140_v3  ;;  %v2492_v10 = vpop.f32.mrb[2].mxu0 }
 0x1f0   : > { %v2684_v36 = vadd.f32 %v2683_v45, %v5140_v3  ;;  %v2685_v12 = vpop.f32.mrb[2].mxu1  ;;  %v3033_v47 = vmul.f32 0.01, %v2489_v46  ;;  %v2493_v8 = vadd.f32 %v2492_v10, %v5138_v5  ;;  %v2494_v54 = vpop.f32.mrb[3].mxu0 }
 0x1f1   : > { %v3035_v9 = vmul.f32 0.01, %v2682_v37  ;;  %v2686_v30 = vadd.f32 %v2685_v12, %v5138_v5  ;;  %v2687_v48 = vpop.f32.mrb[3].mxu1  ;;  %v3034_v24 = vmul.f32 0.01, %v2491_v57  ;;  %v2495_v11 = vadd.f32 %v2494_v54, %v5138_v5  ;;  %v5172_v10 = vpop.permute.xlu1 %1681 }
 0x1f2   : > { %v3036_v56 = vmul.f32 0.01, %v2684_v36  ;;  %v2688_v15 = vadd.f32 %v2687_v48, %v5138_v5  ;;  %v3039_v17 = vmul.f32 0.01, %v2493_v8  ;;  %2983 = vmatmul.mubr.bf16.gmra.mrb[108].mxu0 %v5058_v43  ;;  %v3225_v58 = vmax.f32 %v2489_v46, %v3033_v47  ;;  %v5174_v12 = vpop.permute.xlu0 %1676 }
 0x1f3   : > { %v3041_v55 = vmul.f32 0.01, %v2686_v30  ;;  %v3040_v31 = vmul.f32 0.01, %v2495_v11  ;;  %2992 = vmatprep.mubr.bf16.mxu0 %v5063_v50  ;;  %v3227_v1 = vmax.f32 %v2682_v37, %v3035_v9  ;;  %v3226_v63 = vmax.f32 %v2491_v57, %v3034_v24 }
 0x1f4   : > { %v3042_v4 = vmul.f32 0.01, %v2688_v15  ;;  %v3231_v49 = vmax.f32 %v2493_v8, %v3039_v17  ;;  %v3228_v44 = vmax.f32 %v2684_v36, %v3036_v56 }
 0x1f5   : > { %v3233_v22 = vmax.f32 %v2686_v30, %v3041_v55  ;;  %v3232_v20 = vmax.f32 %v2495_v11, %v3040_v31  ;;  %v2498_v39 = vpop.f32.mrb[4].mxu0 }
 0x1f6   : > { %v3234_v6 = vmax.f32 %v2688_v15, %v3042_v4  ;;  %v2691_v32 = vpop.f32.mrb[4].mxu1  ;;  %v3418_v35 = vpack.c.bf16 %v3231_v49, %v3225_v58  ;;  %v2499_v60 = vadd.f32 %v2498_v39, %v5154_v40  ;;  %v2500_v41 = vpop.f32.mrb[5].mxu0 }
 0x1f7   : > { %v5156_v7 = vpack.c.bf16 %v3233_v22, %v3227_v1  ;;  %v2692_v16 = vadd.f32 %v2691_v32, %v5154_v40  ;;  %v2693_v42 = vpop.f32.mrb[5].mxu1  ;;  %v2501_v23 = vadd.f32 %v2500_v41, %v5154_v40  ;;  %v2502_v18 = vpop.f32.mrb[6].mxu0  ;;  %v3419_v13 = vpack.c.bf16 %v3232_v20, %v3226_v63  ;;  %v5188_v20 = vld.sshfl [vmem:[%s5555_s5] sm:$0x11 pattern:$0x75316420] }
 0x1f8   : > { %v2695_v59 = vpop.f32.mrb[6].mxu1  ;;  %v5161_v52 = vpack.c.bf16 %v3234_v6, %v3228_v44  ;;  %v3045_v25 = vmul.f32 0.01, %v2499_v60  ;;  %v2503_v53 = vadd.f32 %v2502_v18, %v5152_v2  ;;  %v2504_v43 = vpop.f32.mrb[7].mxu0  ;;  %v5166_v33 = vadd.f32 %v2693_v42, %v5154_v40 }
 0x1f9   : > { %v3047_v27 = vmul.f32 0.01, %v2692_v16  ;;  %v2696_v28 = vadd.f32 %v2695_v59, %v5152_v2  ;;  %v2697_v50 = vpop.f32.mrb[7].mxu1  ;;  %v3046_v62 = vmul.f32 0.01, %v2501_v23  ;;  %v2505_v0 = vadd.f32 %v2504_v43, %v5152_v2  ;;  %3541 = vmatprep.subr.bf16.mxu1 %v3419_v13 }
 0x1fa   : > { %v2698_v46 = vadd.f32 %v2697_v50, %v5152_v2  ;;  %v3051_v37 = vmul.f32 0.01, %v2503_v53  ;;  %2993 = vmatmul.mubr.bf16.gmra.mrb[112].mxu0 %v5072_v51  ;;  %3542 = vmatpush1.bf16.msra.mxu1 %v3418_v35  ;;  %v3237_v45 = vmax.f32 %v2499_v60, %v3045_v25  ;;  %v3048_v54 = vmul.f32 0.01, %v5166_v33  ;;  %v5202_v50 = vpop.permute.xlu1 %1691 }
 0x1fb   : > { %v3053_v21 = vmul.f32 0.01, %v2696_v28  ;;  %v3052_v57 = vmul.f32 0.01, %v2505_v0  ;;  %3002 = vmatprep.mubr.bf16.mxu0 %v5077_v19  ;;  %v3239_v47 = vmax.f32 %v2692_v16, %v3047_v27  ;;  %v3238_v30 = vmax.f32 %v2501_v23, %v3046_v62  ;;  %v5204_v62 = vpop.permute.xlu0 %1686 }
 0x1fc   : > { %v3054_v36 = vmul.f32 0.01, %v2698_v46  ;;  %v3243_v9 = vmax.f32 %v2503_v53, %v3051_v37  ;;  %v3982_v51 = vmov 1966171168   ;;  %v3240_v59 = vmax.f32 %v5166_v33, %v3048_v54 }
 0x1fd   : > { %v3245_v8 = vmax.f32 %v2696_v28, %v3053_v21  ;;  %v3244_v48 = vmax.f32 %v2505_v0, %v3052_v57  ;;  %v2508_v24 = vpop.f32.mrb[8].mxu0  ;;  %v3526_v11 = vunpack.c.l.s4 %v3982_v51  ;;  %v3524_v43 = vcombine.high %v5188_v20, %v5188_v20 }
 0x1fe   : > { %v2701_v56 = vpop.f32.mrb[8].mxu1  ;;  %v3424_v15 = vpack.c.bf16 %v3243_v9, %v3237_v45  ;;  %v2509_v19 = vadd.f32 %v2508_v24, %v5174_v12  ;;  %v2510_v31 = vpop.f32.mrb[9].mxu0  ;;  %v3246_v58 = vmax.f32 %v2698_v46, %v3054_v36 }
 0x1ff   : > { %v5177_v17 = vpack.c.bf16 %v3245_v8, %v3239_v47  ;;  %v2702_v55 = vadd.f32 %v2701_v56, %v5174_v12  ;;  %v2703_v4 = vpop.f32.mrb[9].mxu1  ;;  %v2511_v1 = vadd.f32 %v2510_v31, %v5174_v12  ;;  %v2512_v22 = vpop.f32.mrb[10].mxu0  ;;  %v3425_v44 = vpack.c.bf16 %v3244_v48, %v3238_v30 }
 0x200   : > { %v5183_v49 = vadd.f32 %v2703_v4, %v5174_v12  ;;  %v2705_v63 = vpop.f32.mrb[10].mxu1  ;;  %v3057_v6 = vmul.f32 0.01, %v2509_v19  ;;  %v2513_v32 = vadd.f32 %v2512_v22, %v5172_v10  ;;  %v2514_v60 = vpop.f32.mrb[11].mxu0  ;;  %v3527_v18 = vunpack.c.0.s8 %v3526_v11 }
 0x201   : > { %v3059_v39 = vmul.f32 0.01, %v2702_v55  ;;  %v2706_v35 = vadd.f32 %v2705_v63, %v5172_v10  ;;  %v2707_v16 = vpop.f32.mrb[11].mxu1  ;;  %v3058_v41 = vmul.f32 0.01, %v2511_v1  ;;  %v2515_v42 = vadd.f32 %v2514_v60, %v5172_v10  ;;  %3543 = vmatprep.subr.bf16.mxu1 %v3425_v44 }
 0x202   : > { %v5194_v23 = vadd.f32 %v2707_v16, %v5172_v10  ;;  %v3063_v13 = vmul.f32 0.01, %v2513_v32  ;;  %3003 = vmatmul.mubr.bf16.gmra.mrb[116].mxu0 %v5086_v26  ;;  %3544 = vmatpush1.bf16.msra.mxu1 %v3424_v15  ;;  %v3249_v27 = vmax.f32 %v2509_v19, %v3057_v6  ;;  %v5206_v37 = vpack.c.bf16 %v3246_v58, %v3240_v59 }
 0x203   : > { %v3065_v25 = vmul.f32 0.01, %v2706_v35  ;;  %v3064_v53 = vmul.f32 0.01, %v2515_v42  ;;  %3012 = vmatprep.mubr.bf16.mxu0 %v5091_v38  ;;  %v3251_v0 = vmax.f32 %v2702_v55, %v3059_v39  ;;  %v3250_v26 = vmax.f32 %v2511_v1, %v3058_v41 }
 0x204   : > { %v3066_v28 = vmul.f32 0.01, %v5194_v23  ;;  %v3255_v33 = vmax.f32 %v2513_v32, %v3063_v13  ;;  %v3060_v21 = vmul.f32 0.01, %v5183_v49  ;;  %v5210_v38 = vsub.s32 %v3527_v18, %v4073_v14 }
 0x205   : > { %v3257_v46 = vmax.f32 %v2706_v35, %v3065_v25  ;;  %v3256_v45 = vmax.f32 %v2515_v42, %v3064_v53  ;;  %v2518_v57 = vpop.f32.mrb[12].mxu0  ;;  %v5226_v42 = vpop.permute.xlu1 %1701 }
 0x206   : > { %v2711_v36 = vpop.f32.mrb[12].mxu1  ;;  %v3430_v47 = vpack.c.bf16 %v3255_v33, %v3249_v27  ;;  %v2519_v8 = vadd.f32 %v2518_v57, %v5204_v62  ;;  %v2520_v54 = vpop.f32.mrb[13].mxu0  ;;  %v3258_v24 = vmax.f32 %v5194_v23, %v3066_v28  ;;  %v3252_v6 = vmax.f32 %v5183_v49, %v3060_v21 }
 0x207   : > { %v5212_v9 = vpack.c.bf16 %v3257_v46, %v3251_v0  ;;  %v2712_v30 = vadd.f32 %v2711_v36, %v5204_v62  ;;  %v2713_v48 = vpop.f32.mrb[13].mxu1  ;;  %v2521_v56 = vadd.f32 %v2520_v54, %v5204_v62  ;;  %v2522_v11 = vpop.f32.mrb[14].mxu0  ;;  %v3431_v19 = vpack.c.bf16 %v3256_v45, %v3250_v26 }
 0x208   : > { %v2714_v51 = vadd.f32 %v2713_v48, %v5204_v62  ;;  %v2715_v15 = vpop.f32.mrb[14].mxu1  ;;  %v3069_v14 = vmul.f32 0.01, %v2519_v8  ;;  %v2523_v31 = vadd.f32 %v2522_v11, %v5202_v50  ;;  %v2524_v58 = vpop.f32.mrb[15].mxu0  ;;  %v5231_v13 = vrot.slane %v3524_v43, %v5210_v38 }
 0x209   : > { %v3071_v55 = vmul.f32 0.01, %v2712_v30  ;;  %v2716_v4 = vadd.f32 %v2715_v15, %v5202_v50  ;;  %v2717_v1 = vpop.f32.mrb[15].mxu1  ;;  %v3070_v22 = vmul.f32 0.01, %v2521_v56  ;;  %v2525_v44 = vadd.f32 %v2524_v58, %v5202_v50  ;;  %3545 = vmatprep.subr.bf16.mxu1 %v3431_v19  ;;  %v5228_v23 = vpop.permute.xlu0 %1696 }
 0x20a   : > { %v3072_v63 = vmul.f32 0.01, %v2714_v51  ;;  %v2718_v20 = vadd.f32 %v2717_v1, %v5202_v50  ;;  %v3075_v39 = vmul.f32 0.01, %v2523_v31  ;;  %3013 = vmatmul.mubr.bf16.gmra.mrb[120].mxu0 %v5100_v34  ;;  %3546 = vmatpush1.bf16.msra.mxu1 %v3430_v47  ;;  %v3261_v35 = vmax.f32 %v2519_v8, %v3069_v14 }
 0x20b   : > { %v3077_v32 = vmul.f32 0.01, %v2716_v4  ;;  %v3263_v60 = vmax.f32 %v2712_v30, %v3071_v55  ;;  %v3076_v16 = vmul.f32 0.01, %v2525_v44  ;;  %3022 = vmatprep.mubr.bf16.mxu0 %v5105_v29  ;;  %v5233_v49 = vpack.c.bf16 %v3258_v24, %v3252_v6  ;;  %3573 = vmatprep.mubr.bf16.mxu1 %v5231_v13 }
 0x20c   : > { %v3078_v41 = vmul.f32 0.01, %v2718_v20  ;;  %v3267_v18 = vmax.f32 %v2523_v31, %v3075_v39  ;;  %v3262_v25 = vmax.f32 %v2521_v56, %v3070_v22  ;;  %v3264_v34 = vmax.f32 %v2714_v51, %v3072_v63  ;;  %v5250_v22 = vpop.permute.xlu1 %1711 }
 0x20d   : > { %v3269_v59 = vmax.f32 %v2716_v4, %v3077_v32  ;;  %v3268_v27 = vmax.f32 %v2525_v44, %v3076_v16  ;;  %v2528_v28 = vpop.f32.mrb[16].mxu0  ;;  %5624 = vst [vmem:[#allocation3_spill] sm:$0xff] %v5250_v22  ;;  %v5252_v63 = vpop.permute.xlu0 %1706 }
 0x20e   : > { %v3270_v53 = vmax.f32 %v2718_v20, %v3078_v41  ;;  %v2721_v0 = vpop.f32.mrb[16].mxu1  ;;  %v3436_v33 = vpack.c.bf16 %v3267_v18, %v3261_v35  ;;  %v2529_v29 = vadd.f32 %v2528_v28, %v5228_v23  ;;  %v2530_v21 = vpop.f32.mrb[17].mxu0 }
 0x20f   : > { %v5235_v46 = vpack.c.bf16 %v3269_v59, %v3263_v60  ;;  %v2722_v26 = vadd.f32 %v2721_v0, %v5228_v23  ;;  %v2723_v45 = vpop.f32.mrb[17].mxu1  ;;  %v2531_v43 = vadd.f32 %v2530_v21, %v5228_v23  ;;  %v2532_v36 = vpop.f32.mrb[18].mxu0  ;;  %v3437_v8 = vpack.c.bf16 %v3268_v27, %v3262_v25 }
 0x210   : > { %v2724_v57 = vadd.f32 %v2723_v45, %v5228_v23  ;;  %v2725_v47 = vpop.f32.mrb[18].mxu1  ;;  %v5242_v30 = vpack.c.bf16 %v3270_v53, %v3264_v34  ;;  %v3081_v54 = vmul.f32 0.01, %v2529_v29  ;;  %v2533_v24 = vadd.f32 %v2532_v36, %v5226_v42  ;;  %v2534_v51 = vpop.f32.mrb[19].mxu0 }
 0x211   : > { %v3083_v48 = vmul.f32 0.01, %v2722_v26  ;;  %v2726_v56 = vadd.f32 %v2725_v47, %v5226_v42  ;;  %v2727_v11 = vpop.f32.mrb[19].mxu1  ;;  %v3082_v15 = vmul.f32 0.01, %v2531_v43  ;;  %v2535_v14 = vadd.f32 %v2534_v51, %v5226_v42  ;;  %3547 = vmatprep.subr.bf16.mxu1 %v3437_v8 }
 0x212   : > { %v3084_v19 = vmul.f32 0.01, %v2724_v57  ;;  %v2728_v55 = vadd.f32 %v2727_v11, %v5226_v42  ;;  %v3087_v31 = vmul.f32 0.01, %v2533_v24  ;;  %3023 = vmatmul.mubr.bf16.gmra.mrb[124].mxu0 %v5114_v61  ;;  %3548 = vmatpush1.bf16.msra.mxu1 %v3436_v33  ;;  %v3273_v44 = vmax.f32 %v2529_v29, %v3081_v54 }
 0x213   : > { %v3089_v4 = vmul.f32 0.01, %v2726_v56  ;;  %v3088_v58 = vmul.f32 0.01, %v2535_v14  ;;  %3655 = vmatprep.mubr.bf16.mxu0 %v5231_v13  ;;  %v3275_v20 = vmax.f32 %v2722_v26, %v3083_v48  ;;  %v3274_v32 = vmax.f32 %v2531_v43, %v3082_v15 }
 0x214   : > { %v3090_v1 = vmul.f32 0.01, %v2728_v55  ;;  %v3279_v6 = vmax.f32 %v2533_v24, %v3087_v31  ;;  %v3276_v35 = vmax.f32 %v2724_v57, %v3084_v19 }
 0x215   : > { %v3281_v39 = vmax.f32 %v2726_v56, %v3089_v4  ;;  %v3280_v60 = vmax.f32 %v2535_v14, %v3088_v58  ;;  %v2538_v41 = vpop.f32.mrb[20].mxu0  ;;  %v5266_v14 = vpop.permute.xlu1 %1721 }
 0x216   : > { %v3282_v16 = vmax.f32 %v2728_v55, %v3090_v1  ;;  %v2731_v18 = vpop.f32.mrb[20].mxu1  ;;  %v3442_v61 = vpack.c.bf16 %v3279_v6, %v3273_v44  ;;  %v2539_v25 = vadd.f32 %v2538_v41, %v5252_v63  ;;  %v2540_v27 = vpop.f32.mrb[21].mxu0  ;;  %5625 = vst [vmem:[#allocation4_spill] sm:$0xff] %v5266_v14 }
 0x217   : > { %v5254_v59 = vpack.c.bf16 %v3281_v39, %v3275_v20  ;;  %v2732_v34 = vadd.f32 %v2731_v18, %v5252_v63  ;;  %v2733_v53 = vpop.f32.mrb[21].mxu1  ;;  %v2541_v28 = vadd.f32 %v2540_v27, %v5252_v63  ;;  %v2542_v33 = vpop.f32.mrb[22].mxu0  ;;  %v3443_v26 = vpack.c.bf16 %v3280_v60, %v3274_v32 }
 0x218   : > { %v2734_v0 = vadd.f32 %v2733_v53, %v5252_v63  ;;  %v2735_v29 = vpop.f32.mrb[22].mxu1  ;;  %v5260_v21 = vpack.c.bf16 %v3282_v16, %v3276_v35  ;;  %v3093_v45 = vmul.f32 0.01, %v2539_v25  ;;  %v2543_v57 = vadd.f32 %v2542_v33, %v5250_v22  ;;  %v2544_v47 = vpop.f32.mrb[23].mxu0 }
 0x219   : > { %v3095_v43 = vmul.f32 0.01, %v2732_v34  ;;  %v2736_v36 = vadd.f32 %v2735_v29, %v5250_v22  ;;  %v2737_v8 = vpop.f32.mrb[23].mxu1  ;;  %v3094_v54 = vmul.f32 0.01, %v2541_v28  ;;  %v2545_v24 = vadd.f32 %v2544_v47, %v5250_v22  ;;  %3549 = vmatprep.subr.bf16.mxu1 %v3443_v26  ;;  %v5268_v55 = vpop.permute.xlu0 %1716 }
 0x21a   : > { %v3096_v48 = vmul.f32 0.01, %v2734_v0  ;;  %v2738_v56 = vadd.f32 %v2737_v8, %v5250_v22  ;;  %v3099_v51 = vmul.f32 0.01, %v2543_v57  ;;  %3550 = vmatpush1.bf16.msra.mxu1 %v3442_v61  ;;  %5626 = vst [vmem:[#allocation5_spill] sm:$0xff] %v5268_v55  ;;  %v3285_v31 = vmax.f32 %v2539_v25, %v3093_v45 }
 0x21b   : > { %v3101_v11 = vmul.f32 0.01, %v2736_v36  ;;  %v3100_v15 = vmul.f32 0.01, %v2545_v24  ;;  %v3287_v4 = vmax.f32 %v2732_v34, %v3095_v43  ;;  %v3286_v44 = vmax.f32 %v2541_v28, %v3094_v54 }
 0x21c   : > { %v3102_v19 = vmul.f32 0.01, %v2738_v56  ;;  %v3291_v58 = vmax.f32 %v2543_v57, %v3099_v51  ;;  %v3288_v20 = vmax.f32 %v2734_v0, %v3096_v48 }
 0x21d   : > { %v3293_v1 = vmax.f32 %v2736_v36, %v3101_v11  ;;  %v3292_v6 = vmax.f32 %v2545_v24, %v3100_v15  ;;  %v2548_v32 = vpop.f32.mrb[24].mxu0  ;;  %v5282_v15 = vpop.permute.xlu1 %1731 }
 0x21e   : > { %v3294_v39 = vmax.f32 %v2738_v56, %v3102_v19  ;;  %v2741_v35 = vpop.f32.mrb[24].mxu1  ;;  %v3448_v60 = vpack.c.bf16 %v3291_v58, %v3285_v31  ;;  %v2549_v41 = vadd.f32 %v2548_v32, %v5268_v55  ;;  %v2550_v61 = vpop.f32.mrb[25].mxu0  ;;  %5627 = vst [vmem:[#allocation6_spill] sm:$0xff] %v5282_v15 }
 0x21f   : > { %v5270_v16 = vpack.c.bf16 %v3293_v1, %v3287_v4  ;;  %v2742_v18 = vadd.f32 %v2741_v35, %v5268_v55  ;;  %v2743_v27 = vpop.f32.mrb[25].mxu1  ;;  %v2551_v25 = vadd.f32 %v2550_v61, %v5268_v55  ;;  %v2552_v53 = vpop.f32.mrb[26].mxu0  ;;  %v3449_v0 = vpack.c.bf16 %v3292_v6, %v3286_v44 }
 0x220   : > { %v2744_v34 = vadd.f32 %v2743_v27, %v5268_v55  ;;  %v2745_v28 = vpop.f32.mrb[26].mxu1  ;;  %v5276_v33 = vpack.c.bf16 %v3294_v39, %v3288_v20  ;;  %v3105_v29 = vmul.f32 0.01, %v2549_v41  ;;  %v2553_v45 = vadd.f32 %v2552_v53, %v5266_v14  ;;  %v2554_v57 = vpop.f32.mrb[27].mxu0 }
 0x221   : > { %v3107_v26 = vmul.f32 0.01, %v2742_v18  ;;  %v2746_v43 = vadd.f32 %v2745_v28, %v5266_v14  ;;  %v2747_v36 = vpop.f32.mrb[27].mxu1  ;;  %v3106_v47 = vmul.f32 0.01, %v2551_v25  ;;  %v2555_v54 = vadd.f32 %v2554_v57, %v5266_v14  ;;  %3551 = vmatprep.subr.bf16.mxu1 %v3449_v0  ;;  %v5284_v19 = vpop.permute.xlu0 %1726 }
 0x222   : > { %v3108_v8 = vmul.f32 0.01, %v2744_v34  ;;  %v2748_v48 = vadd.f32 %v2747_v36, %v5266_v14  ;;  %v3111_v24 = vmul.f32 0.01, %v2553_v45  ;;  %3552 = vmatpush1.bf16.msra.mxu1 %v3448_v60  ;;  %5628 = vst [vmem:[#allocation7_spill] sm:$0xff] %v5284_v19  ;;  %v3297_v31 = vmax.f32 %v2549_v41, %v3105_v29 }
 0x223   : > { %v3113_v56 = vmul.f32 0.01, %v2746_v43  ;;  %v3112_v51 = vmul.f32 0.01, %v2555_v54  ;;  %v3299_v4 = vmax.f32 %v2742_v18, %v3107_v26  ;;  %v3298_v44 = vmax.f32 %v2551_v25, %v3106_v47 }
 0x224   : > { %v3114_v11 = vmul.f32 0.01, %v2748_v48  ;;  %v3303_v58 = vmax.f32 %v2553_v45, %v3111_v24  ;;  %v3300_v20 = vmax.f32 %v2744_v34, %v3108_v8 }
 0x225   : > { %v3305_v1 = vmax.f32 %v2746_v43, %v3113_v56  ;;  %v3304_v6 = vmax.f32 %v2555_v54, %v3112_v51  ;;  %v2558_v32 = vpop.f32.mrb[28].mxu0 }
 0x226   : > { %v3306_v39 = vmax.f32 %v2748_v48, %v3114_v11  ;;  %v2751_v35 = vpop.f32.mrb[28].mxu1  ;;  %v3454_v61 = vpack.c.bf16 %v3303_v58, %v3297_v31  ;;  %v2559_v60 = vadd.f32 %v2558_v32, %v5284_v19  ;;  %v2560_v28 = vpop.f32.mrb[29].mxu0 }
 0x227   : > { %v5286_v27 = vpack.c.bf16 %v3305_v1, %v3299_v4  ;;  %v2752_v53 = vadd.f32 %v2751_v35, %v5284_v19  ;;  %v2753_v0 = vpop.f32.mrb[29].mxu1  ;;  %v2561_v41 = vadd.f32 %v2560_v28, %v5284_v19  ;;  %v2562_v29 = vpop.f32.mrb[30].mxu0  ;;  %v3455_v34 = vpack.c.bf16 %v3304_v6, %v3298_v44 }
 0x228   : > { %v2754_v18 = vadd.f32 %v2753_v0, %v5284_v19  ;;  %v2755_v25 = vpop.f32.mrb[30].mxu1  ;;  %v5292_v26 = vpack.c.bf16 %v3306_v39, %v3300_v20  ;;  %v3117_v45 = vmul.f32 0.01, %v2559_v60  ;;  %v2563_v57 = vadd.f32 %v2562_v29, %v5282_v15  ;;  %v2564_v47 = vpop.f32.mrb[31].mxu0 }
 0x229   : > { %v3119_v43 = vmul.f32 0.01, %v2752_v53  ;;  %v2756_v36 = vadd.f32 %v2755_v25, %v5282_v15  ;;  %v2757_v8 = vpop.f32.mrb[31].mxu1  ;;  %v3118_v54 = vmul.f32 0.01, %v2561_v41  ;;  %v2565_v24 = vadd.f32 %v2564_v47, %v5282_v15  ;;  %3553 = vmatprep.subr.bf16.mxu1 %v3455_v34  ;;  %v5298_v58 = vpop.permute.xlu1 %1741 }
 0x22a   : > { %v3120_v48 = vmul.f32 0.01, %v2754_v18  ;;  %v2758_v56 = vadd.f32 %v2757_v8, %v5282_v15  ;;  %v3123_v51 = vmul.f32 0.01, %v2563_v57  ;;  %3554 = vmatpush1.bf16.msra.mxu1 %v3454_v61  ;;  %5629 = vst [vmem:[#allocation8_spill] sm:$0xff] %v5298_v58  ;;  %v5300_v1 = vpop.permute.xlu0 %1736  ;;  %v3309_v44 = vmax.f32 %v2559_v60, %v3117_v45 }
 0x22b   : > { %v3125_v11 = vmul.f32 0.01, %v2756_v36  ;;  %v3124_v31 = vmul.f32 0.01, %v2565_v24  ;;  %5630 = vst [vmem:[#allocation9_spill] sm:$0xff] %v5300_v1  ;;  %v3311_v20 = vmax.f32 %v2752_v53, %v3119_v43  ;;  %v3310_v32 = vmax.f32 %v2561_v41, %v3118_v54 }
 0x22c   : > { %v3126_v4 = vmul.f32 0.01, %v2758_v56  ;;  %v3315_v6 = vmax.f32 %v2563_v57, %v3123_v51  ;;  %v3312_v35 = vmax.f32 %v2754_v18, %v3120_v48 }
 0x22d   : > { %v3317_v39 = vmax.f32 %v2756_v36, %v3125_v11  ;;  %v3316_v28 = vmax.f32 %v2565_v24, %v3124_v31  ;;  %v2568_v29 = vpop.f32.mrb[32].mxu0 }
 0x22e   : > { %v3318_v0 = vmax.f32 %v2758_v56, %v3126_v4  ;;  %v2761_v25 = vpop.f32.mrb[32].mxu1  ;;  %v3460_v34 = vpack.c.bf16 %v3315_v6, %v3309_v44  ;;  %v2569_v61 = vadd.f32 %v2568_v29, %v5300_v1  ;;  %v2570_v15 = vpop.f32.mrb[33].mxu0 }
 0x22f   : > { %v5302_v47 = vpack.c.bf16 %v3317_v39, %v3311_v20  ;;  %v2762_v8 = vadd.f32 %v2761_v25, %v5300_v1  ;;  %v2763_v19 = vpop.f32.mrb[33].mxu1  ;;  %v2571_v60 = vadd.f32 %v2570_v15, %v5300_v1  ;;  %v2572_v45 = vpop.f32.mrb[34].mxu0  ;;  %v3461_v18 = vpack.c.bf16 %v3316_v28, %v3310_v32 }
 0x230   : > { %v2764_v53 = vadd.f32 %v2763_v19, %v5300_v1  ;;  %v2765_v41 = vpop.f32.mrb[34].mxu1  ;;  %v5308_v43 = vpack.c.bf16 %v3318_v0, %v3312_v35  ;;  %v3129_v57 = vmul.f32 0.01, %v2569_v61  ;;  %v2573_v54 = vadd.f32 %v2572_v45, %v5298_v58  ;;  %v2574_v24 = vpop.f32.mrb[35].mxu0 }
 0x231   : > { %v3131_v36 = vmul.f32 0.01, %v2762_v8  ;;  %v2766_v48 = vadd.f32 %v2765_v41, %v5298_v58  ;;  %v2767_v56 = vpop.f32.mrb[35].mxu1  ;;  %v3130_v51 = vmul.f32 0.01, %v2571_v60  ;;  %v2575_v31 = vadd.f32 %v2574_v24, %v5298_v58  ;;  %3555 = vmatprep.subr.bf16.mxu1 %v3461_v18  ;;  %v5314_v6 = vpop.permute.xlu1 %1751 }
 0x232   : > { %v3132_v11 = vmul.f32 0.01, %v2764_v53  ;;  %v2768_v15 = vadd.f32 %v2767_v56, %v5298_v58  ;;  %v3135_v19 = vmul.f32 0.01, %v2573_v54  ;;  %3556 = vmatpush1.bf16.msra.mxu1 %v3460_v34  ;;  %5631 = vst [vmem:[#allocation10_spill] sm:$0xff] %v5314_v6  ;;  %v5316_v39 = vpop.permute.xlu0 %1746  ;;  %v3321_v32 = vmax.f32 %v2569_v61, %v3129_v57 }
 0x233   : > { %v3137_v4 = vmul.f32 0.01, %v2766_v48  ;;  %v3136_v44 = vmul.f32 0.01, %v2575_v31  ;;  %5632 = vst [vmem:[#allocation11_spill] sm:$0xff] %v5316_v39  ;;  %v3323_v35 = vmax.f32 %v2762_v8, %v3131_v36  ;;  %v3322_v29 = vmax.f32 %v2571_v60, %v3130_v51 }
 0x234   : > { %v3138_v20 = vmul.f32 0.01, %v2768_v15  ;;  %v3327_v28 = vmax.f32 %v2573_v54, %v3135_v19  ;;  %v3324_v25 = vmax.f32 %v2764_v53, %v3132_v11 }
 0x235   : > { %v3329_v0 = vmax.f32 %v2766_v48, %v3137_v4  ;;  %v3328_v45 = vmax.f32 %v2575_v31, %v3136_v44  ;;  %v2578_v24 = vpop.f32.mrb[36].mxu0 }
 0x236   : > { %v3330_v41 = vmax.f32 %v2768_v15, %v3138_v20  ;;  %v2771_v56 = vpop.f32.mrb[36].mxu1  ;;  %v3466_v18 = vpack.c.bf16 %v3327_v28, %v3321_v32  ;;  %v2579_v34 = vadd.f32 %v2578_v24, %v5316_v39  ;;  %v2580_v14 = vpop.f32.mrb[37].mxu0 }
 0x237   : > { %v5318_v58 = vpack.c.bf16 %v3329_v0, %v3323_v35  ;;  %v2772_v1 = vadd.f32 %v2771_v56, %v5316_v39  ;;  %v2773_v55 = vpop.f32.mrb[37].mxu1  ;;  %v2581_v61 = vadd.f32 %v2580_v14, %v5316_v39  ;;  %v2582_v57 = vpop.f32.mrb[38].mxu0  ;;  %v3467_v53 = vpack.c.bf16 %v3328_v45, %v3322_v29 }
 0x238   : > { %v2774_v8 = vadd.f32 %v2773_v55, %v5316_v39  ;;  %v2775_v60 = vpop.f32.mrb[38].mxu1  ;;  %v5324_v36 = vpack.c.bf16 %v3330_v41, %v3324_v25  ;;  %v3141_v54 = vmul.f32 0.01, %v2579_v34  ;;  %v2583_v51 = vadd.f32 %v2582_v57, %v5314_v6  ;;  %v2584_v31 = vpop.f32.mrb[39].mxu0 }
 0x239   : > { %5633 = vst [vmem:[#allocation12_spill] sm:$0xff] %v5318_v58  ;;  %v3143_v48 = vmul.f32 0.01, %v2772_v1  ;;  %v2776_v11 = vadd.f32 %v2775_v60, %v5314_v6  ;;  %v2777_v15 = vpop.f32.mrb[39].mxu1  ;;  %v3142_v19 = vmul.f32 0.01, %v2581_v61  ;;  %v2585_v44 = vadd.f32 %v2584_v31, %v5314_v6  ;;  %3557 = vmatprep.subr.bf16.mxu1 %v3467_v53  ;;  %v5330_v28 = vpop.permute.xlu1 %1761 }
 0x23a   : > { %v3144_v4 = vmul.f32 0.01, %v2774_v8  ;;  %v2778_v14 = vadd.f32 %v2777_v15, %v5314_v6  ;;  %v3147_v55 = vmul.f32 0.01, %v2583_v51  ;;  %3558 = vmatpush1.bf16.msra.mxu1 %v3466_v18  ;;  %5634 = vst [vmem:[#allocation13_spill] sm:$0xff] %v5330_v28  ;;  %v5332_v0 = vpop.permute.xlu0 %1756  ;;  %v3333_v29 = vmax.f32 %v2579_v34, %v3141_v54 }
 0x23b   : > { %v3149_v20 = vmul.f32 0.01, %v2776_v11  ;;  %v3148_v32 = vmul.f32 0.01, %v2585_v44  ;;  %5635 = vst [vmem:[#allocation14_spill] sm:$0xff] %v5332_v0  ;;  %v3335_v25 = vmax.f32 %v2772_v1, %v3143_v48  ;;  %v3334_v24 = vmax.f32 %v2581_v61, %v3142_v19 }
 0x23c   : > { %v3150_v35 = vmul.f32 0.01, %v2778_v14  ;;  %v3339_v45 = vmax.f32 %v2583_v51, %v3147_v55  ;;  %v3336_v56 = vmax.f32 %v2774_v8, %v3144_v4 }
 0x23d   : > { %v3341_v41 = vmax.f32 %v2776_v11, %v3149_v20  ;;  %v3340_v57 = vmax.f32 %v2585_v44, %v3148_v32  ;;  %v2588_v31 = vpop.f32.mrb[40].mxu0 }
 0x23e   : > { %v3342_v60 = vmax.f32 %v2778_v14, %v3150_v35  ;;  %v2781_v15 = vpop.f32.mrb[40].mxu1  ;;  %v3472_v53 = vpack.c.bf16 %v3339_v45, %v3333_v29  ;;  %v2589_v18 = vadd.f32 %v2588_v31, %v5332_v0  ;;  %v2590_v22 = vpop.f32.mrb[41].mxu0 }
 0x23f   : > { %v5334_v6 = vpack.c.bf16 %v3341_v41, %v3335_v25  ;;  %v2782_v39 = vadd.f32 %v2781_v15, %v5332_v0  ;;  %v2783_v58 = vpop.f32.mrb[41].mxu1  ;;  %v2591_v34 = vadd.f32 %v2590_v22, %v5332_v0  ;;  %v2592_v54 = vpop.f32.mrb[42].mxu0  ;;  %v3473_v8 = vpack.c.bf16 %v3340_v57, %v3334_v24 }
 0x240   : > { %v2784_v1 = vadd.f32 %v2783_v58, %v5332_v0  ;;  %v2785_v61 = vpop.f32.mrb[42].mxu1  ;;  %v5340_v48 = vpack.c.bf16 %v3342_v60, %v3336_v56  ;;  %v3153_v51 = vmul.f32 0.01, %v2589_v18  ;;  %v2593_v19 = vadd.f32 %v2592_v54, %v5330_v28  ;;  %v2594_v44 = vpop.f32.mrb[43].mxu0 }
 0x241   : > { %5636 = vst [vmem:[#allocation15_spill] sm:$0xff] %v5334_v6  ;;  %v3155_v11 = vmul.f32 0.01, %v2782_v39  ;;  %v2786_v4 = vadd.f32 %v2785_v61, %v5330_v28  ;;  %v2787_v14 = vpop.f32.mrb[43].mxu1  ;;  %v3154_v55 = vmul.f32 0.01, %v2591_v34  ;;  %v2595_v32 = vadd.f32 %v2594_v44, %v5330_v28  ;;  %3559 = vmatprep.subr.bf16.mxu1 %v3473_v8  ;;  %v5346_v45 = vpop.permute.xlu1 %1771 }
 0x242   : > { %5637 = vst [vmem:[#allocation16_spill] sm:$0xff] %v5340_v48  ;;  %v3156_v20 = vmul.f32 0.01, %v2784_v1  ;;  %v2788_v22 = vadd.f32 %v2787_v14, %v5330_v28  ;;  %v3159_v58 = vmul.f32 0.01, %v2593_v19  ;;  %3560 = vmatpush1.bf16.msra.mxu1 %v3472_v53  ;;  %5638 = vst [vmem:[#allocation17_spill] sm:$0xff] %v5346_v45  ;;  %v5348_v41 = vpop.permute.xlu0 %1766  ;;  %v3345_v24 = vmax.f32 %v2589_v18, %v3153_v51 }
 0x243   : > { %v3161_v35 = vmul.f32 0.01, %v2786_v4  ;;  %v3160_v29 = vmul.f32 0.01, %v2595_v32  ;;  %5639 = vst [vmem:[#allocation18_spill] sm:$0xff] %v5348_v41  ;;  %v3347_v56 = vmax.f32 %v2782_v39, %v3155_v11  ;;  %v3346_v31 = vmax.f32 %v2591_v34, %v3154_v55 }
 0x244   : > { %v3162_v25 = vmul.f32 0.01, %v2788_v22  ;;  %v3351_v57 = vmax.f32 %v2593_v19, %v3159_v58  ;;  %v3348_v15 = vmax.f32 %v2784_v1, %v3156_v20 }
 0x245   : > { %v3353_v60 = vmax.f32 %v2786_v4, %v3161_v35  ;;  %v3352_v54 = vmax.f32 %v2595_v32, %v3160_v29  ;;  %v2598_v44 = vpop.f32.mrb[44].mxu0 }
 0x246   : > { %v3354_v61 = vmax.f32 %v2788_v22, %v3162_v25  ;;  %v2791_v14 = vpop.f32.mrb[44].mxu1  ;;  %v3478_v8 = vpack.c.bf16 %v3351_v57, %v3345_v24  ;;  %v2599_v53 = vadd.f32 %v2598_v44, %v5348_v41  ;;  %v2600_v6 = vpop.f32.mrb[45].mxu0 }
 0x247   : > { %v5350_v28 = vpack.c.bf16 %v3353_v60, %v3347_v56  ;;  %v2792_v0 = vadd.f32 %v2791_v14, %v5348_v41  ;;  %v2793_v48 = vpop.f32.mrb[45].mxu1  ;;  %v2601_v18 = vadd.f32 %v2600_v6, %v5348_v41  ;;  %v2602_v51 = vpop.f32.mrb[46].mxu0  ;;  %v3479_v1 = vpack.c.bf16 %v3352_v54, %v3346_v31 }
 0x248   : > { %v2794_v39 = vadd.f32 %v2793_v48, %v5348_v41  ;;  %v2795_v34 = vpop.f32.mrb[46].mxu1  ;;  %v5356_v11 = vpack.c.bf16 %v3354_v61, %v3348_v15  ;;  %v3165_v19 = vmul.f32 0.01, %v2599_v53  ;;  %v2603_v55 = vadd.f32 %v2602_v51, %v5346_v45  ;;  %v2604_v32 = vpop.f32.mrb[47].mxu0 }
 0x249   : > { %5640 = vst [vmem:[#allocation19_spill] sm:$0xff] %v5350_v28  ;;  %v3167_v4 = vmul.f32 0.01, %v2792_v0  ;;  %v2796_v20 = vadd.f32 %v2795_v34, %v5346_v45  ;;  %v2797_v22 = vpop.f32.mrb[47].mxu1  ;;  %v3166_v58 = vmul.f32 0.01, %v2601_v18  ;;  %v2605_v29 = vadd.f32 %v2604_v32, %v5346_v45  ;;  %3561 = vmatprep.subr.bf16.mxu1 %v3479_v1  ;;  %v5362_v57 = vpop.permute.xlu1 %1781 }
 0x24a   : > { %5641 = vst [vmem:[#allocation20_spill] sm:$0xff] %v5356_v11  ;;  %v3168_v35 = vmul.f32 0.01, %v2794_v39  ;;  %v2798_v6 = vadd.f32 %v2797_v22, %v5346_v45  ;;  %v3171_v48 = vmul.f32 0.01, %v2603_v55  ;;  %3562 = vmatpush1.bf16.msra.mxu1 %v3478_v8  ;;  %5642 = vst [vmem:[#allocation21_spill] sm:$0xff] %v5362_v57  ;;  %v5364_v60 = vpop.permute.xlu0 %1776  ;;  %v3357_v31 = vmax.f32 %v2599_v53, %v3165_v19 }
 0x24b   : > { %v3173_v25 = vmul.f32 0.01, %v2796_v20  ;;  %v3172_v24 = vmul.f32 0.01, %v2605_v29  ;;  %5643 = vst [vmem:[#allocation22_spill] sm:$0xff] %v5364_v60  ;;  %v3359_v15 = vmax.f32 %v2792_v0, %v3167_v4  ;;  %v3358_v44 = vmax.f32 %v2601_v18, %v3166_v58 }
 0x24c   : > { %v3174_v56 = vmul.f32 0.01, %v2798_v6  ;;  %v3363_v54 = vmax.f32 %v2603_v55, %v3171_v48  ;;  %v3360_v14 = vmax.f32 %v2794_v39, %v3168_v35 }
 0x24d   : > { %v3365_v61 = vmax.f32 %v2796_v20, %v3173_v25  ;;  %v3364_v51 = vmax.f32 %v2605_v29, %v3172_v24  ;;  %v2608_v32 = vpop.f32.mrb[48].mxu0 }
 0x24e   : > { %v3366_v34 = vmax.f32 %v2798_v6, %v3174_v56  ;;  %v2801_v22 = vpop.f32.mrb[48].mxu1  ;;  %v3484_v1 = vpack.c.bf16 %v3363_v54, %v3357_v31  ;;  %v2609_v8 = vadd.f32 %v2608_v32, %v5364_v60  ;;  %v2610_v28 = vpop.f32.mrb[49].mxu0 }
 0x24f   : > { %v5366_v45 = vpack.c.bf16 %v3365_v61, %v3359_v15  ;;  %v2802_v41 = vadd.f32 %v2801_v22, %v5364_v60  ;;  %v2803_v11 = vpop.f32.mrb[49].mxu1  ;;  %v2611_v53 = vadd.f32 %v2610_v28, %v5364_v60  ;;  %v2612_v19 = vpop.f32.mrb[50].mxu0  ;;  %v3485_v39 = vpack.c.bf16 %v3364_v51, %v3358_v44 }
 0x250   : > { %v2804_v0 = vadd.f32 %v2803_v11, %v5364_v60  ;;  %v2805_v18 = vpop.f32.mrb[50].mxu1  ;;  %v5372_v4 = vpack.c.bf16 %v3366_v34, %v3360_v14  ;;  %v3177_v55 = vmul.f32 0.01, %v2609_v8  ;;  %v2613_v58 = vadd.f32 %v2612_v19, %v5362_v57  ;;  %v2614_v29 = vpop.f32.mrb[51].mxu0 }
 0x251   : > { %5644 = vst [vmem:[#allocation23_spill] sm:$0xff] %v5366_v45  ;;  %v3179_v20 = vmul.f32 0.01, %v2802_v41  ;;  %v2806_v35 = vadd.f32 %v2805_v18, %v5362_v57  ;;  %v2807_v6 = vpop.f32.mrb[51].mxu1  ;;  %v3178_v48 = vmul.f32 0.01, %v2611_v53  ;;  %v2615_v24 = vadd.f32 %v2614_v29, %v5362_v57  ;;  %3563 = vmatprep.subr.bf16.mxu1 %v3485_v39  ;;  %v5378_v54 = vpop.permute.xlu1 %1791 }
 0x252   : > { %5645 = vst [vmem:[#allocation24_spill] sm:$0xff] %v5372_v4  ;;  %v3180_v25 = vmul.f32 0.01, %v2804_v0  ;;  %v2808_v28 = vadd.f32 %v2807_v6, %v5362_v57  ;;  %v3183_v11 = vmul.f32 0.01, %v2613_v58  ;;  %3564 = vmatpush1.bf16.msra.mxu1 %v3484_v1  ;;  %5646 = vst [vmem:[#allocation25_spill] sm:$0xff] %v5378_v54  ;;  %v5380_v61 = vpop.permute.xlu0 %1786  ;;  %v3369_v44 = vmax.f32 %v2609_v8, %v3177_v55 }
 0x253   : > { %v3185_v56 = vmul.f32 0.01, %v2806_v35  ;;  %v3184_v31 = vmul.f32 0.01, %v2615_v24  ;;  %5647 = vst [vmem:[#allocation26_spill] sm:$0xff] %v5380_v61  ;;  %v3371_v14 = vmax.f32 %v2802_v41, %v3179_v20  ;;  %v3370_v32 = vmax.f32 %v2611_v53, %v3178_v48 }
 0x254   : > { %v3186_v15 = vmul.f32 0.01, %v2808_v28  ;;  %v3375_v51 = vmax.f32 %v2613_v58, %v3183_v11  ;;  %v3372_v22 = vmax.f32 %v2804_v0, %v3180_v25 }
 0x255   : > { %v3377_v34 = vmax.f32 %v2806_v35, %v3185_v56  ;;  %v3376_v19 = vmax.f32 %v2615_v24, %v3184_v31  ;;  %v2618_v29 = vpop.f32.mrb[52].mxu0 }
 0x256   : > { %v3378_v18 = vmax.f32 %v2808_v28, %v3186_v15  ;;  %v2811_v6 = vpop.f32.mrb[52].mxu1  ;;  %v3490_v39 = vpack.c.bf16 %v3375_v51, %v3369_v44  ;;  %v2619_v1 = vadd.f32 %v2618_v29, %v5380_v61  ;;  %v2620_v45 = vpop.f32.mrb[53].mxu0 }
 0x257   : > { %v5382_v57 = vpack.c.bf16 %v3377_v34, %v3371_v14  ;;  %v2812_v60 = vadd.f32 %v2811_v6, %v5380_v61  ;;  %v2813_v4 = vpop.f32.mrb[53].mxu1  ;;  %v2621_v8 = vadd.f32 %v2620_v45, %v5380_v61  ;;  %v2622_v55 = vpop.f32.mrb[54].mxu0  ;;  %v3491_v0 = vpack.c.bf16 %v3376_v19, %v3370_v32 }
 0x258   : > { %v2814_v41 = vadd.f32 %v2813_v4, %v5380_v61  ;;  %v2815_v53 = vpop.f32.mrb[54].mxu1  ;;  %v5388_v20 = vpack.c.bf16 %v3378_v18, %v3372_v22  ;;  %v3189_v58 = vmul.f32 0.01, %v2619_v1  ;;  %v2623_v48 = vadd.f32 %v2622_v55, %v5378_v54  ;;  %v2624_v24 = vpop.f32.mrb[55].mxu0 }
 0x259   : > { %5648 = vst [vmem:[#allocation27_spill] sm:$0xff] %v5382_v57  ;;  %v3191_v35 = vmul.f32 0.01, %v2812_v60  ;;  %v2816_v25 = vadd.f32 %v2815_v53, %v5378_v54  ;;  %v2817_v28 = vpop.f32.mrb[55].mxu1  ;;  %v3190_v11 = vmul.f32 0.01, %v2621_v8  ;;  %v2625_v31 = vadd.f32 %v2624_v24, %v5378_v54  ;;  %3565 = vmatprep.subr.bf16.mxu1 %v3491_v0  ;;  %v5394_v51 = vpop.permute.xlu1 %1801 }
 0x25a   : > { %5649 = vst [vmem:[#allocation28_spill] sm:$0xff] %v5388_v20  ;;  %v3192_v56 = vmul.f32 0.01, %v2814_v41  ;;  %v2818_v45 = vadd.f32 %v2817_v28, %v5378_v54  ;;  %v3195_v4 = vmul.f32 0.01, %v2623_v48  ;;  %3566 = vmatpush1.bf16.msra.mxu1 %v3490_v39  ;;  %5650 = vst [vmem:[#allocation29_spill] sm:$0xff] %v5394_v51  ;;  %v5396_v34 = vpop.permute.xlu0 %1796  ;;  %v3381_v32 = vmax.f32 %v2619_v1, %v3189_v58 }
 0x25b   : > { %v3197_v15 = vmul.f32 0.01, %v2816_v25  ;;  %v3196_v44 = vmul.f32 0.01, %v2625_v31  ;;  %5651 = vst [vmem:[#allocation30_spill] sm:$0xff] %v5396_v34  ;;  %v3383_v22 = vmax.f32 %v2812_v60, %v3191_v35  ;;  %v3382_v29 = vmax.f32 %v2621_v8, %v3190_v11 }
 0x25c   : > { %v3198_v14 = vmul.f32 0.01, %v2818_v45  ;;  %v3387_v19 = vmax.f32 %v2623_v48, %v3195_v4  ;;  %v3384_v6 = vmax.f32 %v2814_v41, %v3192_v56 }
 0x25d   : > { %v3389_v18 = vmax.f32 %v2816_v25, %v3197_v15  ;;  %v3388_v55 = vmax.f32 %v2625_v31, %v3196_v44  ;;  %v2628_v24 = vpop.f32.mrb[56].mxu0 }
 0x25e   : > { %v3390_v53 = vmax.f32 %v2818_v45, %v3198_v14  ;;  %v2821_v28 = vpop.f32.mrb[56].mxu1  ;;  %v3496_v0 = vpack.c.bf16 %v3387_v19, %v3381_v32  ;;  %v2629_v39 = vadd.f32 %v2628_v24, %v5396_v34  ;;  %v2630_v57 = vpop.f32.mrb[57].mxu0 }
 0x25f   : > { %v5398_v54 = vpack.c.bf16 %v3389_v18, %v3383_v22  ;;  %v2822_v61 = vadd.f32 %v2821_v28, %v5396_v34  ;;  %v2823_v20 = vpop.f32.mrb[57].mxu1  ;;  %v2631_v1 = vadd.f32 %v2630_v57, %v5396_v34  ;;  %v2632_v58 = vpop.f32.mrb[58].mxu0  ;;  %v3497_v41 = vpack.c.bf16 %v3388_v55, %v3382_v29 }
 0x260   : > { %v2824_v60 = vadd.f32 %v2823_v20, %v5396_v34  ;;  %v2825_v8 = vpop.f32.mrb[58].mxu1  ;;  %v5404_v35 = vpack.c.bf16 %v3390_v53, %v3384_v6  ;;  %v3201_v48 = vmul.f32 0.01, %v2629_v39  ;;  %v2633_v11 = vadd.f32 %v2632_v58, %v5394_v51  ;;  %v2634_v31 = vpop.f32.mrb[59].mxu0 }
 0x261   : > { %5652 = vst [vmem:[#allocation31_spill] sm:$0xff] %v5398_v54  ;;  %v3203_v25 = vmul.f32 0.01, %v2822_v61  ;;  %v2826_v56 = vadd.f32 %v2825_v8, %v5394_v51  ;;  %v2827_v45 = vpop.f32.mrb[59].mxu1  ;;  %v3202_v4 = vmul.f32 0.01, %v2631_v1  ;;  %v2635_v44 = vadd.f32 %v2634_v31, %v5394_v51  ;;  %3567 = vmatprep.subr.bf16.mxu1 %v3497_v41  ;;  %v5410_v19 = vpop.permute.xlu1 %1811 }
 0x262   : > { %5653 = vst [vmem:[#allocation32_spill] sm:$0xff] %v5404_v35  ;;  %v3204_v15 = vmul.f32 0.01, %v2824_v60  ;;  %v2828_v57 = vadd.f32 %v2827_v45, %v5394_v51  ;;  %v3207_v20 = vmul.f32 0.01, %v2633_v11  ;;  %3568 = vmatpush1.bf16.msra.mxu1 %v3496_v0  ;;  %5654 = vst [vmem:[#allocation33_spill] sm:$0xff] %v5410_v19  ;;  %v5412_v18 = vpop.permute.xlu0 %1806  ;;  %v3393_v29 = vmax.f32 %v2629_v39, %v3201_v48 }
 0x263   : > { %v3209_v14 = vmul.f32 0.01, %v2826_v56  ;;  %v3208_v32 = vmul.f32 0.01, %v2635_v44  ;;  %5655 = vst [vmem:[#allocation34_spill] sm:$0xff] %v5412_v18  ;;  %v3395_v6 = vmax.f32 %v2822_v61, %v3203_v25  ;;  %v3394_v24 = vmax.f32 %v2631_v1, %v3202_v4 }
 0x264   : > { %v3210_v22 = vmul.f32 0.01, %v2828_v57  ;;  %v3399_v55 = vmax.f32 %v2633_v11, %v3207_v20  ;;  %v3396_v28 = vmax.f32 %v2824_v60, %v3204_v15 }
 0x265   : > { %v3401_v53 = vmax.f32 %v2826_v56, %v3209_v14  ;;  %v3400_v58 = vmax.f32 %v2635_v44, %v3208_v32  ;;  %v2638_v31 = vpop.f32.mrb[60].mxu0 }
 0x266   : > { %v3402_v8 = vmax.f32 %v2828_v57, %v3210_v22  ;;  %v2831_v45 = vpop.f32.mrb[60].mxu1  ;;  %v3502_v41 = vpack.c.bf16 %v3399_v55, %v3393_v29  ;;  %v2639_v0 = vadd.f32 %v2638_v31, %v5412_v18  ;;  %v2640_v54 = vpop.f32.mrb[61].mxu0 }
 0x267   : > { %v5414_v51 = vpack.c.bf16 %v3401_v53, %v3395_v6  ;;  %v2832_v34 = vadd.f32 %v2831_v45, %v5412_v18  ;;  %v2833_v35 = vpop.f32.mrb[61].mxu1  ;;  %v2641_v39 = vadd.f32 %v2640_v54, %v5412_v18  ;;  %v2642_v48 = vpop.f32.mrb[62].mxu0  ;;  %v3503_v60 = vpack.c.bf16 %v3400_v58, %v3394_v24 }
 0x268   : > { %v2834_v61 = vadd.f32 %v2833_v35, %v5412_v18  ;;  %v2835_v1 = vpop.f32.mrb[62].mxu1  ;;  %v5420_v25 = vpack.c.bf16 %v3402_v8, %v3396_v28  ;;  %v3213_v11 = vmul.f32 0.01, %v2639_v0  ;;  %v2643_v4 = vadd.f32 %v2642_v48, %v5410_v19  ;;  %v2644_v44 = vpop.f32.mrb[63].mxu0 }
 0x269   : > { %5656 = vst [vmem:[#allocation35_spill] sm:$0xff] %v5414_v51  ;;  %v3215_v56 = vmul.f32 0.01, %v2832_v34  ;;  %v2836_v15 = vadd.f32 %v2835_v1, %v5410_v19  ;;  %v2837_v57 = vpop.f32.mrb[63].mxu1  ;;  %v3214_v20 = vmul.f32 0.01, %v2641_v39  ;;  %v2645_v32 = vadd.f32 %v2644_v44, %v5410_v19  ;;  %3569 = vmatprep.subr.bf16.mxu1 %v3503_v60 }
 0x26a   : > { %v3216_v14 = vmul.f32 0.01, %v2834_v61  ;;  %v2838_v54 = vadd.f32 %v2837_v57, %v5410_v19  ;;  %v3219_v35 = vmul.f32 0.01, %v2643_v4  ;;  %3570 = vmatpush1.bf16.msra.mxu1 %v3502_v41  ;;  %v3405_v55 = vmax.f32 %v2639_v0, %v3213_v11 }
 0x26b   : > { %v3221_v22 = vmul.f32 0.01, %v2836_v15  ;;  %v3220_v29 = vmul.f32 0.01, %v2645_v32  ;;  %v3407_v53 = vmax.f32 %v2832_v34, %v3215_v56  ;;  %v3406_v58 = vmax.f32 %v2641_v39, %v3214_v20 }
 0x26c   : > { %v3222_v6 = vmul.f32 0.01, %v2838_v54  ;;  %v3411_v24 = vmax.f32 %v2643_v4, %v3219_v35  ;;  %v3408_v8 = vmax.f32 %v2834_v61, %v3216_v14  ;;  %v3971_v56 = vld.sshfl [vmem:[%s5555_s5] sm:$0x11 pattern:$0x75316420] }
 0x26d   : > { %v3413_v28 = vmax.f32 %v2836_v15, %v3221_v22  ;;  %v3412_v31 = vmax.f32 %v2645_v32, %v3220_v29  ;;  %v2874_v48 = vpop.f32.mrb[64].mxu0  ;;  %v5438_v4 = vrot.slane %v3971_v56, %v5210_v38 }
 0x26e   : > { %v3414_v45 = vmax.f32 %v2838_v54, %v3222_v6  ;;  %v3508_v1 = vpack.c.bf16 %v3411_v24, %v3405_v55  ;;  %v2875_v44 = vadd.f32 %v2874_v48, %v5140_v3  ;;  %v2876_v60 = vpop.f32.mrb[65].mxu0 }
 0x26f   : > { %v5426_v18 = vpack.c.bf16 %v3413_v28, %v3407_v53  ;;  %v2877_v57 = vadd.f32 %v2876_v60, %v5140_v3  ;;  %v2878_v41 = vpop.f32.mrb[66].mxu0  ;;  %v3509_v19 = vpack.c.bf16 %v3412_v31, %v3406_v58 }
 0x270   : > { %v5430_v51 = vpack.c.bf16 %v3414_v45, %v3408_v8  ;;  %v3037_v34 = vmul.f32 0.01, %v2875_v44  ;;  %v2879_v0 = vadd.f32 %v2878_v41, %v5138_v5  ;;  %v2880_v39 = vpop.f32.mrb[67].mxu0 }
 0x271   : > { %v3038_v61 = vmul.f32 0.01, %v2877_v57  ;;  %v2881_v11 = vadd.f32 %v2880_v39, %v5138_v5  ;;  %3571 = vmatprep.subr.bf16.mxu1 %v3509_v19 }
 0x272   : > { %v3043_v3 = vmul.f32 0.01, %v2879_v0  ;;  %3572 = vmatpush1.bf16.msra.mxu1 %v3508_v1  ;;  %v3229_v20 = vmax.f32 %v2875_v44, %v3037_v34 }
 0x273   : > { %v3044_v15 = vmul.f32 0.01, %v2881_v11  ;;  %3582 = vmatprep.subr.bf16.mxu1 %v5161_v52  ;;  %v3230_v32 = vmax.f32 %v2877_v57, %v3038_v61 }
 0x274   : > { %v3235_v14 = vmax.f32 %v2879_v0, %v3043_v3 }
 0x275   : > { %v3236_v54 = vmax.f32 %v2881_v11, %v3044_v15  ;;  %v2884_v35 = vpop.f32.mrb[68].mxu0  ;;  %3574 = vmatmul.mubr.bf16.vlgmr.msra.gmra.mrb[64].mxu1 %v5438_v4 }
 0x276   : > { %v3422_v5 = vpack.c.bf16 %v3235_v14, %v3229_v20  ;;  %v2885_v19 = vadd.f32 %v2884_v35, %v5154_v40  ;;  %v2886_v22 = vpop.f32.mrb[69].mxu0  ;;  %3583 = vmatpush1.bf16.msra.mxu1 %v5156_v7  ;;  %3614 = vmatprep.mubr.bf16.mxu1 %v5231_v13 }
 0x277   : > { %v2887_v29 = vadd.f32 %v2886_v22, %v5154_v40  ;;  %v2888_v6 = vpop.f32.mrb[70].mxu0  ;;  %3584 = vmatprep.subr.bf16.mxu1 %v5206_v37  ;;  %v3423_v52 = vpack.c.bf16 %v3236_v54, %v3230_v32 }
 0x278   : > { %v3049_v55 = vmul.f32 0.01, %v2885_v19  ;;  %v2889_v53 = vadd.f32 %v2888_v6, %v5152_v2  ;;  %v2890_v24 = vpop.f32.mrb[71].mxu0 }
 0x279   : > { %v3050_v28 = vmul.f32 0.01, %v2887_v29  ;;  %v2891_v58 = vadd.f32 %v2890_v24, %v5152_v2  ;;  %3623 = vmatprep.subr.bf16.mxu0 %v3423_v52 }
 0x27a   : > { %v3055_v8 = vmul.f32 0.01, %v2889_v53  ;;  %3585 = vmatpush1.bf16.msra.mxu1 %v5177_v17  ;;  %3624 = vmatpush1.bf16.msra.mxu0 %v3422_v5  ;;  %v3241_v40 = vmax.f32 %v2885_v19, %v3049_v55 }
 0x27b   : > { %v3056_v7 = vmul.f32 0.01, %v2891_v58  ;;  %3586 = vmatprep.subr.bf16.mxu1 %v5233_v49  ;;  %v3242_v31 = vmax.f32 %v2887_v29, %v3050_v28 }
 0x27c   : > { %v3247_v13 = vmax.f32 %v2889_v53, %v3055_v8 }
 0x27d   : > { %v3248_v37 = vmax.f32 %v2891_v58, %v3056_v7  ;;  %v2894_v45 = vpop.f32.mrb[72].mxu0 }
 0x27e   : > { %v3428_v48 = vpack.c.bf16 %v3247_v13, %v3241_v40  ;;  %v2895_v1 = vadd.f32 %v2894_v45, %v5174_v12  ;;  %v2896_v44 = vpop.f32.mrb[73].mxu0  ;;  %3587 = vmatpush1.bf16.msra.mxu1 %v5212_v9 }
 0x27f   : > { %v2897_v2 = vadd.f32 %v2896_v44, %v5174_v12  ;;  %v2898_v60 = vpop.f32.mrb[74].mxu0  ;;  %3588 = vmatprep.subr.bf16.mxu1 %v5242_v30  ;;  %v3429_v17 = vpack.c.bf16 %v3248_v37, %v3242_v31  ;;  %v5657_v44 = vld [vmem:[#allocation12_spill] sm:$0xff] }
 0x280   : > { %v3061_v57 = vmul.f32 0.01, %v2895_v1  ;;  %v2899_v49 = vadd.f32 %v2898_v60, %v5172_v10  ;;  %v2900_v41 = vpop.f32.mrb[75].mxu0  ;;  %v5658_v60 = vld [vmem:[#allocation16_spill] sm:$0xff] }
 0x281   : > { %v3062_v34 = vmul.f32 0.01, %v2897_v2  ;;  %v2901_v0 = vadd.f32 %v2900_v41, %v5172_v10  ;;  %3625 = vmatprep.subr.bf16.mxu0 %v3429_v17 }
 0x282   : > { %v3067_v39 = vmul.f32 0.01, %v2899_v49  ;;  %3589 = vmatpush1.bf16.msra.mxu1 %v5235_v46  ;;  %3626 = vmatpush1.bf16.msra.mxu0 %v3428_v48  ;;  %v3253_v12 = vmax.f32 %v2895_v1, %v3061_v57  ;;  %v5659_v57 = vld [vmem:[#allocation3_spill] sm:$0xff] }
 0x283   : > { %v3068_v61 = vmul.f32 0.01, %v2901_v0  ;;  %3590 = vmatprep.subr.bf16.mxu1 %v5260_v21  ;;  %v3254_v11 = vmax.f32 %v2897_v2, %v3062_v34 }
 0x284   : > { %v3259_v9 = vmax.f32 %v2899_v49, %v3067_v39  ;;  %v5660_v39 = vld [vmem:[#allocation15_spill] sm:$0xff] }
 0x285   : > { %v3260_v30 = vmax.f32 %v2901_v0, %v3068_v61  ;;  %v2904_v56 = vpop.f32.mrb[76].mxu0 }
 0x286   : > { %v3434_v3 = vpack.c.bf16 %v3259_v9, %v3253_v12  ;;  %v2905_v15 = vadd.f32 %v2904_v56, %v5204_v62  ;;  %v2906_v20 = vpop.f32.mrb[77].mxu0  ;;  %3591 = vmatpush1.bf16.msra.mxu1 %v5254_v59  ;;  %v5661_v12 = vld [vmem:[#allocation20_spill] sm:$0xff] }
 0x287   : > { %v2907_v10 = vadd.f32 %v2906_v20, %v5204_v62  ;;  %v2908_v14 = vpop.f32.mrb[78].mxu0  ;;  %3592 = vmatprep.subr.bf16.mxu1 %v5276_v33  ;;  %v3435_v46 = vpack.c.bf16 %v3260_v30, %v3254_v11 }
 0x288   : > { %v3073_v32 = vmul.f32 0.01, %v2905_v15  ;;  %v2909_v21 = vadd.f32 %v2908_v14, %v5202_v50  ;;  %v2910_v54 = vpop.f32.mrb[79].mxu0  ;;  %v5663_v14 = vld [vmem:[#allocation19_spill] sm:$0xff] }
 0x289   : > { %v3074_v35 = vmul.f32 0.01, %v2907_v10  ;;  %v2911_v5 = vadd.f32 %v2910_v54, %v5202_v50  ;;  %3627 = vmatprep.subr.bf16.mxu0 %v3435_v46 }
 0x28a   : > { %v3079_v19 = vmul.f32 0.01, %v2909_v21  ;;  %3593 = vmatpush1.bf16.msra.mxu1 %v5270_v16  ;;  %3628 = vmatpush1.bf16.msra.mxu0 %v3434_v3  ;;  %v3265_v62 = vmax.f32 %v2905_v15, %v3073_v32  ;;  %v5662_v15 = vld [vmem:[#allocation5_spill] sm:$0xff] }
 0x28b   : > { %v3080_v22 = vmul.f32 0.01, %v2911_v5  ;;  %3594 = vmatprep.subr.bf16.mxu1 %v5292_v26  ;;  %v3266_v29 = vmax.f32 %v2907_v10, %v3074_v35 }
 0x28c   : > { %v3271_v59 = vmax.f32 %v2909_v21, %v3079_v19  ;;  %v5664_v21 = vld [vmem:[#allocation24_spill] sm:$0xff] }
 0x28d   : > { %v3272_v33 = vmax.f32 %v2911_v5, %v3080_v22  ;;  %v2914_v6 = vpop.f32.mrb[80].mxu0  ;;  %v5665_v5 = vld [vmem:[#allocation4_spill] sm:$0xff] }
 0x28e   : > { %v3440_v52 = vpack.c.bf16 %v3271_v59, %v3265_v62  ;;  %v2915_v55 = vadd.f32 %v2914_v6, %v5228_v23  ;;  %v2916_v53 = vpop.f32.mrb[81].mxu0  ;;  %3595 = vmatpush1.bf16.msra.mxu1 %v5286_v27 }
 0x28f   : > { %v2917_v50 = vadd.f32 %v2916_v53, %v5228_v23  ;;  %v2918_v24 = vpop.f32.mrb[82].mxu0  ;;  %3596 = vmatprep.subr.bf16.mxu1 %v5308_v43  ;;  %v3441_v16 = vpack.c.bf16 %v3272_v33, %v3266_v29  ;;  %v5666_v33 = vld [vmem:[#allocation23_spill] sm:$0xff] }
 0x290   : > { %v3085_v28 = vmul.f32 0.01, %v2915_v55  ;;  %v2919_v26 = vadd.f32 %v2918_v24, %v5226_v42  ;;  %v2920_v58 = vpop.f32.mrb[83].mxu0 }
 0x291   : > { %v3086_v8 = vmul.f32 0.01, %v2917_v50  ;;  %v2921_v7 = vadd.f32 %v2920_v58, %v5226_v42  ;;  %3629 = vmatprep.subr.bf16.mxu0 %v3441_v16 }
 0x292   : > { %v3091_v40 = vmul.f32 0.01, %v2919_v26  ;;  %3597 = vmatpush1.bf16.msra.mxu1 %v5302_v47  ;;  %3630 = vmatpush1.bf16.msra.mxu0 %v3440_v52  ;;  %v3277_v23 = vmax.f32 %v2915_v55, %v3085_v28  ;;  %v5667_v52 = vld [vmem:[#allocation28_spill] sm:$0xff] }
 0x293   : > { %v3092_v13 = vmul.f32 0.01, %v2921_v7  ;;  %3598 = vmatprep.subr.bf16.mxu1 %v5324_v36  ;;  %v3278_v31 = vmax.f32 %v2917_v50, %v3086_v8 }
 0x294   : > { %v3283_v27 = vmax.f32 %v2919_v26, %v3091_v40  ;;  %v5668_v26 = vld [vmem:[#allocation7_spill] sm:$0xff] }
 0x295   : > { %v3284_v43 = vmax.f32 %v2921_v7, %v3092_v13  ;;  %v2924_v37 = vpop.f32.mrb[84].mxu0  ;;  %v5669_v7 = vld [vmem:[#allocation27_spill] sm:$0xff] }
 0x296   : > { %v3446_v45 = vpack.c.bf16 %v3283_v27, %v3277_v23  ;;  %v2925_v48 = vadd.f32 %v2924_v37, %v5252_v63  ;;  %v2926_v1 = vpop.f32.mrb[85].mxu0  ;;  %3599 = vmatpush1.bf16.msra.mxu1 %v5657_v44  ;;  %v5670_v23 = vld [vmem:[#allocation32_spill] sm:$0xff] }
 0x297   : > { %v2927_v42 = vadd.f32 %v2926_v1, %v5252_v63  ;;  %v2928_v2 = vpop.f32.mrb[86].mxu0  ;;  %3600 = vmatprep.subr.bf16.mxu1 %v5658_v60  ;;  %v3447_v47 = vpack.c.bf16 %v3284_v43, %v3278_v31  ;;  %v5671_v43 = vld [vmem:[#allocation6_spill] sm:$0xff] }
 0x298   : > { %v3097_v17 = vmul.f32 0.01, %v2925_v48  ;;  %v2929_v36 = vadd.f32 %v2928_v2, %v5659_v57  ;;  %v2930_v49 = vpop.f32.mrb[87].mxu0 }
 0x299   : > { %v3098_v41 = vmul.f32 0.01, %v2927_v42  ;;  %v2931_v34 = vadd.f32 %v2930_v49, %v5659_v57  ;;  %3631 = vmatprep.subr.bf16.mxu0 %v3447_v47 }
 0x29a   : > { %v3103_v0 = vmul.f32 0.01, %v2929_v36  ;;  %3601 = vmatpush1.bf16.msra.mxu1 %v5660_v39  ;;  %3632 = vmatpush1.bf16.msra.mxu0 %v3446_v45  ;;  %v3289_v63 = vmax.f32 %v2925_v48, %v3097_v17  ;;  %v5674_v39 = vld [vmem:[#allocation35_spill] sm:$0xff] }
 0x29b   : > { %v3104_v61 = vmul.f32 0.01, %v2931_v34  ;;  %3602 = vmatprep.subr.bf16.mxu1 %v5661_v12  ;;  %v3290_v11 = vmax.f32 %v2927_v42, %v3098_v41  ;;  %v5672_v42 = vld [vmem:[#allocation31_spill] sm:$0xff]  ;;  %v5673_v41 = vld [vmem:[#allocation9_spill] sm:$0xff] }
 0x29c   : > { %v3295_v9 = vmax.f32 %v2929_v36, %v3103_v0 }
 0x29d   : > { %v3296_v30 = vmax.f32 %v2931_v34, %v3104_v61  ;;  %v2934_v56 = vpop.f32.mrb[88].mxu0 }
 0x29e   : > { %v3452_v3 = vpack.c.bf16 %v3295_v9, %v3289_v63  ;;  %v2935_v20 = vadd.f32 %v2934_v56, %v5662_v15  ;;  %v2936_v10 = vpop.f32.mrb[89].mxu0  ;;  %3603 = vmatpush1.bf16.msra.mxu1 %v5663_v14 }
 0x29f   : > { %v2937_v46 = vadd.f32 %v2936_v10, %v5662_v15  ;;  %v2938_v32 = vpop.f32.mrb[90].mxu0  ;;  %3604 = vmatprep.subr.bf16.mxu1 %v5664_v21  ;;  %v3453_v54 = vpack.c.bf16 %v3296_v30, %v3290_v11  ;;  %v5675_v11 = vld [vmem:[#allocation8_spill] sm:$0xff] }
 0x2a0   : > { %v3109_v35 = vmul.f32 0.01, %v2935_v20  ;;  %v2939_v19 = vadd.f32 %v2938_v32, %v5665_v5  ;;  %v2940_v22 = vpop.f32.mrb[91].mxu0 }
 0x2a1   : > { %v3110_v62 = vmul.f32 0.01, %v2937_v46  ;;  %v2941_v59 = vadd.f32 %v2940_v22, %v5665_v5  ;;  %3633 = vmatprep.subr.bf16.mxu0 %v3453_v54  ;;  %v5676_v54 = vld [vmem:[#allocation11_spill] sm:$0xff] }
 0x2a2   : > { %v3115_v29 = vmul.f32 0.01, %v2939_v19  ;;  %3605 = vmatpush1.bf16.msra.mxu1 %v5666_v33  ;;  %3634 = vmatpush1.bf16.msra.mxu0 %v3452_v3  ;;  %v3301_v55 = vmax.f32 %v2935_v20, %v3109_v35 }
 0x2a3   : > { %v3116_v6 = vmul.f32 0.01, %v2941_v59  ;;  %3606 = vmatprep.subr.bf16.mxu1 %v5667_v52  ;;  %v3302_v50 = vmax.f32 %v2937_v46, %v3110_v62 }
 0x2a4   : > { %v3307_v53 = vmax.f32 %v2939_v19, %v3115_v29  ;;  %v5677_v29 = vld [vmem:[#allocation10_spill] sm:$0xff] }
 0x2a5   : > { %v3308_v24 = vmax.f32 %v2941_v59, %v3116_v6  ;;  %v2944_v16 = vpop.f32.mrb[92].mxu0 }
 0x2a6   : > { %v3458_v28 = vpack.c.bf16 %v3307_v53, %v3301_v55  ;;  %v2945_v58 = vadd.f32 %v2944_v16, %v5668_v26  ;;  %v2946_v8 = vpop.f32.mrb[93].mxu0  ;;  %3607 = vmatpush1.bf16.msra.mxu1 %v5669_v7 }
 0x2a7   : > { %v2947_v40 = vadd.f32 %v2946_v8, %v5668_v26  ;;  %v2948_v13 = vpop.f32.mrb[94].mxu0  ;;  %3608 = vmatprep.subr.bf16.mxu1 %v5670_v23  ;;  %v3459_v27 = vpack.c.bf16 %v3308_v24, %v3302_v50  ;;  %v5678_v8 = vld [vmem:[#allocation14_spill] sm:$0xff] }
 0x2a8   : > { %v3121_v31 = vmul.f32 0.01, %v2945_v58  ;;  %v2949_v37 = vadd.f32 %v2948_v13, %v5671_v43  ;;  %v2950_v45 = vpop.f32.mrb[95].mxu0 }
 0x2a9   : > { %v3122_v48 = vmul.f32 0.01, %v2947_v40  ;;  %v2951_v1 = vadd.f32 %v2950_v45, %v5671_v43  ;;  %3635 = vmatprep.subr.bf16.mxu0 %v3459_v27  ;;  %v5679_v43 = vld [vmem:[#allocation13_spill] sm:$0xff] }
 0x2aa   : > { %v3127_v44 = vmul.f32 0.01, %v2949_v37  ;;  %3609 = vmatpush1.bf16.msra.mxu1 %v5672_v42  ;;  %3636 = vmatpush1.bf16.msra.mxu0 %v3458_v28  ;;  %v3313_v60 = vmax.f32 %v2945_v58, %v3121_v31 }
 0x2ab   : > { %v3128_v2 = vmul.f32 0.01, %v2951_v1  ;;  %3610 = vmatprep.subr.bf16.mxu1 %v5420_v25  ;;  %v3314_v17 = vmax.f32 %v2947_v40, %v3122_v48 }
 0x2ac   : > { %v3319_v47 = vmax.f32 %v2949_v37, %v3127_v44 }
 0x2ad   : > { %v3320_v57 = vmax.f32 %v2951_v1, %v3128_v2  ;;  %v2954_v36 = vpop.f32.mrb[96].mxu0 }
 0x2ae   : > { %v3464_v49 = vpack.c.bf16 %v3319_v47, %v3313_v60  ;;  %v2955_v34 = vadd.f32 %v2954_v36, %v5673_v41  ;;  %v2956_v0 = vpop.f32.mrb[97].mxu0  ;;  %3611 = vmatpush1.bf16.msra.mxu1 %v5674_v39 }
 0x2af   : > { %v2957_v61 = vadd.f32 %v2956_v0, %v5673_v41  ;;  %v2958_v12 = vpop.f32.mrb[98].mxu0  ;;  %3612 = vmatprep.subr.bf16.mxu1 %v5430_v51  ;;  %v3465_v63 = vpack.c.bf16 %v3320_v57, %v3314_v17 }
 0x2b0   : > { %v3133_v9 = vmul.f32 0.01, %v2955_v34  ;;  %v2959_v25 = vadd.f32 %v2958_v12, %v5675_v11  ;;  %v2960_v30 = vpop.f32.mrb[99].mxu0 }
 0x2b1   : > { %v3134_v56 = vmul.f32 0.01, %v2957_v61  ;;  %v2961_v3 = vadd.f32 %v2960_v30, %v5675_v11  ;;  %3637 = vmatprep.subr.bf16.mxu0 %v3465_v63  ;;  %v5681_v63 = vld [vmem:[#allocation17_spill] sm:$0xff] }
 0x2b2   : > { %v3139_v15 = vmul.f32 0.01, %v2959_v25  ;;  %3613 = vmatpush1.bf16.msra.mxu1 %v5426_v18  ;;  %3638 = vmatpush1.bf16.msra.mxu0 %v3464_v49  ;;  %v3325_v10 = vmax.f32 %v2955_v34, %v3133_v9  ;;  %v5680_v49 = vld [vmem:[#allocation18_spill] sm:$0xff] }
 0x2b3   : > { %v3140_v20 = vmul.f32 0.01, %v2961_v3  ;;  %v3326_v46 = vmax.f32 %v2957_v61, %v3134_v56 }
 0x2b4   : > { %v3331_v14 = vmax.f32 %v2959_v25, %v3139_v15 }
 0x2b5   : > { %v3332_v32 = vmax.f32 %v2961_v3, %v3140_v20  ;;  %v2964_v21 = vpop.f32.mrb[100].mxu0  ;;  %3615 = vmatmul.mubr.bf16.vlgmr.msra.gmra.mrb[68].mxu1 %v5438_v4 }
 0x2b6   : > { %v3470_v51 = vpack.c.bf16 %v3331_v14, %v3325_v10  ;;  %v2965_v35 = vadd.f32 %v2964_v21, %v5676_v54  ;;  %v2966_v5 = vpop.f32.mrb[101].mxu0  ;;  %v5682_v21 = vld [vmem:[#allocation22_spill] sm:$0xff] }
 0x2b7   : > { %v2967_v19 = vadd.f32 %v2966_v5, %v5676_v54  ;;  %v2968_v22 = vpop.f32.mrb[102].mxu0  ;;  %v3471_v62 = vpack.c.bf16 %v3332_v32, %v3326_v46 }
 0x2b8   : > { %v3145_v59 = vmul.f32 0.01, %v2965_v35  ;;  %v2969_v18 = vadd.f32 %v2968_v22, %v5677_v29  ;;  %v2970_v33 = vpop.f32.mrb[103].mxu0 }
 0x2b9   : > { %v3146_v6 = vmul.f32 0.01, %v2967_v19  ;;  %v2971_v52 = vadd.f32 %v2970_v33, %v5677_v29  ;;  %3639 = vmatprep.subr.bf16.mxu0 %v3471_v62  ;;  %v5683_v62 = vld [vmem:[#allocation21_spill] sm:$0xff] }
 0x2ba   : > { %v3151_v55 = vmul.f32 0.01, %v2969_v18  ;;  %3640 = vmatpush1.bf16.msra.mxu0 %v3470_v51  ;;  %v3337_v50 = vmax.f32 %v2965_v35, %v3145_v59 }
 0x2bb   : > { %v3152_v53 = vmul.f32 0.01, %v2971_v52  ;;  %v3338_v16 = vmax.f32 %v2967_v19, %v3146_v6 }
 0x2bc   : > { %v3343_v24 = vmax.f32 %v2969_v18, %v3151_v55 }
 0x2bd   : > { %v3344_v28 = vmax.f32 %v2971_v52, %v3152_v53  ;;  %v2974_v26 = vpop.f32.mrb[104].mxu0 }
 0x2be   : > { %v3476_v58 = vpack.c.bf16 %v3343_v24, %v3337_v50  ;;  %v2975_v7 = vadd.f32 %v2974_v26, %v5678_v8  ;;  %v2976_v40 = vpop.f32.mrb[105].mxu0  ;;  %v5684_v26 = vld [vmem:[#allocation26_spill] sm:$0xff] }
 0x2bf   : > { %v2977_v13 = vadd.f32 %v2976_v40, %v5678_v8  ;;  %v2978_v23 = vpop.f32.mrb[106].mxu0  ;;  %v3477_v27 = vpack.c.bf16 %v3344_v28, %v3338_v16 }
 0x2c0   : > { %v3157_v31 = vmul.f32 0.01, %v2975_v7  ;;  %v2979_v37 = vadd.f32 %v2978_v23, %v5679_v43  ;;  %v2980_v45 = vpop.f32.mrb[107].mxu0 }
 0x2c1   : > { %v3158_v48 = vmul.f32 0.01, %v2977_v13  ;;  %v2981_v1 = vadd.f32 %v2980_v45, %v5679_v43  ;;  %3641 = vmatprep.subr.bf16.mxu0 %v3477_v27  ;;  %v5685_v27 = vld [vmem:[#allocation25_spill] sm:$0xff] }
 0x2c2   : > { %v3163_v44 = vmul.f32 0.01, %v2979_v37  ;;  %3642 = vmatpush1.bf16.msra.mxu0 %v3476_v58  ;;  %v3349_v2 = vmax.f32 %v2975_v7, %v3157_v31 }
 0x2c3   : > { %v3164_v42 = vmul.f32 0.01, %v2981_v1  ;;  %v3350_v47 = vmax.f32 %v2977_v13, %v3158_v48 }
 0x2c4   : > { %v3355_v60 = vmax.f32 %v2979_v37, %v3163_v44 }
 0x2c5   : > { %v3356_v17 = vmax.f32 %v2981_v1, %v3164_v42  ;;  %v2984_v57 = vpop.f32.mrb[108].mxu0 }
 0x2c6   : > { %v3482_v36 = vpack.c.bf16 %v3355_v60, %v3349_v2  ;;  %v2985_v41 = vadd.f32 %v2984_v57, %v5680_v49  ;;  %v2986_v34 = vpop.f32.mrb[109].mxu0  ;;  %v5686_v57 = vld [vmem:[#allocation30_spill] sm:$0xff] }
 0x2c7   : > { %v2987_v0 = vadd.f32 %v2986_v34, %v5680_v49  ;;  %v2988_v39 = vpop.f32.mrb[110].mxu0  ;;  %v3483_v61 = vpack.c.bf16 %v3356_v17, %v3350_v47 }
 0x2c8   : > { %v3169_v12 = vmul.f32 0.01, %v2985_v41  ;;  %v2989_v9 = vadd.f32 %v2988_v39, %v5681_v63  ;;  %v2990_v11 = vpop.f32.mrb[111].mxu0 }
 0x2c9   : > { %v3170_v25 = vmul.f32 0.01, %v2987_v0  ;;  %v2991_v30 = vadd.f32 %v2990_v11, %v5681_v63  ;;  %3643 = vmatprep.subr.bf16.mxu0 %v3483_v61  ;;  %v5687_v61 = vld [vmem:[#allocation29_spill] sm:$0xff] }
 0x2ca   : > { %v3175_v56 = vmul.f32 0.01, %v2989_v9  ;;  %3644 = vmatpush1.bf16.msra.mxu0 %v3482_v36  ;;  %v3361_v15 = vmax.f32 %v2985_v41, %v3169_v12 }
 0x2cb   : > { %v3176_v3 = vmul.f32 0.01, %v2991_v30  ;;  %v3362_v10 = vmax.f32 %v2987_v0, %v3170_v25 }
 0x2cc   : > { %v3367_v20 = vmax.f32 %v2989_v9, %v3175_v56 }
 0x2cd   : > { %v3368_v14 = vmax.f32 %v2991_v30, %v3176_v3  ;;  %v2994_v46 = vpop.f32.mrb[112].mxu0 }
 0x2ce   : > { %v3488_v32 = vpack.c.bf16 %v3367_v20, %v3361_v15  ;;  %v2995_v51 = vadd.f32 %v2994_v46, %v5682_v21  ;;  %v2996_v54 = vpop.f32.mrb[113].mxu0  ;;  %v5688_v46 = vld [vmem:[#allocation34_spill] sm:$0xff] }
 0x2cf   : > { %v2997_v35 = vadd.f32 %v2996_v54, %v5682_v21  ;;  %v2998_v5 = vpop.f32.mrb[114].mxu0  ;;  %v3489_v19 = vpack.c.bf16 %v3368_v14, %v3362_v10 }
 0x2d0   : > { %v3181_v22 = vmul.f32 0.01, %v2995_v51  ;;  %v2999_v59 = vadd.f32 %v2998_v5, %v5683_v62  ;;  %v3000_v29 = vpop.f32.mrb[115].mxu0 }
 0x2d1   : > { %v3182_v18 = vmul.f32 0.01, %v2997_v35  ;;  %v3001_v33 = vadd.f32 %v3000_v29, %v5683_v62  ;;  %3645 = vmatprep.subr.bf16.mxu0 %v3489_v19  ;;  %v5689_v19 = vld [vmem:[#allocation33_spill] sm:$0xff] }
 0x2d2   : > { %v3187_v6 = vmul.f32 0.01, %v2999_v59  ;;  %3646 = vmatpush1.bf16.msra.mxu0 %v3488_v32  ;;  %v3373_v55 = vmax.f32 %v2995_v51, %v3181_v22 }
 0x2d3   : > { %v3188_v52 = vmul.f32 0.01, %v3001_v33  ;;  %v3374_v50 = vmax.f32 %v2997_v35, %v3182_v18 }
 0x2d4   : > { %v3379_v53 = vmax.f32 %v2999_v59, %v3187_v6 }
 0x2d5   : > { %v3380_v24 = vmax.f32 %v3001_v33, %v3188_v52  ;;  %v3004_v16 = vpop.f32.mrb[116].mxu0 }
 0x2d6   : > { %v3494_v28 = vpack.c.bf16 %v3379_v53, %v3373_v55  ;;  %v3005_v58 = vadd.f32 %v3004_v16, %v5684_v26  ;;  %v3006_v8 = vpop.f32.mrb[117].mxu0  ;;  %v3515_v16 = vstv %s3514_s17 }
 0x2d7   : > { %v3007_v7 = vadd.f32 %v3006_v8, %v5684_v26  ;;  %v3008_v40 = vpop.f32.mrb[118].mxu0  ;;  %v3495_v13 = vpack.c.bf16 %v3380_v24, %v3374_v50 }
 0x2d8   : > { %v3193_v23 = vmul.f32 0.01, %v3005_v58  ;;  %v3009_v31 = vadd.f32 %v3008_v40, %v5685_v27  ;;  %v3010_v43 = vpop.f32.mrb[119].mxu0 }
 0x2d9   : > { %v3194_v37 = vmul.f32 0.01, %v3007_v7  ;;  %v3011_v45 = vadd.f32 %v3010_v43, %v5685_v27  ;;  %3647 = vmatprep.subr.bf16.mxu0 %v3495_v13 }
 0x2da   : > { %v3199_v48 = vmul.f32 0.01, %v3009_v31  ;;  %3648 = vmatpush1.bf16.msra.mxu0 %v3494_v28  ;;  %v3385_v44 = vmax.f32 %v3005_v58, %v3193_v23 }
 0x2db   : > { %v3200_v1 = vmul.f32 0.01, %v3011_v45  ;;  %v3386_v2 = vmax.f32 %v3007_v7, %v3194_v37 }
 0x2dc   : > { %v3391_v42 = vmax.f32 %v3009_v31, %v3199_v48 }
 0x2dd   : > { %v3392_v60 = vmax.f32 %v3011_v45, %v3200_v1  ;;  %v3014_v47 = vpop.f32.mrb[120].mxu0 }
 0x2de   : > { %v3500_v17 = vpack.c.bf16 %v3391_v42, %v3385_v44  ;;  %v3015_v36 = vadd.f32 %v3014_v47, %v5686_v57  ;;  %v3016_v49 = vpop.f32.mrb[121].mxu0 }
 0x2df   : > { %v3017_v41 = vadd.f32 %v3016_v49, %v5686_v57  ;;  %v3018_v34 = vpop.f32.mrb[122].mxu0  ;;  %v3501_v0 = vpack.c.bf16 %v3392_v60, %v3386_v2 }
 0x2e0   : > { %v3205_v39 = vmul.f32 0.01, %v3015_v36  ;;  %v3019_v12 = vadd.f32 %v3018_v34, %v5687_v61  ;;  %v3020_v63 = vpop.f32.mrb[123].mxu0 }
 0x2e1   : > { %v3206_v9 = vmul.f32 0.01, %v3017_v41  ;;  %v3021_v11 = vadd.f32 %v3020_v63, %v5687_v61  ;;  %3649 = vmatprep.subr.bf16.mxu0 %v3501_v0  ;;  %v5690_v0 = vlaneseq }
 0x2e2   : > { %v3211_v25 = vmul.f32 0.01, %v3019_v12  ;;  %3650 = vmatpush1.bf16.msra.mxu0 %v3500_v17  ;;  %v3397_v56 = vmax.f32 %v3015_v36, %v3205_v39 }
 0x2e3   : > { %v3212_v30 = vmul.f32 0.01, %v3021_v11  ;;  %v3398_v15 = vmax.f32 %v3017_v41, %v3206_v9  ;;  %vm3713_vm0 = vcmp.lt.s32.totalorder %v5690_v0, 768 }
 0x2e4   : > { %v3403_v3 = vmax.f32 %v3019_v12, %v3211_v25 }
 0x2e5   : > { %v3404_v20 = vmax.f32 %v3021_v11, %v3212_v30  ;;  %v3024_v10 = vpop.f32.mrb[124].mxu0 }
 0x2e6   : > { %v3506_v14 = vpack.c.bf16 %v3403_v3, %v3397_v56  ;;  %v3025_v32 = vadd.f32 %v3024_v10, %v5688_v46  ;;  %v3026_v21 = vpop.f32.mrb[125].mxu0 }
 0x2e7   : > { %v3027_v51 = vadd.f32 %v3026_v21, %v5688_v46  ;;  %v3028_v54 = vpop.f32.mrb[126].mxu0  ;;  %v3507_v35 = vpack.c.bf16 %v3404_v20, %v3398_v15 }
 0x2e8   : > { %v3217_v5 = vmul.f32 0.01, %v3025_v32  ;;  %v3029_v22 = vadd.f32 %v3028_v54, %v5689_v19  ;;  %v3030_v62 = vpop.f32.mrb[127].mxu0 }
 0x2e9   : > { %v3218_v59 = vmul.f32 0.01, %v3027_v51  ;;  %v3031_v29 = vadd.f32 %v3030_v62, %v5689_v19  ;;  %3651 = vmatprep.subr.bf16.mxu0 %v3507_v35 }
 0x2ea   : > { %v3223_v18 = vmul.f32 0.01, %v3029_v22  ;;  %3652 = vmatpush1.bf16.msra.mxu0 %v3506_v14  ;;  %v3409_v6 = vmax.f32 %v3025_v32, %v3217_v5 }
 0x2eb   : > { %v3224_v33 = vmul.f32 0.01, %v3031_v29  ;;  %v3410_v55 = vmax.f32 %v3027_v51, %v3218_v59 }
 0x2ec   : > { %v3415_v52 = vmax.f32 %v3029_v22, %v3223_v18 }
 0x2ed   : > { %v3416_v53 = vmax.f32 %v3031_v29, %v3224_v33 }
 0x2ee   : > { %v3512_v50 = vpack.c.bf16 %v3415_v52, %v3409_v6 }
 0x2ef   : > { %v3513_v24 = vpack.c.bf16 %v3416_v53, %v3410_v55 }
 0x2f1   : > { %3653 = vmatprep.subr.bf16.mxu0 %v3513_v24 }
 0x2f2   : > { %3654 = vmatpush1.bf16.msra.mxu0 %v3512_v50 }
 0x2f5   : > { %3656 = vmatmul.mubr.bf16.vlgmr.msra.gmra.mrb[128].mxu0 %v5438_v4 }
 0x348   : > { %v3575_v28 = vpop.f32.mrb[64].mxu1 }
 0x349   : > { %v3576_v26 = vadd.f32 %v3575_v28, %v3515_v16  ;;  %v3577_v58 = vpop.f32.mrb[65].mxu1 }
 0x34a   : > { %v3578_v8 = vadd.f32 %v3577_v58, %v3515_v16  ;;  %v3579_v7 = vpop.f32.mrb[66].mxu1 }
 0x34b   : > { %v3580_v40 = vpop.f32.mrb[67].mxu1 }
 0x34c   : > { %v3670_v13 = vcombine.low %v3576_v26, %v3578_v8 }
 0x34e   : > { %v3679_v1 = vrot.slane %v3670_v13, %v5210_v38 }
 0x388   : > { %v3616_v23 = vpop.f32.mrb[68].mxu1 }
 0x389   : > { %v3617_v27 = vadd.f32 %v3616_v23, %v3515_v16  ;;  %v3618_v31 = vpop.f32.mrb[69].mxu1 }
 0x38a   : > { %v3619_v43 = vadd.f32 %v3618_v31, %v3515_v16  ;;  %v3620_v37 = vpop.f32.mrb[70].mxu1 }
 0x38b   : > { %v3621_v45 = vpop.f32.mrb[71].mxu1 }
 0x38c   : > { %v3671_v48 = vcombine.low %v3617_v27, %v3619_v43 }
 0x38e   : > { %v3686_v4 = vrot.slane %v3671_v48, %v5210_v38 }
 0x390   : > { %v3694_v44 = vcombine.low %v3679_v1, %v3686_v4 }
 0x392   : > { %v3701_v41 = vrot.slane %v3694_v44, %v5210_v38 }
 0x3c8   : > { %v3657_v42 = vpop.f32.mrb[128].mxu0 }
 0x3c9   : > { %v3658_v2 = vadd.f32 %v3657_v42, %v3515_v16  ;;  %v3659_v60 = vpop.f32.mrb[129].mxu0 }
 0x3ca   : > { %v3660_v47 = vadd.f32 %v3659_v60, %v3515_v16  ;;  %v3661_v17 = vpop.f32.mrb[130].mxu0 }
 0x3cb   : > { %v3662_v57 = vpop.f32.mrb[131].mxu0 }
 0x3cc   : > { %v3672_v36 = vcombine.low %v3658_v2, %v3660_v47 }
 0x3ce   : > { %v3693_v49 = vrot.slane %v3672_v36, %v5210_v38 }
 0x3d0   : > { %v3708_v34 = vrot.slane %v3693_v49, %v5210_v38 }
 0x3d2   : > { %v3709_v39 = vcombine.low %v3701_v41, %v3708_v34 }
 0x3d4   : > { %3715 = vst.msk [vmem:[%s274_s20] sm:$0x3f] %vm3713_vm0, %v3709_v39 }
 0x3d5 PF: > { %s18_s26 = sadd.s32 1, %s3978_s26  }
 0x3d6   : > { %p15_p4 = scmp.ge.s32.totalorder %s18_s26, 4  }
 0x3d8   :  { %17 = sbr.rel (!%p15_p4) target bundleno = 2 (0x2), region = 78 }

</bundles_post_ra>
